<compile_context>
chip_gen: v7x
topology: tpu7x:2x2x1
jax: 0.10.0
libtpu: 0.0.40
codegen_flags: <defaults>
</compile_context>

<pallas_src>
import numpy as np
import jax
import jax.numpy as jnp
from jax.experimental import pallas as pl
from jax.experimental.pallas import tpu as pltpu

# ---- fixed cv2 stencils (separable form) -------------------------------------------
_GAUSS_TAPS = (1.0 / 16, 4.0 / 16, 6.0 / 16, 4.0 / 16, 1.0 / 16)   # GaussianBlur 5, sigma=0
_SMOOTH_TAPS = (1.0, 4.0, 6.0, 4.0, 1.0)                           # Sobel smoothing, ksize=5
_DERIV_TAPS = (1.0, 0.0, -2.0, 0.0, 1.0)                           # 2nd-derivative, ksize=5

# direct 2-D constants (used only by the spec cross-check in __main__)
_S_NP = np.array([1.0, 4.0, 6.0, 4.0, 1.0])
_D_NP = np.array([1.0, 0.0, -2.0, 0.0, 1.0])
GAUSS_2D = np.outer(_S_NP, _S_NP) / 256.0
LAPLACE_2D = np.outer(_S_NP, _D_NP) + np.outer(_D_NP, _S_NP)


# ---- shared math helpers (pure jnp; used inside the kernel AND by the reference) ----
def _window_slice(xp, dx, W):
    return xp[:, dx:dx + W]


def _window_kernel(xp, dx, W):
    """In-kernel horizontal window. For lane-aligned W the dx shift is an XLU rotate
    (pltpu.roll) instead of an unaligned lane slice; otherwise a plain static slice."""
    if dx == 0:
        return xp[:, :W]
    if W % 128 == 0:
        return pltpu.roll(xp, shift=xp.shape[-1] - dx, axis=-1)[:, :W]
    return xp[:, dx:dx + W]


def _hpass(xp, taps, W, window):
    """Horizontal 5-tap pass: (R, W+4) -> (R, W). Zero taps are skipped."""
    acc = None
    for dx in range(5):
        w = taps[dx]
        if w == 0.0:
            continue
        term = window(xp, dx, W)
        if w != 1.0:
            term = term * w
        acc = term if acc is None else acc + term
    return acc


def _vpass(xh, taps, H):
    """Vertical 5-tap pass: (H+4, W) -> (H, W). Zero taps are skipped."""
    acc = None
    for dy in range(5):
        w = taps[dy]
        if w == 0.0:
            continue
        term = xh[dy:dy + H, :]
        if w != 1.0:
            term = term * w
        acc = term if acc is None else acc + term
    return acc


def _frame_laplacian(gray, H, W, pad_fn, window):
    """(H, W) gray frame -> GaussianBlur(5, reflect101) then Laplacian(ksize=5, reflect101)."""
    gp = pad_fn(gray)                                                    # (H+4, W+4)
    blur = _vpass(_hpass(gp, _GAUSS_TAPS, W, window), _GAUSS_TAPS, H)    # (H, W)
    bp = pad_fn(blur)                                                    # reflect-101 of blurred
    lap = (_vpass(_hpass(bp, _DERIV_TAPS, W, window), _SMOOTH_TAPS, H)
           + _vpass(_hpass(bp, _SMOOTH_TAPS, W, window), _DERIV_TAPS, H))
    return lap


# ---- in-kernel reflect-101 pad into a VMEM scratch tile -----------------------------
def _reflect101_pad2_into(pad_ref, a, H, W):
    """Write cv2 BORDER_REFLECT_101 2-pixel pad of `a` (H, W) into pad_ref (H+4, W+4)."""
    pad_ref[2:2 + H, 2:2 + W] = a
    # rows: pad row 0 <- a[2], 1 <- a[1], H+2 <- a[H-2], H+3 <- a[H-3]
    pad_ref[0:1, 2:2 + W] = a[2:3, :]
    pad_ref[1:2, 2:2 + W] = a[1:2, :]
    pad_ref[H + 2:H + 3, 2:2 + W] = a[H - 2:H - 1, :]
    pad_ref[H + 3:H + 4, 2:2 + W] = a[H - 3:H - 2, :]
    # cols (on the already row-padded buffer): 0 <- orig col 2 (pad col 4), 1 <- orig 1
    # (pad col 3), W+2 <- orig W-2 (pad col W), W+3 <- orig W-3 (pad col W-1)
    pad_ref[:, 0:1] = pad_ref[:, 4:5]
    pad_ref[:, 1:2] = pad_ref[:, 3:4]
    pad_ref[:, W + 2:W + 3] = pad_ref[:, W:W + 1]
    pad_ref[:, W + 3:W + 4] = pad_ref[:, W - 1:W]
    return pad_ref[...]


# ---- fused Pallas kernel ------------------------------------------------------------
def _make_fused_kernel(N, C, H, W):
    inv_c = 1.0 / float(C)

    def kernel(x_ref, out_ref, pad_ref):
        # x_ref: (1, N*C, H, W)   out_ref: (1, C, H, W)   pad_ref: (H+4, W+4) VMEM scratch
        pad_fn = lambda a: _reflect101_pad2_into(pad_ref, a, H, W)

        best_val = None
        best_px = None
        for n in range(N):
            # grayscale = channel mean of frame n
            gray = x_ref[0, n * C]
            for c in range(1, C):
                gray = gray + x_ref[0, n * C + c]
            gray = gray * inv_c                                   # (H, W)

            lap = _frame_laplacian(gray, H, W, pad_fn, _window_kernel)

            if n == 0:
                best_val = lap
                best_px = [x_ref[0, c] for c in range(C)]
            else:
                cond = lap > best_val          # strict '>' == np.argmax first-max-wins
                best_val = jnp.where(cond, lap, best_val)
                best_px = [jnp.where(cond, x_ref[0, n * C + c], best_px[c])
                           for c in range(C)]

        for c in range(C):
            out_ref[0, c] = best_px[c]

    return kernel


def laplacian_forward(x, *, vmem_limit_bytes=48 * 1024 * 1024):
    """x: (B, N, C, H, W) float -> merged (B, C, H, W) float32 (fused focus-merge)."""
    B, N, C, H, W = x.shape
    assert H >= 3 and W >= 3, "5x5 reflect-101 stencil needs H, W >= 3"
    xf = x.astype(jnp.float32)
    # leading-dim-only reshape (layout free): frames & channels share the block's 2nd dim
    x_flat = xf.reshape(B, N * C, H, W)

    # TODO(synk): for production image sizes where the (1, N*C, H, W) block exceeds the
    # scoped VMEM budget (e.g. N=8, C=3, H=W=1024 on v7x's 64 MiB), add an H-tile grid
    # axis with a 4-row reflect halo instead of one block per batch element.
    return pl.pallas_call(
        _make_fused_kernel(N, C, H, W),
        out_shape=jax.ShapeDtypeStruct((B, C, H, W), jnp.float32),
        grid=(B,),
        in_specs=[pl.BlockSpec((1, N * C, H, W), lambda b: (b, 0, 0, 0))],
        out_specs=pl.BlockSpec((1, C, H, W), lambda b: (b, 0, 0, 0)),
        scratch_shapes=[pltpu.VMEM((H + 4, W + 4), jnp.float32)],
        compiler_params=pltpu.CompilerParams(
            dimension_semantics=("parallel",),
            vmem_limit_bytes=vmem_limit_bytes,
        ),
    )(x_flat)


# ---- pure-JAX references (self-check only) ------------------------------------------
def laplacian_reference(x):
    """Same math as the kernel (separable, same op order), in plain JAX."""
    B, N, C, H, W = x.shape
    xf = x.astype(jnp.float32)
    gray = xf[:, :, 0]
    for c in range(1, C):
        gray = gray + xf[:, :, c]
    gray = (gray * (1.0 / C)).reshape(B * N, H, W)

    pad_fn = lambda a: jnp.pad(a, 2, mode="reflect")          # == cv2 BORDER_REFLECT_101
    laps = jnp.stack(
        [_frame_laplacian(gray[i], H, W, pad_fn, _window_slice) for i in range(B * N)],
        axis=0).reshape(B, N, H, W)

    idx = jnp.argmax(laps, axis=1)                            # first max wins
    gather = jnp.broadcast_to(idx[:, None, None, :, :], (B, 1, C, H, W))
    merged = jnp.take_along_axis(xf, gather, axis=1)[:, 0]
    return merged, laps


def _conv5x5_2d_ref(xp, K, H, W):
    acc = jnp.zeros((xp.shape[0], H, W), jnp.float32)
    for dy in range(5):
        for dx in range(5):
            if K[dy, dx] != 0.0:
                acc = acc + float(K[dy, dx]) * xp[:, dy:dy + H, dx:dx + W]
    return acc


def _laplacian_2d_direct(x):
    """Direct (non-separable) 2-D cv2 stencils — cross-check of the separable decomposition."""
    B, N, C, H, W = x.shape
    gray = x.astype(jnp.float32).mean(axis=2).reshape(B * N, H, W)
    gp = jnp.pad(gray, ((0, 0), (2, 2), (2, 2)), mode="reflect")
    blur = _conv5x5_2d_ref(gp, GAUSS_2D, H, W)
    bp = jnp.pad(blur, ((0, 0), (2, 2), (2, 2)), mode="reflect")
    return _conv5x5_2d_ref(bp, LAPLACE_2D, H, W).reshape(B, N, H, W)


if __name__ == "__main__":
    B, N, C, H, W = 2, 4, 3, 16, 16       # C=3: the module stacks 3 laplacian copies
    key = jax.random.PRNGKey(0)
    x = jax.random.uniform(key, (B, N, C, H, W), dtype=jnp.float32)

    out = jax.block_until_ready(laplacian_forward(x))
    ref_merged, ref_lap = laplacian_reference(x)
    ref_merged = jax.block_until_ready(ref_merged)

    # sanity: separable decomposition == literal 2-D cv2 5x5 stencils
    lap2d = jax.block_until_ready(_laplacian_2d_direct(x))
    np.testing.assert_allclose(np.asarray(ref_lap), np.asarray(lap2d), rtol=1e-4, atol=1e-4)

    assert out.shape == (B, C, H, W)
    np.testing.assert_allclose(np.asarray(out), np.asarray(ref_merged), rtol=1e-4, atol=1e-4)
    print("KERNEL_OK")
</pallas_src>

<mosaic_0001>
module attributes {stable_mosaic.version = 11 : i64} {
  func.func @kernel(%arg0: i32, %arg1: memref<1x12x16x16xf32, #tpu.memory_space<vmem>>, %arg2: memref<1x3x16x16xf32, #tpu.memory_space<vmem>>, %arg3: memref<20x20xf32, #tpu.memory_space<vmem>>) attributes {dimension_semantics = [#tpu.dimension_semantics<parallel>], iteration_bounds = array<i64: 2>, scalar_prefetch = 0 : i64, scratch_operands = 1 : i64, tpu.core_type = #tpu.core_type<tc>, window_params = [{transform_indices = @transform_0, window_bounds = array<i64: 1, 12, 16, 16>}, {transform_indices = @transform_1, window_bounds = array<i64: 1, 3, 16, 16>}]} {
    %c0 = arith.constant 0 : index
    %c0_0 = arith.constant 0 : index
    %c0_1 = arith.constant 0 : index
    %c0_2 = arith.constant 0 : index
    %0 = vector.load %arg1[%c0, %c0_0, %c0_1, %c0_2] : memref<1x12x16x16xf32, #tpu.memory_space<vmem>>, vector<1x1x16x16xf32>
    %1 = vector.shape_cast %0 : vector<1x1x16x16xf32> to vector<16x16xf32>
    %c0_3 = arith.constant 0 : index
    %c1 = arith.constant 1 : index
    %c0_4 = arith.constant 0 : index
    %c0_5 = arith.constant 0 : index
    %2 = vector.load %arg1[%c0_3, %c1, %c0_4, %c0_5] : memref<1x12x16x16xf32, #tpu.memory_space<vmem>>, vector<1x1x16x16xf32>
    %3 = vector.shape_cast %2 : vector<1x1x16x16xf32> to vector<16x16xf32>
    %4 = arith.addf %1, %3 : vector<16x16xf32>
    %c0_6 = arith.constant 0 : index
    %c2 = arith.constant 2 : index
    %c0_7 = arith.constant 0 : index
    %c0_8 = arith.constant 0 : index
    %5 = vector.load %arg1[%c0_6, %c2, %c0_7, %c0_8] : memref<1x12x16x16xf32, #tpu.memory_space<vmem>>, vector<1x1x16x16xf32>
    %6 = vector.shape_cast %5 : vector<1x1x16x16xf32> to vector<16x16xf32>
    %7 = arith.addf %4, %6 : vector<16x16xf32>
    %cst = arith.constant 0.333333343 : f32
    %8 = vector.broadcast %cst : f32 to vector<16x16xf32>
    %9 = arith.mulf %7, %8 : vector<16x16xf32>
    %c2_9 = arith.constant 2 : index
    %c2_10 = arith.constant 2 : index
    %10 = vector.load %arg3[%c2_9, %c2_10] : memref<20x20xf32, #tpu.memory_space<vmem>>, vector<16x16xf32>
    tpu.vector_store %arg3[%c2_9, %c2_10], %9 {strides = array<i32>} : memref<20x20xf32, #tpu.memory_space<vmem>>, vector<16x16xf32>,
    %11 = vector.extract_strided_slice %9 {offsets = [2, 0], sizes = [1, 16], strides = [1, 1]} : vector<16x16xf32> to vector<1x16xf32>
    %c0_11 = arith.constant 0 : index
    %c2_12 = arith.constant 2 : index
    %12 = vector.load %arg3[%c0_11, %c2_12] : memref<20x20xf32, #tpu.memory_space<vmem>>, vector<1x16xf32>
    tpu.vector_store %arg3[%c0_11, %c2_12], %11 {strides = array<i32>} : memref<20x20xf32, #tpu.memory_space<vmem>>, vector<1x16xf32>,
    %13 = vector.extract_strided_slice %9 {offsets = [1, 0], sizes = [1, 16], strides = [1, 1]} : vector<16x16xf32> to vector<1x16xf32>
    %c1_13 = arith.constant 1 : index
    %c2_14 = arith.constant 2 : index
    %14 = vector.load %arg3[%c1_13, %c2_14] : memref<20x20xf32, #tpu.memory_space<vmem>>, vector<1x16xf32>
    tpu.vector_store %arg3[%c1_13, %c2_14], %13 {strides = array<i32>} : memref<20x20xf32, #tpu.memory_space<vmem>>, vector<1x16xf32>,
    %15 = vector.extract_strided_slice %9 {offsets = [14, 0], sizes = [1, 16], strides = [1, 1]} : vector<16x16xf32> to vector<1x16xf32>
    %c18 = arith.constant 18 : index
    %c2_15 = arith.constant 2 : index
    %16 = vector.load %arg3[%c18, %c2_15] : memref<20x20xf32, #tpu.memory_space<vmem>>, vector<1x16xf32>
    tpu.vector_store %arg3[%c18, %c2_15], %15 {strides = array<i32>} : memref<20x20xf32, #tpu.memory_space<vmem>>, vector<1x16xf32>,
    %17 = vector.extract_strided_slice %9 {offsets = [13, 0], sizes = [1, 16], strides = [1, 1]} : vector<16x16xf32> to vector<1x16xf32>
    %c19 = arith.constant 19 : index
    %c2_16 = arith.constant 2 : index
    %18 = vector.load %arg3[%c19, %c2_16] : memref<20x20xf32, #tpu.memory_space<vmem>>, vector<1x16xf32>
    tpu.vector_store %arg3[%c19, %c2_16], %17 {strides = array<i32>} : memref<20x20xf32, #tpu.memory_space<vmem>>, vector<1x16xf32>,
    %c0_17 = arith.constant 0 : index
    %c4 = arith.constant 4 : index
    %19 = vector.load %arg3[%c0_17, %c4] : memref<20x20xf32, #tpu.memory_space<vmem>>, vector<20x1xf32>
    %c0_18 = arith.constant 0 : index
    %c0_19 = arith.constant 0 : index
    %20 = vector.load %arg3[%c0_18, %c0_19] : memref<20x20xf32, #tpu.memory_space<vmem>>, vector<20x1xf32>
    tpu.vector_store %arg3[%c0_18, %c0_19], %19 {strides = array<i32>} : memref<20x20xf32, #tpu.memory_space<vmem>>, vector<20x1xf32>,
    %c0_20 = arith.constant 0 : index
    %c3 = arith.constant 3 : index
    %21 = vector.load %arg3[%c0_20, %c3] : memref<20x20xf32, #tpu.memory_space<vmem>>, vector<20x1xf32>
    %c0_21 = arith.constant 0 : index
    %c1_22 = arith.constant 1 : index
    %22 = vector.load %arg3[%c0_21, %c1_22] : memref<20x20xf32, #tpu.memory_space<vmem>>, vector<20x1xf32>
    tpu.vector_store %arg3[%c0_21, %c1_22], %21 {strides = array<i32>} : memref<20x20xf32, #tpu.memory_space<vmem>>, vector<20x1xf32>,
    %c0_23 = arith.constant 0 : index
    %c16 = arith.constant 16 : index
    %23 = vector.load %arg3[%c0_23, %c16] : memref<20x20xf32, #tpu.memory_space<vmem>>, vector<20x1xf32>
    %c0_24 = arith.constant 0 : index
    %c18_25 = arith.constant 18 : index
    %24 = vector.load %arg3[%c0_24, %c18_25] : memref<20x20xf32, #tpu.memory_space<vmem>>, vector<20x1xf32>
    tpu.vector_store %arg3[%c0_24, %c18_25], %23 {strides = array<i32>} : memref<20x20xf32, #tpu.memory_space<vmem>>, vector<20x1xf32>,
    %c0_26 = arith.constant 0 : index
    %c15 = arith.constant 15 : index
    %25 = vector.load %arg3[%c0_26, %c15] : memref<20x20xf32, #tpu.memory_space<vmem>>, vector<20x1xf32>
    %c0_27 = arith.constant 0 : index
    %c19_28 = arith.constant 19 : index
    %26 = vector.load %arg3[%c0_27, %c19_28] : memref<20x20xf32, #tpu.memory_space<vmem>>, vector<20x1xf32>
    tpu.vector_store %arg3[%c0_27, %c19_28], %25 {strides = array<i32>} : memref<20x20xf32, #tpu.memory_space<vmem>>, vector<20x1xf32>,
    %c0_29 = arith.constant 0 : index
    %c0_30 = arith.constant 0 : index
    %27 = vector.load %arg3[%c0_29, %c0_30] : memref<20x20xf32, #tpu.memory_space<vmem>>, vector<20x20xf32>
    %28 = vector.extract_strided_slice %27 {offsets = [0, 0], sizes = [20, 16], strides = [1, 1]} : vector<20x20xf32> to vector<20x16xf32>
    %cst_31 = arith.constant 6.250000e-02 : f32
    %29 = vector.broadcast %cst_31 : f32 to vector<20x16xf32>
    %30 = arith.mulf %28, %29 : vector<20x16xf32>
    %31 = vector.extract_strided_slice %27 {offsets = [0, 1], sizes = [20, 16], strides = [1, 1]} : vector<20x20xf32> to vector<20x16xf32>
    %cst_32 = arith.constant 2.500000e-01 : f32
    %32 = vector.broadcast %cst_32 : f32 to vector<20x16xf32>
    %33 = arith.mulf %31, %32 : vector<20x16xf32>
    %34 = arith.addf %30, %33 : vector<20x16xf32>
    %35 = vector.extract_strided_slice %27 {offsets = [0, 2], sizes = [20, 16], strides = [1, 1]} : vector<20x20xf32> to vector<20x16xf32>
    %cst_33 = arith.constant 3.750000e-01 : f32
    %36 = vector.broadcast %cst_33 : f32 to vector<20x16xf32>
    %37 = arith.mulf %35, %36 : vector<20x16xf32>
    %38 = arith.addf %34, %37 : vector<20x16xf32>
    %39 = vector.extract_strided_slice %27 {offsets = [0, 3], sizes = [20, 16], strides = [1, 1]} : vector<20x20xf32> to vector<20x16xf32>
    %cst_34 = arith.constant 2.500000e-01 : f32
    %40 = vector.broadcast %cst_34 : f32 to vector<20x16xf32>
    %41 = arith.mulf %39, %40 : vector<20x16xf32>
    %42 = arith.addf %38, %41 : vector<20x16xf32>
    %43 = vector.extract_strided_slice %27 {offsets = [0, 4], sizes = [20, 16], strides = [1, 1]} : vector<20x20xf32> to vector<20x16xf32>
    %cst_35 = arith.constant 6.250000e-02 : f32
    %44 = vector.broadcast %cst_35 : f32 to vector<20x16xf32>
    %45 = arith.mulf %43, %44 : vector<20x16xf32>
    %46 = arith.addf %42, %45 : vector<20x16xf32>
    %47 = vector.extract_strided_slice %46 {offsets = [0, 0], sizes = [16, 16], strides = [1, 1]} : vector<20x16xf32> to vector<16x16xf32>
    %cst_36 = arith.constant 6.250000e-02 : f32
    %48 = vector.broadcast %cst_36 : f32 to vector<16x16xf32>
    %49 = arith.mulf %47, %48 : vector<16x16xf32>
    %50 = vector.extract_strided_slice %46 {offsets = [1, 0], sizes = [16, 16], strides = [1, 1]} : vector<20x16xf32> to vector<16x16xf32>
    %cst_37 = arith.constant 2.500000e-01 : f32
    %51 = vector.broadcast %cst_37 : f32 to vector<16x16xf32>
    %52 = arith.mulf %50, %51 : vector<16x16xf32>
    %53 = arith.addf %49, %52 : vector<16x16xf32>
    %54 = vector.extract_strided_slice %46 {offsets = [2, 0], sizes = [16, 16], strides = [1, 1]} : vector<20x16xf32> to vector<16x16xf32>
    %cst_38 = arith.constant 3.750000e-01 : f32
    %55 = vector.broadcast %cst_38 : f32 to vector<16x16xf32>
    %56 = arith.mulf %54, %55 : vector<16x16xf32>
    %57 = arith.addf %53, %56 : vector<16x16xf32>
    %58 = vector.extract_strided_slice %46 {offsets = [3, 0], sizes = [16, 16], strides = [1, 1]} : vector<20x16xf32> to vector<16x16xf32>
    %cst_39 = arith.constant 2.500000e-01 : f32
    %59 = vector.broadcast %cst_39 : f32 to vector<16x16xf32>
    %60 = arith.mulf %58, %59 : vector<16x16xf32>
    %61 = arith.addf %57, %60 : vector<16x16xf32>
    %62 = vector.extract_strided_slice %46 {offsets = [4, 0], sizes = [16, 16], strides = [1, 1]} : vector<20x16xf32> to vector<16x16xf32>
    %cst_40 = arith.constant 6.250000e-02 : f32
    %63 = vector.broadcast %cst_40 : f32 to vector<16x16xf32>
    %64 = arith.mulf %62, %63 : vector<16x16xf32>
    %65 = arith.addf %61, %64 : vector<16x16xf32>
    %c2_41 = arith.constant 2 : index
    %c2_42 = arith.constant 2 : index
    %66 = vector.load %arg3[%c2_41, %c2_42] : memref<20x20xf32, #tpu.memory_space<vmem>>, vector<16x16xf32>
    tpu.vector_store %arg3[%c2_41, %c2_42], %65 {strides = array<i32>} : memref<20x20xf32, #tpu.memory_space<vmem>>, vector<16x16xf32>,
    %67 = vector.extract_strided_slice %65 {offsets = [2, 0], sizes = [1, 16], strides = [1, 1]} : vector<16x16xf32> to vector<1x16xf32>
    %c0_43 = arith.constant 0 : index
    %c2_44 = arith.constant 2 : index
    %68 = vector.load %arg3[%c0_43, %c2_44] : memref<20x20xf32, #tpu.memory_space<vmem>>, vector<1x16xf32>
    tpu.vector_store %arg3[%c0_43, %c2_44], %67 {strides = array<i32>} : memref<20x20xf32, #tpu.memory_space<vmem>>, vector<1x16xf32>,
    %69 = vector.extract_strided_slice %65 {offsets = [1, 0], sizes = [1, 16], strides = [1, 1]} : vector<16x16xf32> to vector<1x16xf32>
    %c1_45 = arith.constant 1 : index
    %c2_46 = arith.constant 2 : index
    %70 = vector.load %arg3[%c1_45, %c2_46] : memref<20x20xf32, #tpu.memory_space<vmem>>, vector<1x16xf32>
    tpu.vector_store %arg3[%c1_45, %c2_46], %69 {strides = array<i32>} : memref<20x20xf32, #tpu.memory_space<vmem>>, vector<1x16xf32>,
    %71 = vector.extract_strided_slice %65 {offsets = [14, 0], sizes = [1, 16], strides = [1, 1]} : vector<16x16xf32> to vector<1x16xf32>
    %c18_47 = arith.constant 18 : index
    %c2_48 = arith.constant 2 : index
    %72 = vector.load %arg3[%c18_47, %c2_48] : memref<20x20xf32, #tpu.memory_space<vmem>>, vector<1x16xf32>
    tpu.vector_store %arg3[%c18_47, %c2_48], %71 {strides = array<i32>} : memref<20x20xf32, #tpu.memory_space<vmem>>, vector<1x16xf32>,
    %73 = vector.extract_strided_slice %65 {offsets = [13, 0], sizes = [1, 16], strides = [1, 1]} : vector<16x16xf32> to vector<1x16xf32>
    %c19_49 = arith.constant 19 : index
    %c2_50 = arith.constant 2 : index
    %74 = vector.load %arg3[%c19_49, %c2_50] : memref<20x20xf32, #tpu.memory_space<vmem>>, vector<1x16xf32>
    tpu.vector_store %arg3[%c19_49, %c2_50], %73 {strides = array<i32>} : memref<20x20xf32, #tpu.memory_space<vmem>>, vector<1x16xf32>,
    %c0_51 = arith.constant 0 : index
    %c4_52 = arith.constant 4 : index
    %75 = vector.load %arg3[%c0_51, %c4_52] : memref<20x20xf32, #tpu.memory_space<vmem>>, vector<20x1xf32>
    %c0_53 = arith.constant 0 : index
    %c0_54 = arith.constant 0 : index
    %76 = vector.load %arg3[%c0_53, %c0_54] : memref<20x20xf32, #tpu.memory_space<vmem>>, vector<20x1xf32>
    tpu.vector_store %arg3[%c0_53, %c0_54], %75 {strides = array<i32>} : memref<20x20xf32, #tpu.memory_space<vmem>>, vector<20x1xf32>,
    %c0_55 = arith.constant 0 : index
    %c3_56 = arith.constant 3 : index
    %77 = vector.load %arg3[%c0_55, %c3_56] : memref<20x20xf32, #tpu.memory_space<vmem>>, vector<20x1xf32>
    %c0_57 = arith.constant 0 : index
    %c1_58 = arith.constant 1 : index
    %78 = vector.load %arg3[%c0_57, %c1_58] : memref<20x20xf32, #tpu.memory_space<vmem>>, vector<20x1xf32>
    tpu.vector_store %arg3[%c0_57, %c1_58], %77 {strides = array<i32>} : memref<20x20xf32, #tpu.memory_space<vmem>>, vector<20x1xf32>,
    %c0_59 = arith.constant 0 : index
    %c16_60 = arith.constant 16 : index
    %79 = vector.load %arg3[%c0_59, %c16_60] : memref<20x20xf32, #tpu.memory_space<vmem>>, vector<20x1xf32>
    %c0_61 = arith.constant 0 : index
    %c18_62 = arith.constant 18 : index
    %80 = vector.load %arg3[%c0_61, %c18_62] : memref<20x20xf32, #tpu.memory_space<vmem>>, vector<20x1xf32>
    tpu.vector_store %arg3[%c0_61, %c18_62], %79 {strides = array<i32>} : memref<20x20xf32, #tpu.memory_space<vmem>>, vector<20x1xf32>,
    %c0_63 = arith.constant 0 : index
    %c15_64 = arith.constant 15 : index
    %81 = vector.load %arg3[%c0_63, %c15_64] : memref<20x20xf32, #tpu.memory_space<vmem>>, vector<20x1xf32>
    %c0_65 = arith.constant 0 : index
    %c19_66 = arith.constant 19 : index
    %82 = vector.load %arg3[%c0_65, %c19_66] : memref<20x20xf32, #tpu.memory_space<vmem>>, vector<20x1xf32>
    tpu.vector_store %arg3[%c0_65, %c19_66], %81 {strides = array<i32>} : memref<20x20xf32, #tpu.memory_space<vmem>>, vector<20x1xf32>,
    %c0_67 = arith.constant 0 : index
    %c0_68 = arith.constant 0 : index
    %83 = vector.load %arg3[%c0_67, %c0_68] : memref<20x20xf32, #tpu.memory_space<vmem>>, vector<20x20xf32>
    %84 = vector.extract_strided_slice %83 {offsets = [0, 0], sizes = [20, 16], strides = [1, 1]} : vector<20x20xf32> to vector<20x16xf32>
    %85 = vector.extract_strided_slice %83 {offsets = [0, 2], sizes = [20, 16], strides = [1, 1]} : vector<20x20xf32> to vector<20x16xf32>
    %cst_69 = arith.constant -2.000000e+00 : f32
    %86 = vector.broadcast %cst_69 : f32 to vector<20x16xf32>
    %87 = arith.mulf %85, %86 : vector<20x16xf32>
    %88 = arith.addf %84, %87 : vector<20x16xf32>
    %89 = vector.extract_strided_slice %83 {offsets = [0, 4], sizes = [20, 16], strides = [1, 1]} : vector<20x20xf32> to vector<20x16xf32>
    %90 = arith.addf %88, %89 : vector<20x16xf32>
    %91 = vector.extract_strided_slice %90 {offsets = [0, 0], sizes = [16, 16], strides = [1, 1]} : vector<20x16xf32> to vector<16x16xf32>
    %92 = vector.extract_strided_slice %90 {offsets = [1, 0], sizes = [16, 16], strides = [1, 1]} : vector<20x16xf32> to vector<16x16xf32>
    %cst_70 = arith.constant 4.000000e+00 : f32
    %93 = vector.broadcast %cst_70 : f32 to vector<16x16xf32>
    %94 = arith.mulf %92, %93 : vector<16x16xf32>
    %95 = arith.addf %91, %94 : vector<16x16xf32>
    %96 = vector.extract_strided_slice %90 {offsets = [2, 0], sizes = [16, 16], strides = [1, 1]} : vector<20x16xf32> to vector<16x16xf32>
    %cst_71 = arith.constant 6.000000e+00 : f32
    %97 = vector.broadcast %cst_71 : f32 to vector<16x16xf32>
    %98 = arith.mulf %96, %97 : vector<16x16xf32>
    %99 = arith.addf %95, %98 : vector<16x16xf32>
    %100 = vector.extract_strided_slice %90 {offsets = [3, 0], sizes = [16, 16], strides = [1, 1]} : vector<20x16xf32> to vector<16x16xf32>
    %cst_72 = arith.constant 4.000000e+00 : f32
    %101 = vector.broadcast %cst_72 : f32 to vector<16x16xf32>
    %102 = arith.mulf %100, %101 : vector<16x16xf32>
    %103 = arith.addf %99, %102 : vector<16x16xf32>
    %104 = vector.extract_strided_slice %90 {offsets = [4, 0], sizes = [16, 16], strides = [1, 1]} : vector<20x16xf32> to vector<16x16xf32>
    %105 = arith.addf %103, %104 : vector<16x16xf32>
    %106 = vector.extract_strided_slice %83 {offsets = [0, 0], sizes = [20, 16], strides = [1, 1]} : vector<20x20xf32> to vector<20x16xf32>
    %107 = vector.extract_strided_slice %83 {offsets = [0, 1], sizes = [20, 16], strides = [1, 1]} : vector<20x20xf32> to vector<20x16xf32>
    %cst_73 = arith.constant 4.000000e+00 : f32
    %108 = vector.broadcast %cst_73 : f32 to vector<20x16xf32>
    %109 = arith.mulf %107, %108 : vector<20x16xf32>
    %110 = arith.addf %106, %109 : vector<20x16xf32>
    %111 = vector.extract_strided_slice %83 {offsets = [0, 2], sizes = [20, 16], strides = [1, 1]} : vector<20x20xf32> to vector<20x16xf32>
    %cst_74 = arith.constant 6.000000e+00 : f32
    %112 = vector.broadcast %cst_74 : f32 to vector<20x16xf32>
    %113 = arith.mulf %111, %112 : vector<20x16xf32>
    %114 = arith.addf %110, %113 : vector<20x16xf32>
    %115 = vector.extract_strided_slice %83 {offsets = [0, 3], sizes = [20, 16], strides = [1, 1]} : vector<20x20xf32> to vector<20x16xf32>
    %cst_75 = arith.constant 4.000000e+00 : f32
    %116 = vector.broadcast %cst_75 : f32 to vector<20x16xf32>
    %117 = arith.mulf %115, %116 : vector<20x16xf32>
    %118 = arith.addf %114, %117 : vector<20x16xf32>
    %119 = vector.extract_strided_slice %83 {offsets = [0, 4], sizes = [20, 16], strides = [1, 1]} : vector<20x20xf32> to vector<20x16xf32>
    %120 = arith.addf %118, %119 : vector<20x16xf32>
    %121 = vector.extract_strided_slice %120 {offsets = [0, 0], sizes = [16, 16], strides = [1, 1]} : vector<20x16xf32> to vector<16x16xf32>
    %122 = vector.extract_strided_slice %120 {offsets = [2, 0], sizes = [16, 16], strides = [1, 1]} : vector<20x16xf32> to vector<16x16xf32>
    %cst_76 = arith.constant -2.000000e+00 : f32
    %123 = vector.broadcast %cst_76 : f32 to vector<16x16xf32>
    %124 = arith.mulf %122, %123 : vector<16x16xf32>
    %125 = arith.addf %121, %124 : vector<16x16xf32>
    %126 = vector.extract_strided_slice %120 {offsets = [4, 0], sizes = [16, 16], strides = [1, 1]} : vector<20x16xf32> to vector<16x16xf32>
    %127 = arith.addf %125, %126 : vector<16x16xf32>
    %128 = arith.addf %105, %127 : vector<16x16xf32>
    %c0_77 = arith.constant 0 : index
    %c0_78 = arith.constant 0 : index
    %c0_79 = arith.constant 0 : index
    %c0_80 = arith.constant 0 : index
    %129 = vector.load %arg1[%c0_77, %c0_78, %c0_79, %c0_80] : memref<1x12x16x16xf32, #tpu.memory_space<vmem>>, vector<1x1x16x16xf32>
    %130 = vector.shape_cast %129 : vector<1x1x16x16xf32> to vector<16x16xf32>
    %c0_81 = arith.constant 0 : index
    %c1_82 = arith.constant 1 : index
    %c0_83 = arith.constant 0 : index
    %c0_84 = arith.constant 0 : index
    %131 = vector.load %arg1[%c0_81, %c1_82, %c0_83, %c0_84] : memref<1x12x16x16xf32, #tpu.memory_space<vmem>>, vector<1x1x16x16xf32>
    %132 = vector.shape_cast %131 : vector<1x1x16x16xf32> to vector<16x16xf32>
    %c0_85 = arith.constant 0 : index
    %c2_86 = arith.constant 2 : index
    %c0_87 = arith.constant 0 : index
    %c0_88 = arith.constant 0 : index
    %133 = vector.load %arg1[%c0_85, %c2_86, %c0_87, %c0_88] : memref<1x12x16x16xf32, #tpu.memory_space<vmem>>, vector<1x1x16x16xf32>
    %134 = vector.shape_cast %133 : vector<1x1x16x16xf32> to vector<16x16xf32>
    %c0_89 = arith.constant 0 : index
    %c3_90 = arith.constant 3 : index
    %c0_91 = arith.constant 0 : index
    %c0_92 = arith.constant 0 : index
    %135 = vector.load %arg1[%c0_89, %c3_90, %c0_91, %c0_92] : memref<1x12x16x16xf32, #tpu.memory_space<vmem>>, vector<1x1x16x16xf32>
    %136 = vector.shape_cast %135 : vector<1x1x16x16xf32> to vector<16x16xf32>
    %c0_93 = arith.constant 0 : index
    %c4_94 = arith.constant 4 : index
    %c0_95 = arith.constant 0 : index
    %c0_96 = arith.constant 0 : index
    %137 = vector.load %arg1[%c0_93, %c4_94, %c0_95, %c0_96] : memref<1x12x16x16xf32, #tpu.memory_space<vmem>>, vector<1x1x16x16xf32>
    %138 = vector.shape_cast %137 : vector<1x1x16x16xf32> to vector<16x16xf32>
    %139 = arith.addf %136, %138 : vector<16x16xf32>
    %c0_97 = arith.constant 0 : index
    %c5 = arith.constant 5 : index
    %c0_98 = arith.constant 0 : index
    %c0_99 = arith.constant 0 : index
    %140 = vector.load %arg1[%c0_97, %c5, %c0_98, %c0_99] : memref<1x12x16x16xf32, #tpu.memory_space<vmem>>, vector<1x1x16x16xf32>
    %141 = vector.shape_cast %140 : vector<1x1x16x16xf32> to vector<16x16xf32>
    %142 = arith.addf %139, %141 : vector<16x16xf32>
    %cst_100 = arith.constant 0.333333343 : f32
    %143 = vector.broadcast %cst_100 : f32 to vector<16x16xf32>
    %144 = arith.mulf %142, %143 : vector<16x16xf32>
    %c2_101 = arith.constant 2 : index
    %c2_102 = arith.constant 2 : index
    %145 = vector.load %arg3[%c2_101, %c2_102] : memref<20x20xf32, #tpu.memory_space<vmem>>, vector<16x16xf32>
    tpu.vector_store %arg3[%c2_101, %c2_102], %144 {strides = array<i32>} : memref<20x20xf32, #tpu.memory_space<vmem>>, vector<16x16xf32>,
    %146 = vector.extract_strided_slice %144 {offsets = [2, 0], sizes = [1, 16], strides = [1, 1]} : vector<16x16xf32> to vector<1x16xf32>
    %c0_103 = arith.constant 0 : index
    %c2_104 = arith.constant 2 : index
    %147 = vector.load %arg3[%c0_103, %c2_104] : memref<20x20xf32, #tpu.memory_space<vmem>>, vector<1x16xf32>
    tpu.vector_store %arg3[%c0_103, %c2_104], %146 {strides = array<i32>} : memref<20x20xf32, #tpu.memory_space<vmem>>, vector<1x16xf32>,
    %148 = vector.extract_strided_slice %144 {offsets = [1, 0], sizes = [1, 16], strides = [1, 1]} : vector<16x16xf32> to vector<1x16xf32>
    %c1_105 = arith.constant 1 : index
    %c2_106 = arith.constant 2 : index
    %149 = vector.load %arg3[%c1_105, %c2_106] : memref<20x20xf32, #tpu.memory_space<vmem>>, vector<1x16xf32>
    tpu.vector_store %arg3[%c1_105, %c2_106], %148 {strides = array<i32>} : memref<20x20xf32, #tpu.memory_space<vmem>>, vector<1x16xf32>,
    %150 = vector.extract_strided_slice %144 {offsets = [14, 0], sizes = [1, 16], strides = [1, 1]} : vector<16x16xf32> to vector<1x16xf32>
    %c18_107 = arith.constant 18 : index
    %c2_108 = arith.constant 2 : index
    %151 = vector.load %arg3[%c18_107, %c2_108] : memref<20x20xf32, #tpu.memory_space<vmem>>, vector<1x16xf32>
    tpu.vector_store %arg3[%c18_107, %c2_108], %150 {strides = array<i32>} : memref<20x20xf32, #tpu.memory_space<vmem>>, vector<1x16xf32>,
    %152 = vector.extract_strided_slice %144 {offsets = [13, 0], sizes = [1, 16], strides = [1, 1]} : vector<16x16xf32> to vector<1x16xf32>
    %c19_109 = arith.constant 19 : index
    %c2_110 = arith.constant 2 : index
    %153 = vector.load %arg3[%c19_109, %c2_110] : memref<20x20xf32, #tpu.memory_space<vmem>>, vector<1x16xf32>
    tpu.vector_store %arg3[%c19_109, %c2_110], %152 {strides = array<i32>} : memref<20x20xf32, #tpu.memory_space<vmem>>, vector<1x16xf32>,
    %c0_111 = arith.constant 0 : index
    %c4_112 = arith.constant 4 : index
    %154 = vector.load %arg3[%c0_111, %c4_112] : memref<20x20xf32, #tpu.memory_space<vmem>>, vector<20x1xf32>
    %c0_113 = arith.constant 0 : index
    %c0_114 = arith.constant 0 : index
    %155 = vector.load %arg3[%c0_113, %c0_114] : memref<20x20xf32, #tpu.memory_space<vmem>>, vector<20x1xf32>
    tpu.vector_store %arg3[%c0_113, %c0_114], %154 {strides = array<i32>} : memref<20x20xf32, #tpu.memory_space<vmem>>, vector<20x1xf32>,
    %c0_115 = arith.constant 0 : index
    %c3_116 = arith.constant 3 : index
    %156 = vector.load %arg3[%c0_115, %c3_116] : memref<20x20xf32, #tpu.memory_space<vmem>>, vector<20x1xf32>
    %c0_117 = arith.constant 0 : index
    %c1_118 = arith.constant 1 : index
    %157 = vector.load %arg3[%c0_117, %c1_118] : memref<20x20xf32, #tpu.memory_space<vmem>>, vector<20x1xf32>
    tpu.vector_store %arg3[%c0_117, %c1_118], %156 {strides = array<i32>} : memref<20x20xf32, #tpu.memory_space<vmem>>, vector<20x1xf32>,
    %c0_119 = arith.constant 0 : index
    %c16_120 = arith.constant 16 : index
    %158 = vector.load %arg3[%c0_119, %c16_120] : memref<20x20xf32, #tpu.memory_space<vmem>>, vector<20x1xf32>
    %c0_121 = arith.constant 0 : index
    %c18_122 = arith.constant 18 : index
    %159 = vector.load %arg3[%c0_121, %c18_122] : memref<20x20xf32, #tpu.memory_space<vmem>>, vector<20x1xf32>
    tpu.vector_store %arg3[%c0_121, %c18_122], %158 {strides = array<i32>} : memref<20x20xf32, #tpu.memory_space<vmem>>, vector<20x1xf32>,
    %c0_123 = arith.constant 0 : index
    %c15_124 = arith.constant 15 : index
    %160 = vector.load %arg3[%c0_123, %c15_124] : memref<20x20xf32, #tpu.memory_space<vmem>>, vector<20x1xf32>
    %c0_125 = arith.constant 0 : index
    %c19_126 = arith.constant 19 : index
    %161 = vector.load %arg3[%c0_125, %c19_126] : memref<20x20xf32, #tpu.memory_space<vmem>>, vector<20x1xf32>
    tpu.vector_store %arg3[%c0_125, %c19_126], %160 {strides = array<i32>} : memref<20x20xf32, #tpu.memory_space<vmem>>, vector<20x1xf32>,
    %c0_127 = arith.constant 0 : index
    %c0_128 = arith.constant 0 : index
    %162 = vector.load %arg3[%c0_127, %c0_128] : memref<20x20xf32, #tpu.memory_space<vmem>>, vector<20x20xf32>
    %163 = vector.extract_strided_slice %162 {offsets = [0, 0], sizes = [20, 16], strides = [1, 1]} : vector<20x20xf32> to vector<20x16xf32>
    %cst_129 = arith.constant 6.250000e-02 : f32
    %164 = vector.broadcast %cst_129 : f32 to vector<20x16xf32>
    %165 = arith.mulf %163, %164 : vector<20x16xf32>
    %166 = vector.extract_strided_slice %162 {offsets = [0, 1], sizes = [20, 16], strides = [1, 1]} : vector<20x20xf32> to vector<20x16xf32>
    %cst_130 = arith.constant 2.500000e-01 : f32
    %167 = vector.broadcast %cst_130 : f32 to vector<20x16xf32>
    %168 = arith.mulf %166, %167 : vector<20x16xf32>
    %169 = arith.addf %165, %168 : vector<20x16xf32>
    %170 = vector.extract_strided_slice %162 {offsets = [0, 2], sizes = [20, 16], strides = [1, 1]} : vector<20x20xf32> to vector<20x16xf32>
    %cst_131 = arith.constant 3.750000e-01 : f32
    %171 = vector.broadcast %cst_131 : f32 to vector<20x16xf32>
    %172 = arith.mulf %170, %171 : vector<20x16xf32>
    %173 = arith.addf %169, %172 : vector<20x16xf32>
    %174 = vector.extract_strided_slice %162 {offsets = [0, 3], sizes = [20, 16], strides = [1, 1]} : vector<20x20xf32> to vector<20x16xf32>
    %cst_132 = arith.constant 2.500000e-01 : f32
    %175 = vector.broadcast %cst_132 : f32 to vector<20x16xf32>
    %176 = arith.mulf %174, %175 : vector<20x16xf32>
    %177 = arith.addf %173, %176 : vector<20x16xf32>
    %178 = vector.extract_strided_slice %162 {offsets = [0, 4], sizes = [20, 16], strides = [1, 1]} : vector<20x20xf32> to vector<20x16xf32>
    %cst_133 = arith.constant 6.250000e-02 : f32
    %179 = vector.broadcast %cst_133 : f32 to vector<20x16xf32>
    %180 = arith.mulf %178, %179 : vector<20x16xf32>
    %181 = arith.addf %177, %180 : vector<20x16xf32>
    %182 = vector.extract_strided_slice %181 {offsets = [0, 0], sizes = [16, 16], strides = [1, 1]} : vector<20x16xf32> to vector<16x16xf32>
    %cst_134 = arith.constant 6.250000e-02 : f32
    %183 = vector.broadcast %cst_134 : f32 to vector<16x16xf32>
    %184 = arith.mulf %182, %183 : vector<16x16xf32>
    %185 = vector.extract_strided_slice %181 {offsets = [1, 0], sizes = [16, 16], strides = [1, 1]} : vector<20x16xf32> to vector<16x16xf32>
    %cst_135 = arith.constant 2.500000e-01 : f32
    %186 = vector.broadcast %cst_135 : f32 to vector<16x16xf32>
    %187 = arith.mulf %185, %186 : vector<16x16xf32>
    %188 = arith.addf %184, %187 : vector<16x16xf32>
    %189 = vector.extract_strided_slice %181 {offsets = [2, 0], sizes = [16, 16], strides = [1, 1]} : vector<20x16xf32> to vector<16x16xf32>
    %cst_136 = arith.constant 3.750000e-01 : f32
    %190 = vector.broadcast %cst_136 : f32 to vector<16x16xf32>
    %191 = arith.mulf %189, %190 : vector<16x16xf32>
    %192 = arith.addf %188, %191 : vector<16x16xf32>
    %193 = vector.extract_strided_slice %181 {offsets = [3, 0], sizes = [16, 16], strides = [1, 1]} : vector<20x16xf32> to vector<16x16xf32>
    %cst_137 = arith.constant 2.500000e-01 : f32
    %194 = vector.broadcast %cst_137 : f32 to vector<16x16xf32>
    %195 = arith.mulf %193, %194 : vector<16x16xf32>
    %196 = arith.addf %192, %195 : vector<16x16xf32>
    %197 = vector.extract_strided_slice %181 {offsets = [4, 0], sizes = [16, 16], strides = [1, 1]} : vector<20x16xf32> to vector<16x16xf32>
    %cst_138 = arith.constant 6.250000e-02 : f32
    %198 = vector.broadcast %cst_138 : f32 to vector<16x16xf32>
    %199 = arith.mulf %197, %198 : vector<16x16xf32>
    %200 = arith.addf %196, %199 : vector<16x16xf32>
    %c2_139 = arith.constant 2 : index
    %c2_140 = arith.constant 2 : index
    %201 = vector.load %arg3[%c2_139, %c2_140] : memref<20x20xf32, #tpu.memory_space<vmem>>, vector<16x16xf32>
    tpu.vector_store %arg3[%c2_139, %c2_140], %200 {strides = array<i32>} : memref<20x20xf32, #tpu.memory_space<vmem>>, vector<16x16xf32>,
    %202 = vector.extract_strided_slice %200 {offsets = [2, 0], sizes = [1, 16], strides = [1, 1]} : vector<16x16xf32> to vector<1x16xf32>
    %c0_141 = arith.constant 0 : index
    %c2_142 = arith.constant 2 : index
    %203 = vector.load %arg3[%c0_141, %c2_142] : memref<20x20xf32, #tpu.memory_space<vmem>>, vector<1x16xf32>
    tpu.vector_store %arg3[%c0_141, %c2_142], %202 {strides = array<i32>} : memref<20x20xf32, #tpu.memory_space<vmem>>, vector<1x16xf32>,
    %204 = vector.extract_strided_slice %200 {offsets = [1, 0], sizes = [1, 16], strides = [1, 1]} : vector<16x16xf32> to vector<1x16xf32>
    %c1_143 = arith.constant 1 : index
    %c2_144 = arith.constant 2 : index
    %205 = vector.load %arg3[%c1_143, %c2_144] : memref<20x20xf32, #tpu.memory_space<vmem>>, vector<1x16xf32>
    tpu.vector_store %arg3[%c1_143, %c2_144], %204 {strides = array<i32>} : memref<20x20xf32, #tpu.memory_space<vmem>>, vector<1x16xf32>,
    %206 = vector.extract_strided_slice %200 {offsets = [14, 0], sizes = [1, 16], strides = [1, 1]} : vector<16x16xf32> to vector<1x16xf32>
    %c18_145 = arith.constant 18 : index
    %c2_146 = arith.constant 2 : index
    %207 = vector.load %arg3[%c18_145, %c2_146] : memref<20x20xf32, #tpu.memory_space<vmem>>, vector<1x16xf32>
    tpu.vector_store %arg3[%c18_145, %c2_146], %206 {strides = array<i32>} : memref<20x20xf32, #tpu.memory_space<vmem>>, vector<1x16xf32>,
    %208 = vector.extract_strided_slice %200 {offsets = [13, 0], sizes = [1, 16], strides = [1, 1]} : vector<16x16xf32> to vector<1x16xf32>
    %c19_147 = arith.constant 19 : index
    %c2_148 = arith.constant 2 : index
    %209 = vector.load %arg3[%c19_147, %c2_148] : memref<20x20xf32, #tpu.memory_space<vmem>>, vector<1x16xf32>
    tpu.vector_store %arg3[%c19_147, %c2_148], %208 {strides = array<i32>} : memref<20x20xf32, #tpu.memory_space<vmem>>, vector<1x16xf32>,
    %c0_149 = arith.constant 0 : index
    %c4_150 = arith.constant 4 : index
    %210 = vector.load %arg3[%c0_149, %c4_150] : memref<20x20xf32, #tpu.memory_space<vmem>>, vector<20x1xf32>
    %c0_151 = arith.constant 0 : index
    %c0_152 = arith.constant 0 : index
    %211 = vector.load %arg3[%c0_151, %c0_152] : memref<20x20xf32, #tpu.memory_space<vmem>>, vector<20x1xf32>
    tpu.vector_store %arg3[%c0_151, %c0_152], %210 {strides = array<i32>} : memref<20x20xf32, #tpu.memory_space<vmem>>, vector<20x1xf32>,
    %c0_153 = arith.constant 0 : index
    %c3_154 = arith.constant 3 : index
    %212 = vector.load %arg3[%c0_153, %c3_154] : memref<20x20xf32, #tpu.memory_space<vmem>>, vector<20x1xf32>
    %c0_155 = arith.constant 0 : index
    %c1_156 = arith.constant 1 : index
    %213 = vector.load %arg3[%c0_155, %c1_156] : memref<20x20xf32, #tpu.memory_space<vmem>>, vector<20x1xf32>
    tpu.vector_store %arg3[%c0_155, %c1_156], %212 {strides = array<i32>} : memref<20x20xf32, #tpu.memory_space<vmem>>, vector<20x1xf32>,
    %c0_157 = arith.constant 0 : index
    %c16_158 = arith.constant 16 : index
    %214 = vector.load %arg3[%c0_157, %c16_158] : memref<20x20xf32, #tpu.memory_space<vmem>>, vector<20x1xf32>
    %c0_159 = arith.constant 0 : index
    %c18_160 = arith.constant 18 : index
    %215 = vector.load %arg3[%c0_159, %c18_160] : memref<20x20xf32, #tpu.memory_space<vmem>>, vector<20x1xf32>
    tpu.vector_store %arg3[%c0_159, %c18_160], %214 {strides = array<i32>} : memref<20x20xf32, #tpu.memory_space<vmem>>, vector<20x1xf32>,
    %c0_161 = arith.constant 0 : index
    %c15_162 = arith.constant 15 : index
    %216 = vector.load %arg3[%c0_161, %c15_162] : memref<20x20xf32, #tpu.memory_space<vmem>>, vector<20x1xf32>
    %c0_163 = arith.constant 0 : index
    %c19_164 = arith.constant 19 : index
    %217 = vector.load %arg3[%c0_163, %c19_164] : memref<20x20xf32, #tpu.memory_space<vmem>>, vector<20x1xf32>
    tpu.vector_store %arg3[%c0_163, %c19_164], %216 {strides = array<i32>} : memref<20x20xf32, #tpu.memory_space<vmem>>, vector<20x1xf32>,
    %c0_165 = arith.constant 0 : index
    %c0_166 = arith.constant 0 : index
    %218 = vector.load %arg3[%c0_165, %c0_166] : memref<20x20xf32, #tpu.memory_space<vmem>>, vector<20x20xf32>
    %219 = vector.extract_strided_slice %218 {offsets = [0, 0], sizes = [20, 16], strides = [1, 1]} : vector<20x20xf32> to vector<20x16xf32>
    %220 = vector.extract_strided_slice %218 {offsets = [0, 2], sizes = [20, 16], strides = [1, 1]} : vector<20x20xf32> to vector<20x16xf32>
    %cst_167 = arith.constant -2.000000e+00 : f32
    %221 = vector.broadcast %cst_167 : f32 to vector<20x16xf32>
    %222 = arith.mulf %220, %221 : vector<20x16xf32>
    %223 = arith.addf %219, %222 : vector<20x16xf32>
    %224 = vector.extract_strided_slice %218 {offsets = [0, 4], sizes = [20, 16], strides = [1, 1]} : vector<20x20xf32> to vector<20x16xf32>
    %225 = arith.addf %223, %224 : vector<20x16xf32>
    %226 = vector.extract_strided_slice %225 {offsets = [0, 0], sizes = [16, 16], strides = [1, 1]} : vector<20x16xf32> to vector<16x16xf32>
    %227 = vector.extract_strided_slice %225 {offsets = [1, 0], sizes = [16, 16], strides = [1, 1]} : vector<20x16xf32> to vector<16x16xf32>
    %cst_168 = arith.constant 4.000000e+00 : f32
    %228 = vector.broadcast %cst_168 : f32 to vector<16x16xf32>
    %229 = arith.mulf %227, %228 : vector<16x16xf32>
    %230 = arith.addf %226, %229 : vector<16x16xf32>
    %231 = vector.extract_strided_slice %225 {offsets = [2, 0], sizes = [16, 16], strides = [1, 1]} : vector<20x16xf32> to vector<16x16xf32>
    %cst_169 = arith.constant 6.000000e+00 : f32
    %232 = vector.broadcast %cst_169 : f32 to vector<16x16xf32>
    %233 = arith.mulf %231, %232 : vector<16x16xf32>
    %234 = arith.addf %230, %233 : vector<16x16xf32>
    %235 = vector.extract_strided_slice %225 {offsets = [3, 0], sizes = [16, 16], strides = [1, 1]} : vector<20x16xf32> to vector<16x16xf32>
    %cst_170 = arith.constant 4.000000e+00 : f32
    %236 = vector.broadcast %cst_170 : f32 to vector<16x16xf32>
    %237 = arith.mulf %235, %236 : vector<16x16xf32>
    %238 = arith.addf %234, %237 : vector<16x16xf32>
    %239 = vector.extract_strided_slice %225 {offsets = [4, 0], sizes = [16, 16], strides = [1, 1]} : vector<20x16xf32> to vector<16x16xf32>
    %240 = arith.addf %238, %239 : vector<16x16xf32>
    %241 = vector.extract_strided_slice %218 {offsets = [0, 0], sizes = [20, 16], strides = [1, 1]} : vector<20x20xf32> to vector<20x16xf32>
    %242 = vector.extract_strided_slice %218 {offsets = [0, 1], sizes = [20, 16], strides = [1, 1]} : vector<20x20xf32> to vector<20x16xf32>
    %cst_171 = arith.constant 4.000000e+00 : f32
    %243 = vector.broadcast %cst_171 : f32 to vector<20x16xf32>
    %244 = arith.mulf %242, %243 : vector<20x16xf32>
    %245 = arith.addf %241, %244 : vector<20x16xf32>
    %246 = vector.extract_strided_slice %218 {offsets = [0, 2], sizes = [20, 16], strides = [1, 1]} : vector<20x20xf32> to vector<20x16xf32>
    %cst_172 = arith.constant 6.000000e+00 : f32
    %247 = vector.broadcast %cst_172 : f32 to vector<20x16xf32>
    %248 = arith.mulf %246, %247 : vector<20x16xf32>
    %249 = arith.addf %245, %248 : vector<20x16xf32>
    %250 = vector.extract_strided_slice %218 {offsets = [0, 3], sizes = [20, 16], strides = [1, 1]} : vector<20x20xf32> to vector<20x16xf32>
    %cst_173 = arith.constant 4.000000e+00 : f32
    %251 = vector.broadcast %cst_173 : f32 to vector<20x16xf32>
    %252 = arith.mulf %250, %251 : vector<20x16xf32>
    %253 = arith.addf %249, %252 : vector<20x16xf32>
    %254 = vector.extract_strided_slice %218 {offsets = [0, 4], sizes = [20, 16], strides = [1, 1]} : vector<20x20xf32> to vector<20x16xf32>
    %255 = arith.addf %253, %254 : vector<20x16xf32>
    %256 = vector.extract_strided_slice %255 {offsets = [0, 0], sizes = [16, 16], strides = [1, 1]} : vector<20x16xf32> to vector<16x16xf32>
    %257 = vector.extract_strided_slice %255 {offsets = [2, 0], sizes = [16, 16], strides = [1, 1]} : vector<20x16xf32> to vector<16x16xf32>
    %cst_174 = arith.constant -2.000000e+00 : f32
    %258 = vector.broadcast %cst_174 : f32 to vector<16x16xf32>
    %259 = arith.mulf %257, %258 : vector<16x16xf32>
    %260 = arith.addf %256, %259 : vector<16x16xf32>
    %261 = vector.extract_strided_slice %255 {offsets = [4, 0], sizes = [16, 16], strides = [1, 1]} : vector<20x16xf32> to vector<16x16xf32>
    %262 = arith.addf %260, %261 : vector<16x16xf32>
    %263 = arith.addf %240, %262 : vector<16x16xf32>
    %264 = arith.cmpf ogt, %263, %128 : vector<16x16xf32>
    %265 = arith.select %264, %263, %128 : vector<16x16xi1>, vector<16x16xf32>
    %c0_175 = arith.constant 0 : index
    %c3_176 = arith.constant 3 : index
    %c0_177 = arith.constant 0 : index
    %c0_178 = arith.constant 0 : index
    %266 = vector.load %arg1[%c0_175, %c3_176, %c0_177, %c0_178] : memref<1x12x16x16xf32, #tpu.memory_space<vmem>>, vector<1x1x16x16xf32>
    %267 = vector.shape_cast %266 : vector<1x1x16x16xf32> to vector<16x16xf32>
    %268 = arith.select %264, %267, %130 : vector<16x16xi1>, vector<16x16xf32>
    %c0_179 = arith.constant 0 : index
    %c4_180 = arith.constant 4 : index
    %c0_181 = arith.constant 0 : index
    %c0_182 = arith.constant 0 : index
    %269 = vector.load %arg1[%c0_179, %c4_180, %c0_181, %c0_182] : memref<1x12x16x16xf32, #tpu.memory_space<vmem>>, vector<1x1x16x16xf32>
    %270 = vector.shape_cast %269 : vector<1x1x16x16xf32> to vector<16x16xf32>
    %271 = arith.select %264, %270, %132 : vector<16x16xi1>, vector<16x16xf32>
    %c0_183 = arith.constant 0 : index
    %c5_184 = arith.constant 5 : index
    %c0_185 = arith.constant 0 : index
    %c0_186 = arith.constant 0 : index
    %272 = vector.load %arg1[%c0_183, %c5_184, %c0_185, %c0_186] : memref<1x12x16x16xf32, #tpu.memory_space<vmem>>, vector<1x1x16x16xf32>
    %273 = vector.shape_cast %272 : vector<1x1x16x16xf32> to vector<16x16xf32>
    %274 = arith.select %264, %273, %134 : vector<16x16xi1>, vector<16x16xf32>
    %c0_187 = arith.constant 0 : index
    %c6 = arith.constant 6 : index
    %c0_188 = arith.constant 0 : index
    %c0_189 = arith.constant 0 : index
    %275 = vector.load %arg1[%c0_187, %c6, %c0_188, %c0_189] : memref<1x12x16x16xf32, #tpu.memory_space<vmem>>, vector<1x1x16x16xf32>
    %276 = vector.shape_cast %275 : vector<1x1x16x16xf32> to vector<16x16xf32>
    %c0_190 = arith.constant 0 : index
    %c7 = arith.constant 7 : index
    %c0_191 = arith.constant 0 : index
    %c0_192 = arith.constant 0 : index
    %277 = vector.load %arg1[%c0_190, %c7, %c0_191, %c0_192] : memref<1x12x16x16xf32, #tpu.memory_space<vmem>>, vector<1x1x16x16xf32>
    %278 = vector.shape_cast %277 : vector<1x1x16x16xf32> to vector<16x16xf32>
    %279 = arith.addf %276, %278 : vector<16x16xf32>
    %c0_193 = arith.constant 0 : index
    %c8 = arith.constant 8 : index
    %c0_194 = arith.constant 0 : index
    %c0_195 = arith.constant 0 : index
    %280 = vector.load %arg1[%c0_193, %c8, %c0_194, %c0_195] : memref<1x12x16x16xf32, #tpu.memory_space<vmem>>, vector<1x1x16x16xf32>
    %281 = vector.shape_cast %280 : vector<1x1x16x16xf32> to vector<16x16xf32>
    %282 = arith.addf %279, %281 : vector<16x16xf32>
    %cst_196 = arith.constant 0.333333343 : f32
    %283 = vector.broadcast %cst_196 : f32 to vector<16x16xf32>
    %284 = arith.mulf %282, %283 : vector<16x16xf32>
    %c2_197 = arith.constant 2 : index
    %c2_198 = arith.constant 2 : index
    %285 = vector.load %arg3[%c2_197, %c2_198] : memref<20x20xf32, #tpu.memory_space<vmem>>, vector<16x16xf32>
    tpu.vector_store %arg3[%c2_197, %c2_198], %284 {strides = array<i32>} : memref<20x20xf32, #tpu.memory_space<vmem>>, vector<16x16xf32>,
    %286 = vector.extract_strided_slice %284 {offsets = [2, 0], sizes = [1, 16], strides = [1, 1]} : vector<16x16xf32> to vector<1x16xf32>
    %c0_199 = arith.constant 0 : index
    %c2_200 = arith.constant 2 : index
    %287 = vector.load %arg3[%c0_199, %c2_200] : memref<20x20xf32, #tpu.memory_space<vmem>>, vector<1x16xf32>
    tpu.vector_store %arg3[%c0_199, %c2_200], %286 {strides = array<i32>} : memref<20x20xf32, #tpu.memory_space<vmem>>, vector<1x16xf32>,
    %288 = vector.extract_strided_slice %284 {offsets = [1, 0], sizes = [1, 16], strides = [1, 1]} : vector<16x16xf32> to vector<1x16xf32>
    %c1_201 = arith.constant 1 : index
    %c2_202 = arith.constant 2 : index
    %289 = vector.load %arg3[%c1_201, %c2_202] : memref<20x20xf32, #tpu.memory_space<vmem>>, vector<1x16xf32>
    tpu.vector_store %arg3[%c1_201, %c2_202], %288 {strides = array<i32>} : memref<20x20xf32, #tpu.memory_space<vmem>>, vector<1x16xf32>,
    %290 = vector.extract_strided_slice %284 {offsets = [14, 0], sizes = [1, 16], strides = [1, 1]} : vector<16x16xf32> to vector<1x16xf32>
    %c18_203 = arith.constant 18 : index
    %c2_204 = arith.constant 2 : index
    %291 = vector.load %arg3[%c18_203, %c2_204] : memref<20x20xf32, #tpu.memory_space<vmem>>, vector<1x16xf32>
    tpu.vector_store %arg3[%c18_203, %c2_204], %290 {strides = array<i32>} : memref<20x20xf32, #tpu.memory_space<vmem>>, vector<1x16xf32>,
    %292 = vector.extract_strided_slice %284 {offsets = [13, 0], sizes = [1, 16], strides = [1, 1]} : vector<16x16xf32> to vector<1x16xf32>
    %c19_205 = arith.constant 19 : index
    %c2_206 = arith.constant 2 : index
    %293 = vector.load %arg3[%c19_205, %c2_206] : memref<20x20xf32, #tpu.memory_space<vmem>>, vector<1x16xf32>
    tpu.vector_store %arg3[%c19_205, %c2_206], %292 {strides = array<i32>} : memref<20x20xf32, #tpu.memory_space<vmem>>, vector<1x16xf32>,
    %c0_207 = arith.constant 0 : index
    %c4_208 = arith.constant 4 : index
    %294 = vector.load %arg3[%c0_207, %c4_208] : memref<20x20xf32, #tpu.memory_space<vmem>>, vector<20x1xf32>
    %c0_209 = arith.constant 0 : index
    %c0_210 = arith.constant 0 : index
    %295 = vector.load %arg3[%c0_209, %c0_210] : memref<20x20xf32, #tpu.memory_space<vmem>>, vector<20x1xf32>
    tpu.vector_store %arg3[%c0_209, %c0_210], %294 {strides = array<i32>} : memref<20x20xf32, #tpu.memory_space<vmem>>, vector<20x1xf32>,
    %c0_211 = arith.constant 0 : index
    %c3_212 = arith.constant 3 : index
    %296 = vector.load %arg3[%c0_211, %c3_212] : memref<20x20xf32, #tpu.memory_space<vmem>>, vector<20x1xf32>
    %c0_213 = arith.constant 0 : index
    %c1_214 = arith.constant 1 : index
    %297 = vector.load %arg3[%c0_213, %c1_214] : memref<20x20xf32, #tpu.memory_space<vmem>>, vector<20x1xf32>
    tpu.vector_store %arg3[%c0_213, %c1_214], %296 {strides = array<i32>} : memref<20x20xf32, #tpu.memory_space<vmem>>, vector<20x1xf32>,
    %c0_215 = arith.constant 0 : index
    %c16_216 = arith.constant 16 : index
    %298 = vector.load %arg3[%c0_215, %c16_216] : memref<20x20xf32, #tpu.memory_space<vmem>>, vector<20x1xf32>
    %c0_217 = arith.constant 0 : index
    %c18_218 = arith.constant 18 : index
    %299 = vector.load %arg3[%c0_217, %c18_218] : memref<20x20xf32, #tpu.memory_space<vmem>>, vector<20x1xf32>
    tpu.vector_store %arg3[%c0_217, %c18_218], %298 {strides = array<i32>} : memref<20x20xf32, #tpu.memory_space<vmem>>, vector<20x1xf32>,
    %c0_219 = arith.constant 0 : index
    %c15_220 = arith.constant 15 : index
    %300 = vector.load %arg3[%c0_219, %c15_220] : memref<20x20xf32, #tpu.memory_space<vmem>>, vector<20x1xf32>
    %c0_221 = arith.constant 0 : index
    %c19_222 = arith.constant 19 : index
    %301 = vector.load %arg3[%c0_221, %c19_222] : memref<20x20xf32, #tpu.memory_space<vmem>>, vector<20x1xf32>
    tpu.vector_store %arg3[%c0_221, %c19_222], %300 {strides = array<i32>} : memref<20x20xf32, #tpu.memory_space<vmem>>, vector<20x1xf32>,
    %c0_223 = arith.constant 0 : index
    %c0_224 = arith.constant 0 : index
    %302 = vector.load %arg3[%c0_223, %c0_224] : memref<20x20xf32, #tpu.memory_space<vmem>>, vector<20x20xf32>
    %303 = vector.extract_strided_slice %302 {offsets = [0, 0], sizes = [20, 16], strides = [1, 1]} : vector<20x20xf32> to vector<20x16xf32>
    %cst_225 = arith.constant 6.250000e-02 : f32
    %304 = vector.broadcast %cst_225 : f32 to vector<20x16xf32>
    %305 = arith.mulf %303, %304 : vector<20x16xf32>
    %306 = vector.extract_strided_slice %302 {offsets = [0, 1], sizes = [20, 16], strides = [1, 1]} : vector<20x20xf32> to vector<20x16xf32>
    %cst_226 = arith.constant 2.500000e-01 : f32
    %307 = vector.broadcast %cst_226 : f32 to vector<20x16xf32>
    %308 = arith.mulf %306, %307 : vector<20x16xf32>
    %309 = arith.addf %305, %308 : vector<20x16xf32>
    %310 = vector.extract_strided_slice %302 {offsets = [0, 2], sizes = [20, 16], strides = [1, 1]} : vector<20x20xf32> to vector<20x16xf32>
    %cst_227 = arith.constant 3.750000e-01 : f32
    %311 = vector.broadcast %cst_227 : f32 to vector<20x16xf32>
    %312 = arith.mulf %310, %311 : vector<20x16xf32>
    %313 = arith.addf %309, %312 : vector<20x16xf32>
    %314 = vector.extract_strided_slice %302 {offsets = [0, 3], sizes = [20, 16], strides = [1, 1]} : vector<20x20xf32> to vector<20x16xf32>
    %cst_228 = arith.constant 2.500000e-01 : f32
    %315 = vector.broadcast %cst_228 : f32 to vector<20x16xf32>
    %316 = arith.mulf %314, %315 : vector<20x16xf32>
    %317 = arith.addf %313, %316 : vector<20x16xf32>
    %318 = vector.extract_strided_slice %302 {offsets = [0, 4], sizes = [20, 16], strides = [1, 1]} : vector<20x20xf32> to vector<20x16xf32>
    %cst_229 = arith.constant 6.250000e-02 : f32
    %319 = vector.broadcast %cst_229 : f32 to vector<20x16xf32>
    %320 = arith.mulf %318, %319 : vector<20x16xf32>
    %321 = arith.addf %317, %320 : vector<20x16xf32>
    %322 = vector.extract_strided_slice %321 {offsets = [0, 0], sizes = [16, 16], strides = [1, 1]} : vector<20x16xf32> to vector<16x16xf32>
    %cst_230 = arith.constant 6.250000e-02 : f32
    %323 = vector.broadcast %cst_230 : f32 to vector<16x16xf32>
    %324 = arith.mulf %322, %323 : vector<16x16xf32>
    %325 = vector.extract_strided_slice %321 {offsets = [1, 0], sizes = [16, 16], strides = [1, 1]} : vector<20x16xf32> to vector<16x16xf32>
    %cst_231 = arith.constant 2.500000e-01 : f32
    %326 = vector.broadcast %cst_231 : f32 to vector<16x16xf32>
    %327 = arith.mulf %325, %326 : vector<16x16xf32>
    %328 = arith.addf %324, %327 : vector<16x16xf32>
    %329 = vector.extract_strided_slice %321 {offsets = [2, 0], sizes = [16, 16], strides = [1, 1]} : vector<20x16xf32> to vector<16x16xf32>
    %cst_232 = arith.constant 3.750000e-01 : f32
    %330 = vector.broadcast %cst_232 : f32 to vector<16x16xf32>
    %331 = arith.mulf %329, %330 : vector<16x16xf32>
    %332 = arith.addf %328, %331 : vector<16x16xf32>
    %333 = vector.extract_strided_slice %321 {offsets = [3, 0], sizes = [16, 16], strides = [1, 1]} : vector<20x16xf32> to vector<16x16xf32>
    %cst_233 = arith.constant 2.500000e-01 : f32
    %334 = vector.broadcast %cst_233 : f32 to vector<16x16xf32>
    %335 = arith.mulf %333, %334 : vector<16x16xf32>
    %336 = arith.addf %332, %335 : vector<16x16xf32>
    %337 = vector.extract_strided_slice %321 {offsets = [4, 0], sizes = [16, 16], strides = [1, 1]} : vector<20x16xf32> to vector<16x16xf32>
    %cst_234 = arith.constant 6.250000e-02 : f32
    %338 = vector.broadcast %cst_234 : f32 to vector<16x16xf32>
    %339 = arith.mulf %337, %338 : vector<16x16xf32>
    %340 = arith.addf %336, %339 : vector<16x16xf32>
    %c2_235 = arith.constant 2 : index
    %c2_236 = arith.constant 2 : index
    %341 = vector.load %arg3[%c2_235, %c2_236] : memref<20x20xf32, #tpu.memory_space<vmem>>, vector<16x16xf32>
    tpu.vector_store %arg3[%c2_235, %c2_236], %340 {strides = array<i32>} : memref<20x20xf32, #tpu.memory_space<vmem>>, vector<16x16xf32>,
    %342 = vector.extract_strided_slice %340 {offsets = [2, 0], sizes = [1, 16], strides = [1, 1]} : vector<16x16xf32> to vector<1x16xf32>
    %c0_237 = arith.constant 0 : index
    %c2_238 = arith.constant 2 : index
    %343 = vector.load %arg3[%c0_237, %c2_238] : memref<20x20xf32, #tpu.memory_space<vmem>>, vector<1x16xf32>
    tpu.vector_store %arg3[%c0_237, %c2_238], %342 {strides = array<i32>} : memref<20x20xf32, #tpu.memory_space<vmem>>, vector<1x16xf32>,
    %344 = vector.extract_strided_slice %340 {offsets = [1, 0], sizes = [1, 16], strides = [1, 1]} : vector<16x16xf32> to vector<1x16xf32>
    %c1_239 = arith.constant 1 : index
    %c2_240 = arith.constant 2 : index
    %345 = vector.load %arg3[%c1_239, %c2_240] : memref<20x20xf32, #tpu.memory_space<vmem>>, vector<1x16xf32>
    tpu.vector_store %arg3[%c1_239, %c2_240], %344 {strides = array<i32>} : memref<20x20xf32, #tpu.memory_space<vmem>>, vector<1x16xf32>,
    %346 = vector.extract_strided_slice %340 {offsets = [14, 0], sizes = [1, 16], strides = [1, 1]} : vector<16x16xf32> to vector<1x16xf32>
    %c18_241 = arith.constant 18 : index
    %c2_242 = arith.constant 2 : index
    %347 = vector.load %arg3[%c18_241, %c2_242] : memref<20x20xf32, #tpu.memory_space<vmem>>, vector<1x16xf32>
    tpu.vector_store %arg3[%c18_241, %c2_242], %346 {strides = array<i32>} : memref<20x20xf32, #tpu.memory_space<vmem>>, vector<1x16xf32>,
    %348 = vector.extract_strided_slice %340 {offsets = [13, 0], sizes = [1, 16], strides = [1, 1]} : vector<16x16xf32> to vector<1x16xf32>
    %c19_243 = arith.constant 19 : index
    %c2_244 = arith.constant 2 : index
    %349 = vector.load %arg3[%c19_243, %c2_244] : memref<20x20xf32, #tpu.memory_space<vmem>>, vector<1x16xf32>
    tpu.vector_store %arg3[%c19_243, %c2_244], %348 {strides = array<i32>} : memref<20x20xf32, #tpu.memory_space<vmem>>, vector<1x16xf32>,
    %c0_245 = arith.constant 0 : index
    %c4_246 = arith.constant 4 : index
    %350 = vector.load %arg3[%c0_245, %c4_246] : memref<20x20xf32, #tpu.memory_space<vmem>>, vector<20x1xf32>
    %c0_247 = arith.constant 0 : index
    %c0_248 = arith.constant 0 : index
    %351 = vector.load %arg3[%c0_247, %c0_248] : memref<20x20xf32, #tpu.memory_space<vmem>>, vector<20x1xf32>
    tpu.vector_store %arg3[%c0_247, %c0_248], %350 {strides = array<i32>} : memref<20x20xf32, #tpu.memory_space<vmem>>, vector<20x1xf32>,
    %c0_249 = arith.constant 0 : index
    %c3_250 = arith.constant 3 : index
    %352 = vector.load %arg3[%c0_249, %c3_250] : memref<20x20xf32, #tpu.memory_space<vmem>>, vector<20x1xf32>
    %c0_251 = arith.constant 0 : index
    %c1_252 = arith.constant 1 : index
    %353 = vector.load %arg3[%c0_251, %c1_252] : memref<20x20xf32, #tpu.memory_space<vmem>>, vector<20x1xf32>
    tpu.vector_store %arg3[%c0_251, %c1_252], %352 {strides = array<i32>} : memref<20x20xf32, #tpu.memory_space<vmem>>, vector<20x1xf32>,
    %c0_253 = arith.constant 0 : index
    %c16_254 = arith.constant 16 : index
    %354 = vector.load %arg3[%c0_253, %c16_254] : memref<20x20xf32, #tpu.memory_space<vmem>>, vector<20x1xf32>
    %c0_255 = arith.constant 0 : index
    %c18_256 = arith.constant 18 : index
    %355 = vector.load %arg3[%c0_255, %c18_256] : memref<20x20xf32, #tpu.memory_space<vmem>>, vector<20x1xf32>
    tpu.vector_store %arg3[%c0_255, %c18_256], %354 {strides = array<i32>} : memref<20x20xf32, #tpu.memory_space<vmem>>, vector<20x1xf32>,
    %c0_257 = arith.constant 0 : index
    %c15_258 = arith.constant 15 : index
    %356 = vector.load %arg3[%c0_257, %c15_258] : memref<20x20xf32, #tpu.memory_space<vmem>>, vector<20x1xf32>
    %c0_259 = arith.constant 0 : index
    %c19_260 = arith.constant 19 : index
    %357 = vector.load %arg3[%c0_259, %c19_260] : memref<20x20xf32, #tpu.memory_space<vmem>>, vector<20x1xf32>
    tpu.vector_store %arg3[%c0_259, %c19_260], %356 {strides = array<i32>} : memref<20x20xf32, #tpu.memory_space<vmem>>, vector<20x1xf32>,
    %c0_261 = arith.constant 0 : index
    %c0_262 = arith.constant 0 : index
    %358 = vector.load %arg3[%c0_261, %c0_262] : memref<20x20xf32, #tpu.memory_space<vmem>>, vector<20x20xf32>
    %359 = vector.extract_strided_slice %358 {offsets = [0, 0], sizes = [20, 16], strides = [1, 1]} : vector<20x20xf32> to vector<20x16xf32>
    %360 = vector.extract_strided_slice %358 {offsets = [0, 2], sizes = [20, 16], strides = [1, 1]} : vector<20x20xf32> to vector<20x16xf32>
    %cst_263 = arith.constant -2.000000e+00 : f32
    %361 = vector.broadcast %cst_263 : f32 to vector<20x16xf32>
    %362 = arith.mulf %360, %361 : vector<20x16xf32>
    %363 = arith.addf %359, %362 : vector<20x16xf32>
    %364 = vector.extract_strided_slice %358 {offsets = [0, 4], sizes = [20, 16], strides = [1, 1]} : vector<20x20xf32> to vector<20x16xf32>
    %365 = arith.addf %363, %364 : vector<20x16xf32>
    %366 = vector.extract_strided_slice %365 {offsets = [0, 0], sizes = [16, 16], strides = [1, 1]} : vector<20x16xf32> to vector<16x16xf32>
    %367 = vector.extract_strided_slice %365 {offsets = [1, 0], sizes = [16, 16], strides = [1, 1]} : vector<20x16xf32> to vector<16x16xf32>
    %cst_264 = arith.constant 4.000000e+00 : f32
    %368 = vector.broadcast %cst_264 : f32 to vector<16x16xf32>
    %369 = arith.mulf %367, %368 : vector<16x16xf32>
    %370 = arith.addf %366, %369 : vector<16x16xf32>
    %371 = vector.extract_strided_slice %365 {offsets = [2, 0], sizes = [16, 16], strides = [1, 1]} : vector<20x16xf32> to vector<16x16xf32>
    %cst_265 = arith.constant 6.000000e+00 : f32
    %372 = vector.broadcast %cst_265 : f32 to vector<16x16xf32>
    %373 = arith.mulf %371, %372 : vector<16x16xf32>
    %374 = arith.addf %370, %373 : vector<16x16xf32>
    %375 = vector.extract_strided_slice %365 {offsets = [3, 0], sizes = [16, 16], strides = [1, 1]} : vector<20x16xf32> to vector<16x16xf32>
    %cst_266 = arith.constant 4.000000e+00 : f32
    %376 = vector.broadcast %cst_266 : f32 to vector<16x16xf32>
    %377 = arith.mulf %375, %376 : vector<16x16xf32>
    %378 = arith.addf %374, %377 : vector<16x16xf32>
    %379 = vector.extract_strided_slice %365 {offsets = [4, 0], sizes = [16, 16], strides = [1, 1]} : vector<20x16xf32> to vector<16x16xf32>
    %380 = arith.addf %378, %379 : vector<16x16xf32>
    %381 = vector.extract_strided_slice %358 {offsets = [0, 0], sizes = [20, 16], strides = [1, 1]} : vector<20x20xf32> to vector<20x16xf32>
    %382 = vector.extract_strided_slice %358 {offsets = [0, 1], sizes = [20, 16], strides = [1, 1]} : vector<20x20xf32> to vector<20x16xf32>
    %cst_267 = arith.constant 4.000000e+00 : f32
    %383 = vector.broadcast %cst_267 : f32 to vector<20x16xf32>
    %384 = arith.mulf %382, %383 : vector<20x16xf32>
    %385 = arith.addf %381, %384 : vector<20x16xf32>
    %386 = vector.extract_strided_slice %358 {offsets = [0, 2], sizes = [20, 16], strides = [1, 1]} : vector<20x20xf32> to vector<20x16xf32>
    %cst_268 = arith.constant 6.000000e+00 : f32
    %387 = vector.broadcast %cst_268 : f32 to vector<20x16xf32>
    %388 = arith.mulf %386, %387 : vector<20x16xf32>
    %389 = arith.addf %385, %388 : vector<20x16xf32>
    %390 = vector.extract_strided_slice %358 {offsets = [0, 3], sizes = [20, 16], strides = [1, 1]} : vector<20x20xf32> to vector<20x16xf32>
    %cst_269 = arith.constant 4.000000e+00 : f32
    %391 = vector.broadcast %cst_269 : f32 to vector<20x16xf32>
    %392 = arith.mulf %390, %391 : vector<20x16xf32>
    %393 = arith.addf %389, %392 : vector<20x16xf32>
    %394 = vector.extract_strided_slice %358 {offsets = [0, 4], sizes = [20, 16], strides = [1, 1]} : vector<20x20xf32> to vector<20x16xf32>
    %395 = arith.addf %393, %394 : vector<20x16xf32>
    %396 = vector.extract_strided_slice %395 {offsets = [0, 0], sizes = [16, 16], strides = [1, 1]} : vector<20x16xf32> to vector<16x16xf32>
    %397 = vector.extract_strided_slice %395 {offsets = [2, 0], sizes = [16, 16], strides = [1, 1]} : vector<20x16xf32> to vector<16x16xf32>
    %cst_270 = arith.constant -2.000000e+00 : f32
    %398 = vector.broadcast %cst_270 : f32 to vector<16x16xf32>
    %399 = arith.mulf %397, %398 : vector<16x16xf32>
    %400 = arith.addf %396, %399 : vector<16x16xf32>
    %401 = vector.extract_strided_slice %395 {offsets = [4, 0], sizes = [16, 16], strides = [1, 1]} : vector<20x16xf32> to vector<16x16xf32>
    %402 = arith.addf %400, %401 : vector<16x16xf32>
    %403 = arith.addf %380, %402 : vector<16x16xf32>
    %404 = arith.cmpf ogt, %403, %265 : vector<16x16xf32>
    %405 = arith.select %404, %403, %265 : vector<16x16xi1>, vector<16x16xf32>
    %c0_271 = arith.constant 0 : index
    %c6_272 = arith.constant 6 : index
    %c0_273 = arith.constant 0 : index
    %c0_274 = arith.constant 0 : index
    %406 = vector.load %arg1[%c0_271, %c6_272, %c0_273, %c0_274] : memref<1x12x16x16xf32, #tpu.memory_space<vmem>>, vector<1x1x16x16xf32>
    %407 = vector.shape_cast %406 : vector<1x1x16x16xf32> to vector<16x16xf32>
    %408 = arith.select %404, %407, %268 : vector<16x16xi1>, vector<16x16xf32>
    %c0_275 = arith.constant 0 : index
    %c7_276 = arith.constant 7 : index
    %c0_277 = arith.constant 0 : index
    %c0_278 = arith.constant 0 : index
    %409 = vector.load %arg1[%c0_275, %c7_276, %c0_277, %c0_278] : memref<1x12x16x16xf32, #tpu.memory_space<vmem>>, vector<1x1x16x16xf32>
    %410 = vector.shape_cast %409 : vector<1x1x16x16xf32> to vector<16x16xf32>
    %411 = arith.select %404, %410, %271 : vector<16x16xi1>, vector<16x16xf32>
    %c0_279 = arith.constant 0 : index
    %c8_280 = arith.constant 8 : index
    %c0_281 = arith.constant 0 : index
    %c0_282 = arith.constant 0 : index
    %412 = vector.load %arg1[%c0_279, %c8_280, %c0_281, %c0_282] : memref<1x12x16x16xf32, #tpu.memory_space<vmem>>, vector<1x1x16x16xf32>
    %413 = vector.shape_cast %412 : vector<1x1x16x16xf32> to vector<16x16xf32>
    %414 = arith.select %404, %413, %274 : vector<16x16xi1>, vector<16x16xf32>
    %c0_283 = arith.constant 0 : index
    %c9 = arith.constant 9 : index
    %c0_284 = arith.constant 0 : index
    %c0_285 = arith.constant 0 : index
    %415 = vector.load %arg1[%c0_283, %c9, %c0_284, %c0_285] : memref<1x12x16x16xf32, #tpu.memory_space<vmem>>, vector<1x1x16x16xf32>
    %416 = vector.shape_cast %415 : vector<1x1x16x16xf32> to vector<16x16xf32>
    %c0_286 = arith.constant 0 : index
    %c10 = arith.constant 10 : index
    %c0_287 = arith.constant 0 : index
    %c0_288 = arith.constant 0 : index
    %417 = vector.load %arg1[%c0_286, %c10, %c0_287, %c0_288] : memref<1x12x16x16xf32, #tpu.memory_space<vmem>>, vector<1x1x16x16xf32>
    %418 = vector.shape_cast %417 : vector<1x1x16x16xf32> to vector<16x16xf32>
    %419 = arith.addf %416, %418 : vector<16x16xf32>
    %c0_289 = arith.constant 0 : index
    %c11 = arith.constant 11 : index
    %c0_290 = arith.constant 0 : index
    %c0_291 = arith.constant 0 : index
    %420 = vector.load %arg1[%c0_289, %c11, %c0_290, %c0_291] : memref<1x12x16x16xf32, #tpu.memory_space<vmem>>, vector<1x1x16x16xf32>
    %421 = vector.shape_cast %420 : vector<1x1x16x16xf32> to vector<16x16xf32>
    %422 = arith.addf %419, %421 : vector<16x16xf32>
    %cst_292 = arith.constant 0.333333343 : f32
    %423 = vector.broadcast %cst_292 : f32 to vector<16x16xf32>
    %424 = arith.mulf %422, %423 : vector<16x16xf32>
    %c2_293 = arith.constant 2 : index
    %c2_294 = arith.constant 2 : index
    %425 = vector.load %arg3[%c2_293, %c2_294] : memref<20x20xf32, #tpu.memory_space<vmem>>, vector<16x16xf32>
    tpu.vector_store %arg3[%c2_293, %c2_294], %424 {strides = array<i32>} : memref<20x20xf32, #tpu.memory_space<vmem>>, vector<16x16xf32>,
    %426 = vector.extract_strided_slice %424 {offsets = [2, 0], sizes = [1, 16], strides = [1, 1]} : vector<16x16xf32> to vector<1x16xf32>
    %c0_295 = arith.constant 0 : index
    %c2_296 = arith.constant 2 : index
    %427 = vector.load %arg3[%c0_295, %c2_296] : memref<20x20xf32, #tpu.memory_space<vmem>>, vector<1x16xf32>
    tpu.vector_store %arg3[%c0_295, %c2_296], %426 {strides = array<i32>} : memref<20x20xf32, #tpu.memory_space<vmem>>, vector<1x16xf32>,
    %428 = vector.extract_strided_slice %424 {offsets = [1, 0], sizes = [1, 16], strides = [1, 1]} : vector<16x16xf32> to vector<1x16xf32>
    %c1_297 = arith.constant 1 : index
    %c2_298 = arith.constant 2 : index
    %429 = vector.load %arg3[%c1_297, %c2_298] : memref<20x20xf32, #tpu.memory_space<vmem>>, vector<1x16xf32>
    tpu.vector_store %arg3[%c1_297, %c2_298], %428 {strides = array<i32>} : memref<20x20xf32, #tpu.memory_space<vmem>>, vector<1x16xf32>,
    %430 = vector.extract_strided_slice %424 {offsets = [14, 0], sizes = [1, 16], strides = [1, 1]} : vector<16x16xf32> to vector<1x16xf32>
    %c18_299 = arith.constant 18 : index
    %c2_300 = arith.constant 2 : index
    %431 = vector.load %arg3[%c18_299, %c2_300] : memref<20x20xf32, #tpu.memory_space<vmem>>, vector<1x16xf32>
    tpu.vector_store %arg3[%c18_299, %c2_300], %430 {strides = array<i32>} : memref<20x20xf32, #tpu.memory_space<vmem>>, vector<1x16xf32>,
    %432 = vector.extract_strided_slice %424 {offsets = [13, 0], sizes = [1, 16], strides = [1, 1]} : vector<16x16xf32> to vector<1x16xf32>
    %c19_301 = arith.constant 19 : index
    %c2_302 = arith.constant 2 : index
    %433 = vector.load %arg3[%c19_301, %c2_302] : memref<20x20xf32, #tpu.memory_space<vmem>>, vector<1x16xf32>
    tpu.vector_store %arg3[%c19_301, %c2_302], %432 {strides = array<i32>} : memref<20x20xf32, #tpu.memory_space<vmem>>, vector<1x16xf32>,
    %c0_303 = arith.constant 0 : index
    %c4_304 = arith.constant 4 : index
    %434 = vector.load %arg3[%c0_303, %c4_304] : memref<20x20xf32, #tpu.memory_space<vmem>>, vector<20x1xf32>
    %c0_305 = arith.constant 0 : index
    %c0_306 = arith.constant 0 : index
    %435 = vector.load %arg3[%c0_305, %c0_306] : memref<20x20xf32, #tpu.memory_space<vmem>>, vector<20x1xf32>
    tpu.vector_store %arg3[%c0_305, %c0_306], %434 {strides = array<i32>} : memref<20x20xf32, #tpu.memory_space<vmem>>, vector<20x1xf32>,
    %c0_307 = arith.constant 0 : index
    %c3_308 = arith.constant 3 : index
    %436 = vector.load %arg3[%c0_307, %c3_308] : memref<20x20xf32, #tpu.memory_space<vmem>>, vector<20x1xf32>
    %c0_309 = arith.constant 0 : index
    %c1_310 = arith.constant 1 : index
    %437 = vector.load %arg3[%c0_309, %c1_310] : memref<20x20xf32, #tpu.memory_space<vmem>>, vector<20x1xf32>
    tpu.vector_store %arg3[%c0_309, %c1_310], %436 {strides = array<i32>} : memref<20x20xf32, #tpu.memory_space<vmem>>, vector<20x1xf32>,
    %c0_311 = arith.constant 0 : index
    %c16_312 = arith.constant 16 : index
    %438 = vector.load %arg3[%c0_311, %c16_312] : memref<20x20xf32, #tpu.memory_space<vmem>>, vector<20x1xf32>
    %c0_313 = arith.constant 0 : index
    %c18_314 = arith.constant 18 : index
    %439 = vector.load %arg3[%c0_313, %c18_314] : memref<20x20xf32, #tpu.memory_space<vmem>>, vector<20x1xf32>
    tpu.vector_store %arg3[%c0_313, %c18_314], %438 {strides = array<i32>} : memref<20x20xf32, #tpu.memory_space<vmem>>, vector<20x1xf32>,
    %c0_315 = arith.constant 0 : index
    %c15_316 = arith.constant 15 : index
    %440 = vector.load %arg3[%c0_315, %c15_316] : memref<20x20xf32, #tpu.memory_space<vmem>>, vector<20x1xf32>
    %c0_317 = arith.constant 0 : index
    %c19_318 = arith.constant 19 : index
    %441 = vector.load %arg3[%c0_317, %c19_318] : memref<20x20xf32, #tpu.memory_space<vmem>>, vector<20x1xf32>
    tpu.vector_store %arg3[%c0_317, %c19_318], %440 {strides = array<i32>} : memref<20x20xf32, #tpu.memory_space<vmem>>, vector<20x1xf32>,
    %c0_319 = arith.constant 0 : index
    %c0_320 = arith.constant 0 : index
    %442 = vector.load %arg3[%c0_319, %c0_320] : memref<20x20xf32, #tpu.memory_space<vmem>>, vector<20x20xf32>
    %443 = vector.extract_strided_slice %442 {offsets = [0, 0], sizes = [20, 16], strides = [1, 1]} : vector<20x20xf32> to vector<20x16xf32>
    %cst_321 = arith.constant 6.250000e-02 : f32
    %444 = vector.broadcast %cst_321 : f32 to vector<20x16xf32>
    %445 = arith.mulf %443, %444 : vector<20x16xf32>
    %446 = vector.extract_strided_slice %442 {offsets = [0, 1], sizes = [20, 16], strides = [1, 1]} : vector<20x20xf32> to vector<20x16xf32>
    %cst_322 = arith.constant 2.500000e-01 : f32
    %447 = vector.broadcast %cst_322 : f32 to vector<20x16xf32>
    %448 = arith.mulf %446, %447 : vector<20x16xf32>
    %449 = arith.addf %445, %448 : vector<20x16xf32>
    %450 = vector.extract_strided_slice %442 {offsets = [0, 2], sizes = [20, 16], strides = [1, 1]} : vector<20x20xf32> to vector<20x16xf32>
    %cst_323 = arith.constant 3.750000e-01 : f32
    %451 = vector.broadcast %cst_323 : f32 to vector<20x16xf32>
    %452 = arith.mulf %450, %451 : vector<20x16xf32>
    %453 = arith.addf %449, %452 : vector<20x16xf32>
    %454 = vector.extract_strided_slice %442 {offsets = [0, 3], sizes = [20, 16], strides = [1, 1]} : vector<20x20xf32> to vector<20x16xf32>
    %cst_324 = arith.constant 2.500000e-01 : f32
    %455 = vector.broadcast %cst_324 : f32 to vector<20x16xf32>
    %456 = arith.mulf %454, %455 : vector<20x16xf32>
    %457 = arith.addf %453, %456 : vector<20x16xf32>
    %458 = vector.extract_strided_slice %442 {offsets = [0, 4], sizes = [20, 16], strides = [1, 1]} : vector<20x20xf32> to vector<20x16xf32>
    %cst_325 = arith.constant 6.250000e-02 : f32
    %459 = vector.broadcast %cst_325 : f32 to vector<20x16xf32>
    %460 = arith.mulf %458, %459 : vector<20x16xf32>
    %461 = arith.addf %457, %460 : vector<20x16xf32>
    %462 = vector.extract_strided_slice %461 {offsets = [0, 0], sizes = [16, 16], strides = [1, 1]} : vector<20x16xf32> to vector<16x16xf32>
    %cst_326 = arith.constant 6.250000e-02 : f32
    %463 = vector.broadcast %cst_326 : f32 to vector<16x16xf32>
    %464 = arith.mulf %462, %463 : vector<16x16xf32>
    %465 = vector.extract_strided_slice %461 {offsets = [1, 0], sizes = [16, 16], strides = [1, 1]} : vector<20x16xf32> to vector<16x16xf32>
    %cst_327 = arith.constant 2.500000e-01 : f32
    %466 = vector.broadcast %cst_327 : f32 to vector<16x16xf32>
    %467 = arith.mulf %465, %466 : vector<16x16xf32>
    %468 = arith.addf %464, %467 : vector<16x16xf32>
    %469 = vector.extract_strided_slice %461 {offsets = [2, 0], sizes = [16, 16], strides = [1, 1]} : vector<20x16xf32> to vector<16x16xf32>
    %cst_328 = arith.constant 3.750000e-01 : f32
    %470 = vector.broadcast %cst_328 : f32 to vector<16x16xf32>
    %471 = arith.mulf %469, %470 : vector<16x16xf32>
    %472 = arith.addf %468, %471 : vector<16x16xf32>
    %473 = vector.extract_strided_slice %461 {offsets = [3, 0], sizes = [16, 16], strides = [1, 1]} : vector<20x16xf32> to vector<16x16xf32>
    %cst_329 = arith.constant 2.500000e-01 : f32
    %474 = vector.broadcast %cst_329 : f32 to vector<16x16xf32>
    %475 = arith.mulf %473, %474 : vector<16x16xf32>
    %476 = arith.addf %472, %475 : vector<16x16xf32>
    %477 = vector.extract_strided_slice %461 {offsets = [4, 0], sizes = [16, 16], strides = [1, 1]} : vector<20x16xf32> to vector<16x16xf32>
    %cst_330 = arith.constant 6.250000e-02 : f32
    %478 = vector.broadcast %cst_330 : f32 to vector<16x16xf32>
    %479 = arith.mulf %477, %478 : vector<16x16xf32>
    %480 = arith.addf %476, %479 : vector<16x16xf32>
    %c2_331 = arith.constant 2 : index
    %c2_332 = arith.constant 2 : index
    %481 = vector.load %arg3[%c2_331, %c2_332] : memref<20x20xf32, #tpu.memory_space<vmem>>, vector<16x16xf32>
    tpu.vector_store %arg3[%c2_331, %c2_332], %480 {strides = array<i32>} : memref<20x20xf32, #tpu.memory_space<vmem>>, vector<16x16xf32>,
    %482 = vector.extract_strided_slice %480 {offsets = [2, 0], sizes = [1, 16], strides = [1, 1]} : vector<16x16xf32> to vector<1x16xf32>
    %c0_333 = arith.constant 0 : index
    %c2_334 = arith.constant 2 : index
    %483 = vector.load %arg3[%c0_333, %c2_334] : memref<20x20xf32, #tpu.memory_space<vmem>>, vector<1x16xf32>
    tpu.vector_store %arg3[%c0_333, %c2_334], %482 {strides = array<i32>} : memref<20x20xf32, #tpu.memory_space<vmem>>, vector<1x16xf32>,
    %484 = vector.extract_strided_slice %480 {offsets = [1, 0], sizes = [1, 16], strides = [1, 1]} : vector<16x16xf32> to vector<1x16xf32>
    %c1_335 = arith.constant 1 : index
    %c2_336 = arith.constant 2 : index
    %485 = vector.load %arg3[%c1_335, %c2_336] : memref<20x20xf32, #tpu.memory_space<vmem>>, vector<1x16xf32>
    tpu.vector_store %arg3[%c1_335, %c2_336], %484 {strides = array<i32>} : memref<20x20xf32, #tpu.memory_space<vmem>>, vector<1x16xf32>,
    %486 = vector.extract_strided_slice %480 {offsets = [14, 0], sizes = [1, 16], strides = [1, 1]} : vector<16x16xf32> to vector<1x16xf32>
    %c18_337 = arith.constant 18 : index
    %c2_338 = arith.constant 2 : index
    %487 = vector.load %arg3[%c18_337, %c2_338] : memref<20x20xf32, #tpu.memory_space<vmem>>, vector<1x16xf32>
    tpu.vector_store %arg3[%c18_337, %c2_338], %486 {strides = array<i32>} : memref<20x20xf32, #tpu.memory_space<vmem>>, vector<1x16xf32>,
    %488 = vector.extract_strided_slice %480 {offsets = [13, 0], sizes = [1, 16], strides = [1, 1]} : vector<16x16xf32> to vector<1x16xf32>
    %c19_339 = arith.constant 19 : index
    %c2_340 = arith.constant 2 : index
    %489 = vector.load %arg3[%c19_339, %c2_340] : memref<20x20xf32, #tpu.memory_space<vmem>>, vector<1x16xf32>
    tpu.vector_store %arg3[%c19_339, %c2_340], %488 {strides = array<i32>} : memref<20x20xf32, #tpu.memory_space<vmem>>, vector<1x16xf32>,
    %c0_341 = arith.constant 0 : index
    %c4_342 = arith.constant 4 : index
    %490 = vector.load %arg3[%c0_341, %c4_342] : memref<20x20xf32, #tpu.memory_space<vmem>>, vector<20x1xf32>
    %c0_343 = arith.constant 0 : index
    %c0_344 = arith.constant 0 : index
    %491 = vector.load %arg3[%c0_343, %c0_344] : memref<20x20xf32, #tpu.memory_space<vmem>>, vector<20x1xf32>
    tpu.vector_store %arg3[%c0_343, %c0_344], %490 {strides = array<i32>} : memref<20x20xf32, #tpu.memory_space<vmem>>, vector<20x1xf32>,
    %c0_345 = arith.constant 0 : index
    %c3_346 = arith.constant 3 : index
    %492 = vector.load %arg3[%c0_345, %c3_346] : memref<20x20xf32, #tpu.memory_space<vmem>>, vector<20x1xf32>
    %c0_347 = arith.constant 0 : index
    %c1_348 = arith.constant 1 : index
    %493 = vector.load %arg3[%c0_347, %c1_348] : memref<20x20xf32, #tpu.memory_space<vmem>>, vector<20x1xf32>
    tpu.vector_store %arg3[%c0_347, %c1_348], %492 {strides = array<i32>} : memref<20x20xf32, #tpu.memory_space<vmem>>, vector<20x1xf32>,
    %c0_349 = arith.constant 0 : index
    %c16_350 = arith.constant 16 : index
    %494 = vector.load %arg3[%c0_349, %c16_350] : memref<20x20xf32, #tpu.memory_space<vmem>>, vector<20x1xf32>
    %c0_351 = arith.constant 0 : index
    %c18_352 = arith.constant 18 : index
    %495 = vector.load %arg3[%c0_351, %c18_352] : memref<20x20xf32, #tpu.memory_space<vmem>>, vector<20x1xf32>
    tpu.vector_store %arg3[%c0_351, %c18_352], %494 {strides = array<i32>} : memref<20x20xf32, #tpu.memory_space<vmem>>, vector<20x1xf32>,
    %c0_353 = arith.constant 0 : index
    %c15_354 = arith.constant 15 : index
    %496 = vector.load %arg3[%c0_353, %c15_354] : memref<20x20xf32, #tpu.memory_space<vmem>>, vector<20x1xf32>
    %c0_355 = arith.constant 0 : index
    %c19_356 = arith.constant 19 : index
    %497 = vector.load %arg3[%c0_355, %c19_356] : memref<20x20xf32, #tpu.memory_space<vmem>>, vector<20x1xf32>
    tpu.vector_store %arg3[%c0_355, %c19_356], %496 {strides = array<i32>} : memref<20x20xf32, #tpu.memory_space<vmem>>, vector<20x1xf32>,
    %c0_357 = arith.constant 0 : index
    %c0_358 = arith.constant 0 : index
    %498 = vector.load %arg3[%c0_357, %c0_358] : memref<20x20xf32, #tpu.memory_space<vmem>>, vector<20x20xf32>
    %499 = vector.extract_strided_slice %498 {offsets = [0, 0], sizes = [20, 16], strides = [1, 1]} : vector<20x20xf32> to vector<20x16xf32>
    %500 = vector.extract_strided_slice %498 {offsets = [0, 2], sizes = [20, 16], strides = [1, 1]} : vector<20x20xf32> to vector<20x16xf32>
    %cst_359 = arith.constant -2.000000e+00 : f32
    %501 = vector.broadcast %cst_359 : f32 to vector<20x16xf32>
    %502 = arith.mulf %500, %501 : vector<20x16xf32>
    %503 = arith.addf %499, %502 : vector<20x16xf32>
    %504 = vector.extract_strided_slice %498 {offsets = [0, 4], sizes = [20, 16], strides = [1, 1]} : vector<20x20xf32> to vector<20x16xf32>
    %505 = arith.addf %503, %504 : vector<20x16xf32>
    %506 = vector.extract_strided_slice %505 {offsets = [0, 0], sizes = [16, 16], strides = [1, 1]} : vector<20x16xf32> to vector<16x16xf32>
    %507 = vector.extract_strided_slice %505 {offsets = [1, 0], sizes = [16, 16], strides = [1, 1]} : vector<20x16xf32> to vector<16x16xf32>
    %cst_360 = arith.constant 4.000000e+00 : f32
    %508 = vector.broadcast %cst_360 : f32 to vector<16x16xf32>
    %509 = arith.mulf %507, %508 : vector<16x16xf32>
    %510 = arith.addf %506, %509 : vector<16x16xf32>
    %511 = vector.extract_strided_slice %505 {offsets = [2, 0], sizes = [16, 16], strides = [1, 1]} : vector<20x16xf32> to vector<16x16xf32>
    %cst_361 = arith.constant 6.000000e+00 : f32
    %512 = vector.broadcast %cst_361 : f32 to vector<16x16xf32>
    %513 = arith.mulf %511, %512 : vector<16x16xf32>
    %514 = arith.addf %510, %513 : vector<16x16xf32>
    %515 = vector.extract_strided_slice %505 {offsets = [3, 0], sizes = [16, 16], strides = [1, 1]} : vector<20x16xf32> to vector<16x16xf32>
    %cst_362 = arith.constant 4.000000e+00 : f32
    %516 = vector.broadcast %cst_362 : f32 to vector<16x16xf32>
    %517 = arith.mulf %515, %516 : vector<16x16xf32>
    %518 = arith.addf %514, %517 : vector<16x16xf32>
    %519 = vector.extract_strided_slice %505 {offsets = [4, 0], sizes = [16, 16], strides = [1, 1]} : vector<20x16xf32> to vector<16x16xf32>
    %520 = arith.addf %518, %519 : vector<16x16xf32>
    %521 = vector.extract_strided_slice %498 {offsets = [0, 0], sizes = [20, 16], strides = [1, 1]} : vector<20x20xf32> to vector<20x16xf32>
    %522 = vector.extract_strided_slice %498 {offsets = [0, 1], sizes = [20, 16], strides = [1, 1]} : vector<20x20xf32> to vector<20x16xf32>
    %cst_363 = arith.constant 4.000000e+00 : f32
    %523 = vector.broadcast %cst_363 : f32 to vector<20x16xf32>
    %524 = arith.mulf %522, %523 : vector<20x16xf32>
    %525 = arith.addf %521, %524 : vector<20x16xf32>
    %526 = vector.extract_strided_slice %498 {offsets = [0, 2], sizes = [20, 16], strides = [1, 1]} : vector<20x20xf32> to vector<20x16xf32>
    %cst_364 = arith.constant 6.000000e+00 : f32
    %527 = vector.broadcast %cst_364 : f32 to vector<20x16xf32>
    %528 = arith.mulf %526, %527 : vector<20x16xf32>
    %529 = arith.addf %525, %528 : vector<20x16xf32>
    %530 = vector.extract_strided_slice %498 {offsets = [0, 3], sizes = [20, 16], strides = [1, 1]} : vector<20x20xf32> to vector<20x16xf32>
    %cst_365 = arith.constant 4.000000e+00 : f32
    %531 = vector.broadcast %cst_365 : f32 to vector<20x16xf32>
    %532 = arith.mulf %530, %531 : vector<20x16xf32>
    %533 = arith.addf %529, %532 : vector<20x16xf32>
    %534 = vector.extract_strided_slice %498 {offsets = [0, 4], sizes = [20, 16], strides = [1, 1]} : vector<20x20xf32> to vector<20x16xf32>
    %535 = arith.addf %533, %534 : vector<20x16xf32>
    %536 = vector.extract_strided_slice %535 {offsets = [0, 0], sizes = [16, 16], strides = [1, 1]} : vector<20x16xf32> to vector<16x16xf32>
    %537 = vector.extract_strided_slice %535 {offsets = [2, 0], sizes = [16, 16], strides = [1, 1]} : vector<20x16xf32> to vector<16x16xf32>
    %cst_366 = arith.constant -2.000000e+00 : f32
    %538 = vector.broadcast %cst_366 : f32 to vector<16x16xf32>
    %539 = arith.mulf %537, %538 : vector<16x16xf32>
    %540 = arith.addf %536, %539 : vector<16x16xf32>
    %541 = vector.extract_strided_slice %535 {offsets = [4, 0], sizes = [16, 16], strides = [1, 1]} : vector<20x16xf32> to vector<16x16xf32>
    %542 = arith.addf %540, %541 : vector<16x16xf32>
    %543 = arith.addf %520, %542 : vector<16x16xf32>
    %544 = arith.cmpf ogt, %543, %405 : vector<16x16xf32>
    %c0_367 = arith.constant 0 : index
    %c9_368 = arith.constant 9 : index
    %c0_369 = arith.constant 0 : index
    %c0_370 = arith.constant 0 : index
    %545 = vector.load %arg1[%c0_367, %c9_368, %c0_369, %c0_370] : memref<1x12x16x16xf32, #tpu.memory_space<vmem>>, vector<1x1x16x16xf32>
    %546 = vector.shape_cast %545 : vector<1x1x16x16xf32> to vector<16x16xf32>
    %547 = arith.select %544, %546, %408 : vector<16x16xi1>, vector<16x16xf32>
    %c0_371 = arith.constant 0 : index
    %c10_372 = arith.constant 10 : index
    %c0_373 = arith.constant 0 : index
    %c0_374 = arith.constant 0 : index
    %548 = vector.load %arg1[%c0_371, %c10_372, %c0_373, %c0_374] : memref<1x12x16x16xf32, #tpu.memory_space<vmem>>, vector<1x1x16x16xf32>
    %549 = vector.shape_cast %548 : vector<1x1x16x16xf32> to vector<16x16xf32>
    %550 = arith.select %544, %549, %411 : vector<16x16xi1>, vector<16x16xf32>
    %c0_375 = arith.constant 0 : index
    %c11_376 = arith.constant 11 : index
    %c0_377 = arith.constant 0 : index
    %c0_378 = arith.constant 0 : index
    %551 = vector.load %arg1[%c0_375, %c11_376, %c0_377, %c0_378] : memref<1x12x16x16xf32, #tpu.memory_space<vmem>>, vector<1x1x16x16xf32>
    %552 = vector.shape_cast %551 : vector<1x1x16x16xf32> to vector<16x16xf32>
    %553 = arith.select %544, %552, %414 : vector<16x16xi1>, vector<16x16xf32>
    %c0_379 = arith.constant 0 : index
    %c0_380 = arith.constant 0 : index
    %c0_381 = arith.constant 0 : index
    %c0_382 = arith.constant 0 : index
    %554 = vector.load %arg2[%c0_379, %c0_380, %c0_381, %c0_382] : memref<1x3x16x16xf32, #tpu.memory_space<vmem>>, vector<1x1x16x16xf32>
    %555 = vector.shape_cast %554 : vector<1x1x16x16xf32> to vector<16x16xf32>
    %556 = vector.shape_cast %547 : vector<16x16xf32> to vector<1x1x16x16xf32>
    tpu.vector_store %arg2[%c0_379, %c0_380, %c0_381, %c0_382], %556 {strides = array<i32>} : memref<1x3x16x16xf32, #tpu.memory_space<vmem>>, vector<1x1x16x16xf32>,
    %c0_383 = arith.constant 0 : index
    %c1_384 = arith.constant 1 : index
    %c0_385 = arith.constant 0 : index
    %c0_386 = arith.constant 0 : index
    %557 = vector.load %arg2[%c0_383, %c1_384, %c0_385, %c0_386] : memref<1x3x16x16xf32, #tpu.memory_space<vmem>>, vector<1x1x16x16xf32>
    %558 = vector.shape_cast %557 : vector<1x1x16x16xf32> to vector<16x16xf32>
    %559 = vector.shape_cast %550 : vector<16x16xf32> to vector<1x1x16x16xf32>
    tpu.vector_store %arg2[%c0_383, %c1_384, %c0_385, %c0_386], %559 {strides = array<i32>} : memref<1x3x16x16xf32, #tpu.memory_space<vmem>>, vector<1x1x16x16xf32>,
    %c0_387 = arith.constant 0 : index
    %c2_388 = arith.constant 2 : index
    %c0_389 = arith.constant 0 : index
    %c0_390 = arith.constant 0 : index
    %560 = vector.load %arg2[%c0_387, %c2_388, %c0_389, %c0_390] : memref<1x3x16x16xf32, #tpu.memory_space<vmem>>, vector<1x1x16x16xf32>
    %561 = vector.shape_cast %560 : vector<1x1x16x16xf32> to vector<16x16xf32>
    %562 = vector.shape_cast %553 : vector<16x16xf32> to vector<1x1x16x16xf32>
    tpu.vector_store %arg2[%c0_387, %c2_388, %c0_389, %c0_390], %562 {strides = array<i32>} : memref<1x3x16x16xf32, #tpu.memory_space<vmem>>, vector<1x1x16x16xf32>,
    return
  }
  func.func @transform_0(%arg0: i32) -> (i32, i32, i32, i32) {
    %c0_i32 = arith.constant 0 : i32
    %c0_i32_0 = arith.constant 0 : i32
    %c0_i32_1 = arith.constant 0 : i32
    %c0_i32_2 = arith.constant 0 : i32
    return %arg0, %c0_i32, %c0_i32_0, %c0_i32_1 : i32, i32, i32, i32
  }
  func.func @transform_1(%arg0: i32) -> (i32, i32, i32, i32) {
    %c0_i32 = arith.constant 0 : i32
    %c0_i32_0 = arith.constant 0 : i32
    %c0_i32_1 = arith.constant 0 : i32
    %c0_i32_2 = arith.constant 0 : i32
    return %arg0, %c0_i32, %c0_i32_0, %c0_i32_1 : i32, i32, i32, i32
  }
}

</mosaic_0001>

<bundles_post_ra>
// kernel: tpu_custom_call.1
= control target key start
LH: loop header
LB: loop body
LE: loop exit
PB: predicated region body
PF: predicated region fallthrough
CT: control target
= control target key end

     0   :  { %6 = vsyncpa [#allocation4], 0  ;;  %s3409_s0 = inlined_call_operand.hbm [shape: f32[2,12,16,16], index: 0, kind: input, shape index: {}]   ;;  %s3410_s1 = inlined_call_operand.hbm [shape: f32[2,3,16,16], index: 1, kind: output, shape index: {}]  }
   0x1   :  { %8 = vsyncpa [#allocation4 + $0x1], 0 }
   0x2   :  { %9 = vsyncpa [#allocation5], 0 }
   0x3   :  { %11 = vsyncpa [#allocation5 + $0x1], 0  ;;  %s2444_s6 = smov 0   ;;  %s2446_s7 = smov 0  }
   0x4   :  { %s2448_s8 = smov 0   ;;  %s2450_s9 = smov 0  }
   0x5 LB: > { %s2465_s10 = sadd.s32 4294967295, %s2420_s9   ;;  %s2207_s11 = sadd.s32 4294967294, %s2420_s9   ;;  %s2420_s9 = sphi %s2450_s9, %s3467_s9   ;;  %s2416_s8 = sphi %s2448_s8, %s3466_s8   ;;  %s2412_s7 = sphi %s2446_s7, %s3465_s7   ;;  %s2408_s6 = sphi %s2444_s6, %s3464_s6  }
   0x6   : > { %s2469_s12 = sadd.s32 1, %s2420_s9   ;;  %s24_s13 = sadd.s32 1, %s2416_s8 }
   0x7   : > { %s21_s14 = ssub.s32 %s2420_s9, %s2469_s12  ;;  %p31_p0 = scmp.ne.s32.totalorder %s2416_s8, %s2412_s7 }
   0x8   : > { %p22_p1 = scmp.eq.s32.totalorder %s21_s14, 0  ;;  %p32_p2 = scmp.eq.s32.totalorder %s2420_s9, 0 }
   0x9   : > { %p37_p3 = scmp.ne.s32.totalorder %s2412_s7, %s2408_s6  ;;  %p38_p4 = scmp.eq.s32.totalorder %s2465_s10, 0 }
   0xa   : > { %s2481_s15 = scalar_select %p22_p1, %s2416_s8, %s24_s13  }
   0xb   : > { %p33_p5 = por %p32_p2, %p31_p0  ;;  %p2483_p6 = por %p38_p4, %p37_p3 }
   0xc   : > { %p61_p7 = scmp.eq.s32.totalorder %s2465_s10, 1  ;;  %p67_p8 = scmp.eq.s32.totalorder %s2207_s11, 1 }
   0xd   : > { %p2280_p10 = scmp.lt.s32.totalorder %s2420_s9, 2  ;;  %s87_s19 = sand.u32 1, %s2416_s8  }
   0xe   : > { %p2490_p11 = por %p61_p7, %p31_p0  ;;  %p2494_p12 = por %p67_p8, %p37_p3 }
   0xf   : > { %s2264_s20 = smul.u32 3072, %s2420_s9  ;;  %p2505_p13 = pnand %p2280_p10, %p33_p5 }
  0x10   : > { %s3417_s17 = scalar_select %p2490_p11, 1, 0 }
  0x11   : > { %s3418_s18 = scalar_select %p2494_p12, 1, 0 }
  0x12   : > { %s2263_s21 = smul.u32 192, %s87_s19  ;;  %s2503_s24 = scalar_lea.hbm %s3409_s0, %s2264_s20 }
  0x13   : > { %s2511_s28 = scalar_lea.sflag [#allocation4], %s87_s19  ;;  %s2324_s29 = scalar_lea.hbm %s2503_s24, 3072 }
  0x14   : > { %s91_s26 = scalar_lea.vmem [#allocation3], %s2263_s21  ;;  %p2325_p0 = scmp.ne.s32.totalorder %s2503_s24, %s2324_s29 }
  0x15   : > { %s98_s27 = sshll.u32 %s91_s26, 4  ;;  %p2326_p1 = pneg %p2505_p13  ;;  %s2509_s27 = int_to_ptr.vmem [resolvable:$true] %s98_s27 }
  0x16   : > { %s2329_s3 = scalar_lea.hbm %s3409_s0, 6144  ;;  %p2330_p4 = scmp.lt.u32.totalorder %s2503_s24, %s3409_s0 }
  0x17   : > { %p2327_p2 = pnand %p2326_p1, %p2325_p0  ;;  %p2331_p5 = scmp.lt.u32.totalorder %s2329_s3, %s2324_s29 }
  0x18   : > { %p2333_p8 = scmp.lt.u32.totalorder %s2324_s29, %s2503_s24 }
  0x19   : > { %p2328_p3 = pneg %p2327_p2  ;;  %p2332_p7 = por %p2331_p5, %p2330_p4 }
  0x1b   : > { %p2334_p10 = por %p2333_p8, %p2332_p7 }
  0x1d   : > { %p2335_p9 = pnand %p2334_p10, %p2328_p3 }
  0x1f   : > { %2338 = shalt.err (!%p2335_p9)
}
  0x20   : > { %s2339_s11 = scalar_lea.vmem %s2509_s27, 3072  ;;  %s2422_s13 = smov [#allocation3]  }
  0x21   : > { %p2340_p0 = scmp.ne.s32.totalorder %s2509_s27, %s2339_s11  ;;  %s2344_s14 = sshll.u32 %s2422_s13, 4  ;;  %s2345_s14 = int_to_ptr.vmem [resolvable:$false] %s2344_s14 }
  0x22   : > { %s2346_s19 = scalar_lea.vmem %s2345_s14, 6144  ;;  %p2347_p11 = scmp.lt.s32.totalorder %s2509_s27, %s2345_s14 }
  0x23   : > { %p2342_p2 = pnand %p2340_p0, %p2326_p1  ;;  %p2348_p4 = scmp.lt.s32.totalorder %s2346_s19, %s2339_s11 }
  0x25   : > { %p2343_p12 = pneg %p2342_p2  ;;  %p2349_p5 = por %p2348_p4, %p2347_p11 }
  0x27   : > { %p2350_p7 = pnand %p2349_p5, %p2343_p12 }
  0x29   : > { %2353 = shalt.err (!%p2350_p7)
}
  0x2a   : > { %s2423_s20 = smov 128   ;;  %s2424_s21 = smov 8  }
  0x2b   : > { %2275 = dma.hbm_to_vmem [thread:$0]  (!%p2505_p13), %s2503_s24, 3072, %s2509_s27, %s2511_s28, %s2423_s20, %s2423_s20, %s2424_s21  }
  0x2c   : > { %p2211_p9 = scmp.ge.s32.totalorder %s2420_s9, 1  ;;  %p106_p1 = scmp.lt.s32.totalorder %s2420_s9, 3 }
  0x2e   : > { %p107_p3 = pnand %p2211_p9, %p106_p1 }
  0x2f   : > { %s2542_s22 = sand.u32 (!%p107_p3), 1, %s2412_s7  }
  0x30   : > { %110 = sbr.rel (%p107_p3) target bundleno = 5441 (0x1541), region = 24  ;;  %s113_s26 = scalar_lea.sflag (!%p107_p3), [#allocation4], %s2542_s22 }
  0x31   : > { %s2265_s23 = smul.u32 (!%p107_p3), 192, %s2542_s22 }
  0x33   : > { %s2546_s29 = scalar_lea.vmem (!%p107_p3), [#allocation3], %s2265_s23 }
  0x37   : > { %2399 = dma.done.wait (%p2483_p6), %s113_s26, 3072  }
  0x38   : > { %2401 = vsyncadd (%p2483_p6), %s113_s26, 4294964224  ;;  %v135_v0 = vld [vmem:[%s2546_s29] sm:$0xff]  ;;  %v2212_v1 = vld [vmem:[%s2546_s29 + $0x10] sm:$0xff]  ;;  %s2425_s24 = smov 2   ;;  %vm157_vm0 = vcmask 146448   ;;  %vm160_vm1 = vcmask 141330  }
  0x39   : > { %v2214_v2 = vld [vmem:[%s2546_s29 + $0x20] sm:$0xff]  ;;  %v140_v3 = vadd.f32 %v2212_v1, %v135_v0  ;;  %v136_v4 = vld [vmem:[%s2546_s29 + $0x8] sm:$0xff]  ;;  %v2213_v5 = vld [vmem:[%s2546_s29 + $0x18] sm:$0xff]  ;;  %vm162_vm2 = vcmask 140305   ;;  %vm164_vm3 = vcmask 145430   ;;  %vm166_vm4 = vcmask 144405  }
  0x3a   : > { %v2215_v6 = vld [vmem:[%s2546_s29 + $0x28] sm:$0xff]  ;;  %v141_v7 = vadd.f32 %v2213_v5, %v136_v4  ;;  %s2426_s16 = smov 124   ;;  %vm183_vm5 = vcmask 7168   ;;  %vm186_vm6 = vcmask 3072   ;;  %s2427_s25 = smov 126   ;;  %vm203_vm7 = vcmask 15368  }
  0x3b   : > { %v145_v8 = vadd.f32 %v2214_v2, %v140_v3  ;;  %vm206_vm8 = vcmask 11272   ;;  %vm223_vm9 = vcmask 154768   ;;  %vm226_vm10 = vcmask 150672   ;;  %s2428_s27 = smov 4   ;;  %s2429_s28 = smov 127  }
  0x3c   : > { %v146_v9 = vadd.f32 %v2215_v6, %v141_v7  ;;  %vm3415_vm11 = vcmask 162968   ;;  %vm3412_vm12 = vcmask 158872   ;;  %s2430_s30 = smov 125   ;;  %vm3414_vm13 = vcmask 1046528   ;;  %s2266_s2 = smul.u32 48, %s2542_s22 }
  0x3d   : > { %v147_v10 = vmul.f32 0.33333334, %v145_v8  ;;  %vm341_vm14 = vcmask 1045504   ;;  %vm351_vm15 = vcmask 1044480   ;;  %s2267_s3 = smul.u32 768, %s2465_s10  ;;  %s2121_s14 = scalar_lea.sflag [#allocation5], %s2542_s22 }
  0x3e   : > { %v148_v11 = vmul.f32 0.33333334, %v146_v9  ;;  %s134_s4 = scalar_lea.vmem [#allocation6], %s2266_s2  ;;  %p3461_p11 = scmp.ne.s32.totalorder %s3417_s17, 0 }
  0x3f   : > { %151 = vrot.lane.b32.xlu0 %v147_v10, %s2425_s24  ;;  %s2134_s5 = sshll.u32 %s134_s4, 4  ;;  %s3357_s13 = scalar_lea.hbm %s3410_s1, %s2267_s3  ;;  %s3359_s5 = int_to_ptr.vmem [resolvable:$true] %s2134_s5 }
  0x40   : > { %s2354_s19 = scalar_lea.vmem %s3359_s5, 768  ;;  %s2431_s20 = smov [#allocation6]  }
  0x41   : > { %p2355_p6 = scmp.ne.s32.totalorder %s3359_s5, %s2354_s19  ;;  %s2358_s21 = sshll.u32 %s2431_s20, 4  ;;  %s2359_s21 = int_to_ptr.vmem [resolvable:$false] %s2358_s21 }
  0x42   : > { %s2360_s23 = scalar_lea.vmem %s2359_s21, 1536  ;;  %p2361_p8 = scmp.lt.s32.totalorder %s3359_s5, %s2359_s21 }
  0x43   : > { %153 = vrot.lane.b32.xlu0 %v148_v11, %s2425_s24  ;;  %p2356_p12 = pnand %p2355_p6, %p3461_p11  ;;  %p2362_p10 = scmp.lt.s32.totalorder %s2360_s23, %s2354_s19 }
  0x45   : > { %p2357_p13 = pneg %p2356_p12  ;;  %p2363_p0 = por %p2362_p10, %p2361_p8 }
  0x47   : > { %p2364_p2 = pnand %p2363_p0, %p2357_p13 }
  0xb1   : > { %v152_v12 = vpop.permute.xlu0 %151 }
  0xb2   : > { %158 = vst.msk [vmem:[#allocation2 + $0x2] sm:$0xff] %vm157_vm0, %v152_v12 }
  0xb3   : > { %161 = vst.msk [vmem:[#allocation2 - $0x2] sm:$0x4] %vm160_vm1, %v152_v12 }
  0xb4   : > { %163 = vst.msk [vmem:[#allocation2] sm:$0x2] %vm162_vm2, %v152_v12 }
  0xb5   : > { %v154_v13 = vpop.permute.xlu0 %153 }
  0xb6   : > { %159 = vst.msk [vmem:[#allocation2 + $0xa] sm:$0xff] %vm157_vm0, %v154_v13 }
  0xb7   : > { %165 = vst.msk [vmem:[#allocation2 + $0xc] sm:$0x40] %vm164_vm3, %v154_v13 }
  0xb8   : > { %167 = vst.msk [vmem:[#allocation2 + $0xe] sm:$0x20] %vm166_vm4, %v154_v13 }
  0xbb   : > { %v168_v14 = vld [vmem:[#allocation2] sm:$0xff] }
  0xbc   : > { %174 = vrot.lane.b32.xlu1 %v168_v14, %s2426_s16 }
  0xbd   : > { %v169_v16 = vld [vmem:[#allocation2 + $0x8] sm:$0xff] }
  0xbf   : > { %v170_v15 = vld [vmem:[#allocation2 + $0x10] sm:$0xf] }
  0xc0   : > { %178 = vrot.lane.b32.xlu0 %v170_v15, %s2426_s16  ;;  %176 = vrot.lane.b32.xlu1 %v169_v16, %s2426_s16 }
 0x12e   : > { %v175_v17 = vpop.permute.xlu1 %174 }
 0x12f   : > { %184 = vst.msk [vmem:[#allocation2] sm:$0xff] %vm183_vm5, %v175_v17 }
 0x132   : > { %v179_v18 = vpop.permute.xlu0 %178  ;;  %v177_v19 = vpop.permute.xlu1 %176 }
 0x133   : > { %187 = vst.msk [vmem:[#allocation2 + $0x10] sm:$0xf] %vm186_vm6, %v179_v18 }
 0x134   : > { %185 = vst.msk [vmem:[#allocation2 + $0x8] sm:$0xff] %vm183_vm5, %v177_v19 }
 0x136   : > { %v188_v20 = vld [vmem:[#allocation2] sm:$0xff] }
 0x137   : > { %194 = vrot.lane.b32.xlu1 %v188_v20, %s2427_s25 }
 0x13a   : > { %v190_v21 = vld [vmem:[#allocation2 + $0x10] sm:$0xf] }
 0x13b   : > { %v189_v22 = vld [vmem:[#allocation2 + $0x8] sm:$0xff]  ;;  %198 = vrot.lane.b32.xlu1 %v190_v21, %s2427_s25 }
 0x13c   : > { %196 = vrot.lane.b32.xlu0 %v189_v22, %s2427_s25 }
 0x1a9   : > { %v195_v23 = vpop.permute.xlu1 %194 }
 0x1aa   : > { %204 = vst.msk [vmem:[#allocation2] sm:$0xff] %vm203_vm7, %v195_v23 }
 0x1ad   : > { %v199_v25 = vpop.permute.xlu1 %198 }
 0x1ae   : > { %v197_v24 = vpop.permute.xlu0 %196  ;;  %207 = vst.msk [vmem:[#allocation2 + $0x10] sm:$0xf] %vm206_vm8, %v199_v25 }
 0x1af   : > { %205 = vst.msk [vmem:[#allocation2 + $0x8] sm:$0xff] %vm203_vm7, %v197_v24 }
 0x1b1   : > { %v208_v26 = vld [vmem:[#allocation2] sm:$0xff] }
 0x1b2   : > { %214 = vrot.lane.b32.xlu0 %v208_v26, %s2425_s24 }
 0x1b5   : > { %v210_v27 = vld [vmem:[#allocation2 + $0x10] sm:$0xf] }
 0x1b6   : > { %v209_v28 = vld [vmem:[#allocation2 + $0x8] sm:$0xff]  ;;  %218 = vrot.lane.b32.xlu0 %v210_v27, %s2425_s24 }
 0x1b7   : > { %216 = vrot.lane.b32.xlu1 %v209_v28, %s2425_s24 }
 0x224   : > { %v215_v29 = vpop.permute.xlu0 %214 }
 0x225   : > { %224 = vst.msk [vmem:[#allocation2] sm:$0xff] %vm223_vm9, %v215_v29 }
 0x228   : > { %v219_v30 = vpop.permute.xlu0 %218 }
 0x229   : > { %v217_v31 = vpop.permute.xlu1 %216  ;;  %227 = vst.msk [vmem:[#allocation2 + $0x10] sm:$0xf] %vm226_vm10, %v219_v30 }
 0x22a   : > { %225 = vst.msk [vmem:[#allocation2 + $0x8] sm:$0xff] %vm223_vm9, %v217_v31 }
 0x22c   : > { %v228_v32 = vld [vmem:[#allocation2] sm:$0xff] }
 0x22d   : > { %234 = vrot.lane.b32.xlu1 %v228_v32, %s2428_s27 }
 0x230   : > { %v230_v33 = vld [vmem:[#allocation2 + $0x10] sm:$0xf] }
 0x231   : > { %v229_v34 = vld [vmem:[#allocation2 + $0x8] sm:$0xff]  ;;  %238 = vrot.lane.b32.xlu1 %v230_v33, %s2428_s27 }
 0x232   : > { %236 = vrot.lane.b32.xlu0 %v229_v34, %s2428_s27 }
 0x29f   : > { %v235_v35 = vpop.permute.xlu1 %234 }
 0x2a0   : > { %244 = vst.msk [vmem:[#allocation2] sm:$0xff] %vm3415_vm11, %v235_v35 }
 0x2a3   : > { %v239_v37 = vpop.permute.xlu1 %238 }
 0x2a4   : > { %v237_v36 = vpop.permute.xlu0 %236  ;;  %247 = vst.msk [vmem:[#allocation2 + $0x10] sm:$0xf] %vm3412_vm12, %v239_v37  ;;  %vm3413_vm12 = vcmask 1043456  }
 0x2a5   : > { %245 = vst.msk [vmem:[#allocation2 + $0x8] sm:$0xff] %vm3415_vm11, %v237_v36 }
 0x2a7   : > { %v248_v38 = vld [vmem:[#allocation2] sm:$0xff] }
 0x2a8   : > { %v254_v39 = vmul.f32 0.25, %v248_v38  ;;  %v272_v44 = vmul.f32 0.375, %v248_v38  ;;  %v251_v47 = vmul.f32 0.0625, %v248_v38 }
 0x2aa   : > { %260 = vrot.lane.b32.xlu0 %v254_v39, %s2429_s28 }
 0x2ab   : > { %v250_v40 = vld [vmem:[#allocation2 + $0x10] sm:$0xf] }
 0x2ac   : > { %v249_v41 = vld [vmem:[#allocation2 + $0x8] sm:$0xff]  ;;  %v256_v43 = vmul.f32 0.25, %v250_v40  ;;  %v274_v46 = vmul.f32 0.375, %v250_v40  ;;  %v253_v49 = vmul.f32 0.0625, %v250_v40 }
 0x2ad   : > { %v255_v42 = vmul.f32 0.25, %v249_v41  ;;  %v273_v45 = vmul.f32 0.375, %v249_v41  ;;  %v252_v48 = vmul.f32 0.0625, %v249_v41 }
 0x2ae   : > { %264 = vrot.lane.b32.xlu0 %v256_v43, %s2429_s28 }
 0x2af   : > { %262 = vrot.lane.b32.xlu1 %v255_v42, %s2429_s28 }
 0x2b2   : > { %280 = vrot.lane.b32.xlu0 %v273_v45, %s2427_s25 }
 0x2b3   : > { %278 = vrot.lane.b32.xlu1 %v272_v44, %s2427_s25 }
 0x2b6   : > { %290 = vrot.lane.b32.xlu0 %v254_v39, %s2430_s30 }
 0x2b7   : > { %282 = vrot.lane.b32.xlu1 %v274_v46, %s2427_s25 }
 0x2ba   : > { %294 = vrot.lane.b32.xlu0 %v256_v43, %s2430_s30 }
 0x2bb   : > { %292 = vrot.lane.b32.xlu1 %v255_v42, %s2430_s30 }
 0x2be   : > { %307 = vrot.lane.b32.xlu0 %v252_v48, %s2426_s16 }
 0x2bf   : > { %305 = vrot.lane.b32.xlu1 %v251_v47, %s2426_s16 }
 0x2c3   : > { %309 = vrot.lane.b32.xlu1 %v253_v49, %s2426_s16 }
 0x31c   : > { %v261_v50 = vpop.permute.xlu0 %260 }
 0x31d   : > { %v269_v57 = vadd.f32 %v261_v50, %v251_v47 }
 0x320   : > { %v265_v51 = vpop.permute.xlu0 %264 }
 0x321   : > { %v263_v52 = vpop.permute.xlu1 %262  ;;  %v271_v3 = vadd.f32 %v265_v51, %v253_v49 }
 0x322   : > { %v270_v58 = vadd.f32 %v263_v52, %v252_v48 }
 0x324   : > { %v281_v53 = vpop.permute.xlu0 %280 }
 0x325   : > { %v279_v54 = vpop.permute.xlu1 %278  ;;  %v288_v61 = vadd.f32 %v281_v53, %v270_v58 }
 0x326   : > { %v287_v62 = vadd.f32 %v279_v54, %v269_v57 }
 0x328   : > { %v291_v55 = vpop.permute.xlu0 %290 }
 0x329   : > { %v283_v56 = vpop.permute.xlu1 %282  ;;  %v299_v63 = vadd.f32 %v291_v55, %v287_v62 }
 0x32a   : > { %v289_v6 = vadd.f32 %v283_v56, %v271_v3  ;;  %v2220_v3 = vld [vmem:[%s2546_s29 + $0x30] sm:$0xff] }
 0x32c   : > { %v295_v59 = vpop.permute.xlu0 %294 }
 0x32d   : > { %v293_v60 = vpop.permute.xlu1 %292  ;;  %v301_v12 = vadd.f32 %v295_v59, %v289_v6 }
 0x32e   : > { %v300_v0 = vadd.f32 %v293_v60, %v288_v61 }
 0x330   : > { %v308_v1 = vpop.permute.xlu0 %307 }
 0x331   : > { %v306_v2 = vpop.permute.xlu1 %305  ;;  %v315_v4 = vadd.f32 %v308_v1, %v300_v0  ;;  %v2221_v1 = vld [vmem:[%s2546_s29 + $0x38] sm:$0xff] }
 0x332   : > { %v314_v5 = vadd.f32 %v306_v2, %v299_v63  ;;  %v2223_v2 = vld [vmem:[%s2546_s29 + $0x48] sm:$0xff] }
 0x333   : > { %v320_v7 = vmul.f32 0.25, %v315_v4  ;;  %v336_v8 = vmul.f32 0.375, %v315_v4  ;;  %v318_v14 = vmul.f32 0.0625, %v315_v4  ;;  %v2222_v4 = vld [vmem:[%s2546_s29 + $0x40] sm:$0xff] }
 0x334   : > { %v319_v9 = vmul.f32 0.25, %v314_v5  ;;  %v335_v10 = vmul.f32 0.375, %v314_v5  ;;  %v317_v15 = vmul.f32 0.0625, %v314_v5 }
 0x335   : > { %v310_v11 = vpop.permute.xlu1 %309  ;;  %v327_v13 = vrot.slane %v320_v7, 1  ;;  %v343_v17 = vrot.slane %v336_v8, 2  ;;  %v353_v20 = vrot.slane %v320_v7, 3  ;;  %v367_v26 = vrot.slane %v318_v14, 4 }
 0x336   : > { %v326_v16 = vrot.slane %v319_v9, 1  ;;  %v342_v18 = vrot.slane %v335_v10, 2  ;;  %v316_v19 = vadd.f32 %v310_v11, %v301_v12  ;;  %v352_v23 = vrot.slane %v319_v9, 3  ;;  %v2225_v9 = vld [vmem:[%s2546_s29 + $0x58] sm:$0xff]  ;;  %v2224_v10 = vld [vmem:[%s2546_s29 + $0x50] sm:$0xff] }
 0x337   : > { %v366_v27 = vrot.slane %v317_v15, 4  ;;  %v641_v7 = vadd.f32 %v2223_v2, %v2221_v1  ;;  %v640_v8 = vadd.f32 %v2222_v4, %v2220_v3 }
 0x338   : > { %v328_v21 = vsel %vm3414_vm13, %v326_v16, %v327_v13  ;;  %v321_v24 = vmul.f32 0.25, %v316_v19  ;;  %v337_v25 = vmul.f32 0.375, %v316_v19  ;;  %v361_v30 = vmul.f32 0.0625, %v316_v19 }
 0x339   : > { %v333_v22 = vadd.f32 %v328_v21, %v317_v15  ;;  %v344_v31 = vsel %vm341_vm14, %v342_v18, %v343_v17  ;;  %v354_v34 = vsel %vm351_vm15, %v352_v23, %v353_v20  ;;  %v368_v39 = vsel %vm3413_vm12, %v366_v27, %v367_v26 }
 0x33a   : > { %v329_v28 = vrot.slane %v321_v24, 1  ;;  %v345_v29 = vrot.slane %v337_v25, 2  ;;  %v355_v33 = vrot.slane %v321_v24, 3  ;;  %v369_v38 = vrot.slane %v361_v30, 4 }
 0x33b   : > { %v349_v32 = vadd.f32 %v344_v31, %v333_v22  ;;  %v646_v12 = vadd.f32 %v2225_v9, %v641_v7 }
 0x33c   : > { %v330_v35 = vsel %vm3414_vm13, %v327_v13, %v329_v28  ;;  %v346_v40 = vsel %vm341_vm14, %v343_v17, %v345_v29  ;;  %v356_v43 = vsel %vm351_vm15, %v353_v20, %v355_v33  ;;  %v370_v45 = vsel %vm3413_vm12, %v367_v26, %v369_v38 }
 0x33d   : > { %v359_v36 = vadd.f32 %v354_v34, %v349_v32  ;;  %v334_v37 = vadd.f32 %v330_v35, %v318_v14  ;;  %v645_v13 = vadd.f32 %v2224_v10, %v640_v8  ;;  %v648_v16 = vmul.f32 0.33333334, %v646_v12 }
 0x33e   : > { %vm3420_vm12 = vcmask 158872  }
 0x33f   : > { %v373_v41 = vadd.f32 %v368_v39, %v359_v36  ;;  %v350_v42 = vadd.f32 %v346_v40, %v334_v37  ;;  %v647_v17 = vmul.f32 0.33333334, %v645_v13 }
 0x341   : > { %377 = vrot.lane.b32.xlu0 %v373_v41, %s2425_s24  ;;  %v360_v44 = vadd.f32 %v356_v43, %v350_v42 }
 0x343   : > { %v374_v46 = vadd.f32 %v370_v45, %v360_v44 }
 0x345   : > { %379 = vrot.lane.b32.xlu1 %v374_v46, %s2425_s24 }
 0x3b3   : > { %v378_v47 = vpop.permute.xlu0 %377 }
 0x3b4   : > { %383 = vst.msk [vmem:[#allocation2 + $0x2] sm:$0xff] %vm157_vm0, %v378_v47 }
 0x3b5   : > { %385 = vst.msk [vmem:[#allocation2 - $0x2] sm:$0x4] %vm160_vm1, %v378_v47 }
 0x3b6   : > { %386 = vst.msk [vmem:[#allocation2] sm:$0x2] %vm162_vm2, %v378_v47 }
 0x3b7   : > { %v380_v48 = vpop.permute.xlu1 %379 }
 0x3b8   : > { %384 = vst.msk [vmem:[#allocation2 + $0xa] sm:$0xff] %vm157_vm0, %v380_v48 }
 0x3b9   : > { %387 = vst.msk [vmem:[#allocation2 + $0xc] sm:$0x40] %vm164_vm3, %v380_v48 }
 0x3ba   : > { %388 = vst.msk [vmem:[#allocation2 + $0xe] sm:$0x20] %vm166_vm4, %v380_v48 }
 0x3bd   : > { %v389_v49 = vld [vmem:[#allocation2] sm:$0xff] }
 0x3be   : > { %395 = vrot.lane.b32.xlu0 %v389_v49, %s2426_s16 }
 0x3bf   : > { %v390_v51 = vld [vmem:[#allocation2 + $0x8] sm:$0xff] }
 0x3c0   : > { %397 = vrot.lane.b32.xlu1 %v390_v51, %s2426_s16 }
 0x3c1   : > { %v391_v50 = vld [vmem:[#allocation2 + $0x10] sm:$0xf] }
 0x3c2   : > { %399 = vrot.lane.b32.xlu0 %v391_v50, %s2426_s16 }
 0x430   : > { %v396_v52 = vpop.permute.xlu0 %395 }
 0x431   : > { %404 = vst.msk [vmem:[#allocation2] sm:$0xff] %vm183_vm5, %v396_v52 }
 0x432   : > { %v398_v54 = vpop.permute.xlu1 %397 }
 0x433   : > { %405 = vst.msk [vmem:[#allocation2 + $0x8] sm:$0xff] %vm183_vm5, %v398_v54 }
 0x434   : > { %v400_v53 = vpop.permute.xlu0 %399 }
 0x435   : > { %406 = vst.msk [vmem:[#allocation2 + $0x10] sm:$0xf] %vm186_vm6, %v400_v53 }
 0x438   : > { %v407_v55 = vld [vmem:[#allocation2] sm:$0xff] }
 0x439   : > { %413 = vrot.lane.b32.xlu1 %v407_v55, %s2427_s25 }
 0x43a   : > { %v408_v57 = vld [vmem:[#allocation2 + $0x8] sm:$0xff] }
 0x43b   : > { %415 = vrot.lane.b32.xlu0 %v408_v57, %s2427_s25 }
 0x43c   : > { %v409_v56 = vld [vmem:[#allocation2 + $0x10] sm:$0xf] }
 0x43d   : > { %417 = vrot.lane.b32.xlu1 %v409_v56, %s2427_s25 }
 0x4ab   : > { %v414_v58 = vpop.permute.xlu1 %413 }
 0x4ac   : > { %422 = vst.msk [vmem:[#allocation2] sm:$0xff] %vm203_vm7, %v414_v58 }
 0x4ad   : > { %v416_v59 = vpop.permute.xlu0 %415 }
 0x4ae   : > { %423 = vst.msk [vmem:[#allocation2 + $0x8] sm:$0xff] %vm203_vm7, %v416_v59 }
 0x4af   : > { %v418_v60 = vpop.permute.xlu1 %417 }
 0x4b0   : > { %424 = vst.msk [vmem:[#allocation2 + $0x10] sm:$0xf] %vm206_vm8, %v418_v60 }
 0x4b3   : > { %v425_v61 = vld [vmem:[#allocation2] sm:$0xff] }
 0x4b4   : > { %431 = vrot.lane.b32.xlu0 %v425_v61, %s2425_s24 }
 0x4b5   : > { %v426_v63 = vld [vmem:[#allocation2 + $0x8] sm:$0xff] }
 0x4b6   : > { %433 = vrot.lane.b32.xlu1 %v426_v63, %s2425_s24 }
 0x4b7   : > { %v427_v62 = vld [vmem:[#allocation2 + $0x10] sm:$0xf] }
 0x4b8   : > { %435 = vrot.lane.b32.xlu0 %v427_v62, %s2425_s24 }
 0x526   : > { %v432_v0 = vpop.permute.xlu0 %431 }
 0x527   : > { %440 = vst.msk [vmem:[#allocation2] sm:$0xff] %vm223_vm9, %v432_v0 }
 0x528   : > { %v434_v6 = vpop.permute.xlu1 %433 }
 0x529   : > { %441 = vst.msk [vmem:[#allocation2 + $0x8] sm:$0xff] %vm223_vm9, %v434_v6 }
 0x52a   : > { %v436_v5 = vpop.permute.xlu0 %435 }
 0x52b   : > { %442 = vst.msk [vmem:[#allocation2 + $0x10] sm:$0xf] %vm226_vm10, %v436_v5 }
 0x52e   : > { %v443_v11 = vld [vmem:[#allocation2] sm:$0xff] }
 0x52f   : > { %449 = vrot.lane.b32.xlu1 %v443_v11, %s2428_s27 }
 0x530   : > { %v444_v15 = vld [vmem:[#allocation2 + $0x8] sm:$0xff] }
 0x531   : > { %451 = vrot.lane.b32.xlu0 %v444_v15, %s2428_s27 }
 0x532   : > { %v445_v14 = vld [vmem:[#allocation2 + $0x10] sm:$0xf] }
 0x533   : > { %453 = vrot.lane.b32.xlu1 %v445_v14, %s2428_s27 }
 0x535   : > { %651 = vrot.lane.b32.xlu0 %v647_v17, %s2425_s24 }
 0x537   : > { %653 = vrot.lane.b32.xlu1 %v648_v16, %s2425_s24 }
 0x5a1   : > { %v450_v18 = vpop.permute.xlu1 %449 }
 0x5a2   : > { %458 = vst.msk [vmem:[#allocation2] sm:$0xff] %vm3415_vm11, %v450_v18 }
 0x5a3   : > { %v452_v19 = vpop.permute.xlu0 %451 }
 0x5a4   : > { %459 = vst.msk [vmem:[#allocation2 + $0x8] sm:$0xff] %vm3415_vm11, %v452_v19 }
 0x5a5   : > { %v454_v20 = vpop.permute.xlu1 %453 }
 0x5a6   : > { %460 = vst.msk [vmem:[#allocation2 + $0x10] sm:$0xf] %vm3420_vm12, %v454_v20 }
 0x5a7   : > { %v652_v21 = vpop.permute.xlu0 %651 }
 0x5a9   : > { %v2650_v22 = vld [vmem:[#allocation2] sm:$0xff]  ;;  %v654_v23 = vpop.permute.xlu1 %653 }
 0x5aa   : > { %659 = vst.msk [vmem:[#allocation2 - $0x2] sm:$0x4] %vm160_vm1, %v652_v21 }
 0x5ab   : > { %660 = vst.msk [vmem:[#allocation2] sm:$0x2] %vm162_vm2, %v652_v21  ;;  %v2656_v25 = vld [vmem:[#allocation2 + $0x8] sm:$0xff] }
 0x5ac   : > { %657 = vst.msk [vmem:[#allocation2 + $0x2] sm:$0xff] %vm157_vm0, %v652_v21 }
 0x5ad   : > { %v2654_v24 = vld [vmem:[#allocation2 + $0x10] sm:$0xf] }
 0x5ae   : > { %661 = vst.msk [vmem:[#allocation2 + $0xc] sm:$0x40] %vm164_vm3, %v654_v23 }
 0x5af   : > { %662 = vst.msk [vmem:[#allocation2 + $0xe] sm:$0x20] %vm166_vm4, %v654_v23 }
 0x5b0   : > { %658 = vst.msk [vmem:[#allocation2 + $0xa] sm:$0xff] %vm157_vm0, %v654_v23 }
 0x5b3   : > { %v663_v26 = vld [vmem:[#allocation2] sm:$0xff] }
 0x5b4   : > { %669 = vrot.lane.b32.xlu0 %v663_v26, %s2426_s16 }
 0x5b7   : > { %v664_v27 = vld [vmem:[#allocation2 + $0x8] sm:$0xff]  ;;  %v665_v28 = vld [vmem:[#allocation2 + $0x10] sm:$0xf] }
 0x5b8   : > { %671 = vrot.lane.b32.xlu1 %v664_v27, %s2426_s16  ;;  %673 = vrot.lane.b32.xlu0 %v665_v28, %s2426_s16 }
 0x626   : > { %v670_v29 = vpop.permute.xlu0 %669 }
 0x627   : > { %678 = vst.msk [vmem:[#allocation2] sm:$0xff] %vm183_vm5, %v670_v29 }
 0x62a   : > { %v672_v30 = vpop.permute.xlu1 %671  ;;  %v674_v31 = vpop.permute.xlu0 %673 }
 0x62b   : > { %679 = vst.msk [vmem:[#allocation2 + $0x8] sm:$0xff] %vm183_vm5, %v672_v30 }
 0x62c   : > { %680 = vst.msk [vmem:[#allocation2 + $0x10] sm:$0xf] %vm186_vm6, %v674_v31 }
 0x62e   : > { %v681_v32 = vld [vmem:[#allocation2] sm:$0xff] }
 0x62f   : > { %687 = vrot.lane.b32.xlu1 %v681_v32, %s2427_s25 }
 0x632   : > { %v682_v33 = vld [vmem:[#allocation2 + $0x8] sm:$0xff] }
 0x633   : > { %689 = vrot.lane.b32.xlu0 %v682_v33, %s2427_s25  ;;  %v683_v34 = vld [vmem:[#allocation2 + $0x10] sm:$0xf] }
 0x634   : > { %691 = vrot.lane.b32.xlu1 %v683_v34, %s2427_s25 }
 0x6a1   : > { %v688_v36 = vpop.permute.xlu1 %687 }
 0x6a2   : > { %696 = vst.msk [vmem:[#allocation2] sm:$0xff] %vm203_vm7, %v688_v36 }
 0x6a5   : > { %v690_v35 = vpop.permute.xlu0 %689 }
 0x6a6   : > { %697 = vst.msk [vmem:[#allocation2 + $0x8] sm:$0xff] %vm203_vm7, %v690_v35  ;;  %v692_v37 = vpop.permute.xlu1 %691 }
 0x6a7   : > { %698 = vst.msk [vmem:[#allocation2 + $0x10] sm:$0xf] %vm206_vm8, %v692_v37 }
 0x6a9   : > { %v699_v39 = vld [vmem:[#allocation2] sm:$0xff] }
 0x6aa   : > { %705 = vrot.lane.b32.xlu0 %v699_v39, %s2425_s24 }
 0x6ad   : > { %v700_v38 = vld [vmem:[#allocation2 + $0x8] sm:$0xff] }
 0x6ae   : > { %707 = vrot.lane.b32.xlu1 %v700_v38, %s2425_s24  ;;  %v701_v40 = vld [vmem:[#allocation2 + $0x10] sm:$0xf] }
 0x6af   : > { %709 = vrot.lane.b32.xlu0 %v701_v40, %s2425_s24 }
 0x71c   : > { %v706_v41 = vpop.permute.xlu0 %705 }
 0x71d   : > { %714 = vst.msk [vmem:[#allocation2] sm:$0xff] %vm223_vm9, %v706_v41 }
 0x720   : > { %v708_v42 = vpop.permute.xlu1 %707 }
 0x721   : > { %715 = vst.msk [vmem:[#allocation2 + $0x8] sm:$0xff] %vm223_vm9, %v708_v42  ;;  %v710_v43 = vpop.permute.xlu0 %709 }
 0x722   : > { %716 = vst.msk [vmem:[#allocation2 + $0x10] sm:$0xf] %vm226_vm10, %v710_v43 }
 0x724   : > { %v717_v44 = vld [vmem:[#allocation2] sm:$0xff] }
 0x725   : > { %723 = vrot.lane.b32.xlu1 %v717_v44, %s2428_s27 }
 0x728   : > { %v718_v45 = vld [vmem:[#allocation2 + $0x8] sm:$0xff] }
 0x729   : > { %725 = vrot.lane.b32.xlu0 %v718_v45, %s2428_s27  ;;  %v719_v46 = vld [vmem:[#allocation2 + $0x10] sm:$0xf] }
 0x72a   : > { %727 = vrot.lane.b32.xlu1 %v719_v46, %s2428_s27 }
 0x797   : > { %v724_v48 = vpop.permute.xlu1 %723 }
 0x798   : > { %732 = vst.msk [vmem:[#allocation2] sm:$0xff] %vm3415_vm11, %v724_v48 }
 0x79b   : > { %v726_v47 = vpop.permute.xlu0 %725 }
 0x79c   : > { %733 = vst.msk [vmem:[#allocation2 + $0x8] sm:$0xff] %vm3415_vm11, %v726_v47  ;;  %v728_v49 = vpop.permute.xlu1 %727 }
 0x79d   : > { %734 = vst.msk [vmem:[#allocation2 + $0x10] sm:$0xf] %vm3420_vm12, %v728_v49  ;;  %vm3421_vm12 = vcmask 1043456  }
 0x79f   : > { %v735_v51 = vld [vmem:[#allocation2] sm:$0xff] }
 0x7a0   : > { %v741_v53 = vmul.f32 0.25, %v735_v51  ;;  %v759_v55 = vmul.f32 0.375, %v735_v51  ;;  %v738_v59 = vmul.f32 0.0625, %v735_v51 }
 0x7a2   : > { %747 = vrot.lane.b32.xlu0 %v741_v53, %s2429_s28 }
 0x7a3   : > { %v736_v50 = vld [vmem:[#allocation2 + $0x8] sm:$0xff] }
 0x7a4   : > { %v742_v52 = vmul.f32 0.25, %v736_v50  ;;  %v737_v54 = vld [vmem:[#allocation2 + $0x10] sm:$0xf]  ;;  %v760_v58 = vmul.f32 0.375, %v736_v50  ;;  %v739_v60 = vmul.f32 0.0625, %v736_v50 }
 0x7a5   : > { %v743_v56 = vmul.f32 0.25, %v737_v54  ;;  %v761_v57 = vmul.f32 0.375, %v737_v54  ;;  %v740_v61 = vmul.f32 0.0625, %v737_v54 }
 0x7a6   : > { %749 = vrot.lane.b32.xlu1 %v742_v52, %s2429_s28 }
 0x7a7   : > { %751 = vrot.lane.b32.xlu0 %v743_v56, %s2429_s28 }
 0x7aa   : > { %765 = vrot.lane.b32.xlu1 %v759_v55, %s2427_s25 }
 0x7ab   : > { %767 = vrot.lane.b32.xlu0 %v760_v58, %s2427_s25 }
 0x7ae   : > { %769 = vrot.lane.b32.xlu1 %v761_v57, %s2427_s25 }
 0x7af   : > { %777 = vrot.lane.b32.xlu0 %v741_v53, %s2430_s30 }
 0x7b2   : > { %779 = vrot.lane.b32.xlu1 %v742_v52, %s2430_s30 }
 0x7b3   : > { %781 = vrot.lane.b32.xlu0 %v743_v56, %s2430_s30 }
 0x7b6   : > { %792 = vrot.lane.b32.xlu1 %v738_v59, %s2426_s16 }
 0x7b7   : > { %794 = vrot.lane.b32.xlu0 %v739_v60, %s2426_s16 }
 0x7ba   : > { %796 = vrot.lane.b32.xlu1 %v740_v61, %s2426_s16 }
 0x814   : > { %v748_v62 = vpop.permute.xlu0 %747 }
 0x815   : > { %v756_v4 = vadd.f32 %v748_v62, %v738_v59 }
 0x818   : > { %v750_v63 = vpop.permute.xlu1 %749 }
 0x819   : > { %v752_v0 = vpop.permute.xlu0 %751  ;;  %v757_v8 = vadd.f32 %v750_v63, %v739_v60 }
 0x81a   : > { %v758_v9 = vadd.f32 %v752_v0, %v740_v61 }
 0x81c   : > { %v766_v1 = vpop.permute.xlu1 %765 }
 0x81d   : > { %v768_v2 = vpop.permute.xlu0 %767  ;;  %v774_v7 = vadd.f32 %v766_v1, %v756_v4 }
 0x81e   : > { %v775_v13 = vadd.f32 %v768_v2, %v757_v8 }
 0x820   : > { %v770_v3 = vpop.permute.xlu1 %769 }
 0x821   : > { %v778_v5 = vpop.permute.xlu0 %777  ;;  %v776_v14 = vadd.f32 %v770_v3, %v758_v9 }
 0x822   : > { %v786_v10 = vadd.f32 %v778_v5, %v774_v7 }
 0x824   : > { %v780_v6 = vpop.permute.xlu1 %779 }
 0x825   : > { %v782_v11 = vpop.permute.xlu0 %781  ;;  %v787_v16 = vadd.f32 %v780_v6, %v775_v13 }
 0x826   : > { %v788_v17 = vadd.f32 %v782_v11, %v776_v14 }
 0x828   : > { %v793_v12 = vpop.permute.xlu1 %792 }
 0x829   : > { %v801_v15 = vadd.f32 %v793_v12, %v786_v10  ;;  %v795_v18 = vpop.permute.xlu0 %794 }
 0x82a   : > { %v802_v21 = vadd.f32 %v795_v18, %v787_v16  ;;  %v2234_v16 = vld [vmem:[%s2546_s29 + $0x70] sm:$0xff] }
 0x82b   : > { %v806_v20 = vmul.f32 0.25, %v801_v15  ;;  %v821_v26 = vmul.f32 0.375, %v801_v15  ;;  %v804_v35 = vmul.f32 0.0625, %v801_v15  ;;  %v2232_v15 = vld [vmem:[%s2546_s29 + $0x60] sm:$0xff] }
 0x82c   : > { %v797_v19 = vpop.permute.xlu1 %796  ;;  %v807_v27 = vmul.f32 0.25, %v802_v21  ;;  %v822_v28 = vmul.f32 0.375, %v802_v21  ;;  %v805_v32 = vmul.f32 0.0625, %v802_v21  ;;  %v2235_v21 = vld [vmem:[%s2546_s29 + $0x78] sm:$0xff] }
 0x82d   : > { %v803_v23 = vadd.f32 %v797_v19, %v788_v17  ;;  %v812_v31 = vrot.slane %v806_v20, 1  ;;  %v827_v39 = vrot.slane %v821_v26, 2  ;;  %v836_v45 = vrot.slane %v806_v20, 3  ;;  %v2233_v20 = vld [vmem:[%s2546_s29 + $0x68] sm:$0xff] }
 0x82e   : > { %v813_v33 = vrot.slane %v807_v27, 1  ;;  %v828_v34 = vrot.slane %v822_v28, 2  ;;  %v837_v40 = vrot.slane %v807_v27, 3  ;;  %v850_v46 = vrot.slane %v805_v32, 4 }
 0x82f   : > { %v808_v29 = vmul.f32 0.25, %v803_v23  ;;  %v823_v30 = vmul.f32 0.375, %v803_v23  ;;  %v845_v38 = vmul.f32 0.0625, %v803_v23  ;;  %v849_v52 = vrot.slane %v804_v35, 4  ;;  %v2236_v23 = vld [vmem:[%s2546_s29 + $0x80] sm:$0xff] }
 0x830   : > { %v814_v41 = vsel %vm3414_vm13, %v812_v31, %v813_v33  ;;  %v829_v47 = vsel %vm341_vm14, %v827_v39, %v828_v34  ;;  %v838_v53 = vsel %vm351_vm15, %v836_v45, %v837_v40  ;;  %v1133_v19 = vadd.f32 %v2234_v16, %v2232_v15 }
 0x831   : > { %v815_v36 = vrot.slane %v808_v29, 1  ;;  %v830_v37 = vrot.slane %v823_v30, 2  ;;  %v839_v42 = vrot.slane %v808_v29, 3  ;;  %v819_v43 = vadd.f32 %v814_v41, %v804_v35  ;;  %v2237_v29 = vld [vmem:[%s2546_s29 + $0x88] sm:$0xff] }
 0x832   : > { %v852_v49 = vrot.slane %v845_v38, 4  ;;  %v851_v57 = vsel %vm3421_vm12, %v849_v52, %v850_v46  ;;  %v1134_v27 = vadd.f32 %v2235_v21, %v2233_v20  ;;  %v1138_v28 = vadd.f32 %v2236_v23, %v1133_v19 }
 0x833   : > { %v816_v44 = vsel %vm3414_vm13, %v813_v33, %v815_v36  ;;  %v834_v50 = vadd.f32 %v829_v47, %v819_v43  ;;  %v831_v51 = vsel %vm341_vm14, %v828_v34, %v830_v37  ;;  %v840_v56 = vsel %vm351_vm15, %v837_v40, %v839_v42  ;;  %vm3422_vm13 = vmmov %vm3421_vm12 }
 0x834   : > { %v820_v48 = vadd.f32 %v816_v44, %v805_v32  ;;  %v853_v60 = vsel %vm3422_vm13, %v850_v46, %v852_v49  ;;  %v1139_v32 = vadd.f32 %v2237_v29, %v1134_v27  ;;  %v1140_v33 = vmul.f32 0.33333334, %v1138_v28 }
 0x835   : > { %v843_v55 = vadd.f32 %v838_v53, %v834_v50  ;;  %vm3423_vm13 = vcmask 158872  }
 0x836   : > { %v835_v54 = vadd.f32 %v831_v51, %v820_v48  ;;  %v1141_v35 = vmul.f32 0.33333334, %v1139_v32  ;;  %vm3424_vm12 = vmmov %vm3423_vm13 }
 0x837   : > { %v856_v59 = vadd.f32 %v851_v57, %v843_v55 }
 0x838   : > { %v844_v58 = vadd.f32 %v840_v56, %v835_v54 }
 0x839   : > { %860 = vrot.lane.b32.xlu0 %v856_v59, %s2425_s24 }
 0x83a   : > { %v857_v61 = vadd.f32 %v853_v60, %v844_v58 }
 0x83c   : > { %862 = vrot.lane.b32.xlu1 %v857_v61, %s2425_s24 }
 0x8ab   : > { %v861_v62 = vpop.permute.xlu0 %860 }
 0x8ac   : > { %866 = vst.msk [vmem:[#allocation2 + $0x2] sm:$0xff] %vm157_vm0, %v861_v62 }
 0x8ad   : > { %868 = vst.msk [vmem:[#allocation2 - $0x2] sm:$0x4] %vm160_vm1, %v861_v62 }
 0x8ae   : > { %869 = vst.msk [vmem:[#allocation2] sm:$0x2] %vm162_vm2, %v861_v62  ;;  %v863_v63 = vpop.permute.xlu1 %862 }
 0x8af   : > { %870 = vst.msk [vmem:[#allocation2 + $0xc] sm:$0x40] %vm164_vm3, %v863_v63 }
 0x8b0   : > { %871 = vst.msk [vmem:[#allocation2 + $0xe] sm:$0x20] %vm166_vm4, %v863_v63 }
 0x8b1   : > { %867 = vst.msk [vmem:[#allocation2 + $0xa] sm:$0xff] %vm157_vm0, %v863_v63 }
 0x8b5   : > { %v872_v0 = vld [vmem:[#allocation2] sm:$0xff] }
 0x8b6   : > { %878 = vrot.lane.b32.xlu0 %v872_v0, %s2426_s16 }
 0x8b8   : > { %v873_v1 = vld [vmem:[#allocation2 + $0x8] sm:$0xff]  ;;  %v874_v2 = vld [vmem:[#allocation2 + $0x10] sm:$0xf] }
 0x8b9   : > { %880 = vrot.lane.b32.xlu1 %v873_v1, %s2426_s16 }
 0x8ba   : > { %882 = vrot.lane.b32.xlu0 %v874_v2, %s2426_s16 }
 0x928   : > { %v879_v3 = vpop.permute.xlu0 %878 }
 0x929   : > { %887 = vst.msk [vmem:[#allocation2] sm:$0xff] %vm183_vm5, %v879_v3 }
 0x92b   : > { %v881_v4 = vpop.permute.xlu1 %880 }
 0x92c   : > { %888 = vst.msk [vmem:[#allocation2 + $0x8] sm:$0xff] %vm183_vm5, %v881_v4  ;;  %v883_v5 = vpop.permute.xlu0 %882 }
 0x92d   : > { %889 = vst.msk [vmem:[#allocation2 + $0x10] sm:$0xf] %vm186_vm6, %v883_v5 }
 0x930   : > { %v890_v6 = vld [vmem:[#allocation2] sm:$0xff] }
 0x931   : > { %896 = vrot.lane.b32.xlu1 %v890_v6, %s2427_s25 }
 0x933   : > { %v891_v7 = vld [vmem:[#allocation2 + $0x8] sm:$0xff] }
 0x934   : > { %898 = vrot.lane.b32.xlu0 %v891_v7, %s2427_s25  ;;  %v892_v8 = vld [vmem:[#allocation2 + $0x10] sm:$0xf] }
 0x935   : > { %900 = vrot.lane.b32.xlu1 %v892_v8, %s2427_s25 }
 0x9a3   : > { %v897_v9 = vpop.permute.xlu1 %896 }
 0x9a4   : > { %905 = vst.msk [vmem:[#allocation2] sm:$0xff] %vm203_vm7, %v897_v9 }
 0x9a6   : > { %v899_v10 = vpop.permute.xlu0 %898 }
 0x9a7   : > { %906 = vst.msk [vmem:[#allocation2 + $0x8] sm:$0xff] %vm203_vm7, %v899_v10  ;;  %v901_v11 = vpop.permute.xlu1 %900 }
 0x9a8   : > { %907 = vst.msk [vmem:[#allocation2 + $0x10] sm:$0xf] %vm206_vm8, %v901_v11 }
 0x9ab   : > { %v908_v12 = vld [vmem:[#allocation2] sm:$0xff] }
 0x9ac   : > { %914 = vrot.lane.b32.xlu0 %v908_v12, %s2425_s24 }
 0x9ae   : > { %v909_v13 = vld [vmem:[#allocation2 + $0x8] sm:$0xff] }
 0x9af   : > { %916 = vrot.lane.b32.xlu1 %v909_v13, %s2425_s24  ;;  %v910_v14 = vld [vmem:[#allocation2 + $0x10] sm:$0xf] }
 0x9b0   : > { %918 = vrot.lane.b32.xlu0 %v910_v14, %s2425_s24 }
 0xa1e   : > { %v915_v17 = vpop.permute.xlu0 %914 }
 0xa1f   : > { %923 = vst.msk [vmem:[#allocation2] sm:$0xff] %vm223_vm9, %v915_v17 }
 0xa21   : > { %v917_v18 = vpop.permute.xlu1 %916 }
 0xa22   : > { %924 = vst.msk [vmem:[#allocation2 + $0x8] sm:$0xff] %vm223_vm9, %v917_v18  ;;  %v919_v26 = vpop.permute.xlu0 %918 }
 0xa23   : > { %925 = vst.msk [vmem:[#allocation2 + $0x10] sm:$0xf] %vm226_vm10, %v919_v26 }
 0xa26   : > { %v926_v30 = vld [vmem:[#allocation2] sm:$0xff] }
 0xa27   : > { %932 = vrot.lane.b32.xlu1 %v926_v30, %s2428_s27 }
 0xa29   : > { %v927_v31 = vld [vmem:[#allocation2 + $0x8] sm:$0xff] }
 0xa2a   : > { %934 = vrot.lane.b32.xlu0 %v927_v31, %s2428_s27  ;;  %v928_v34 = vld [vmem:[#allocation2 + $0x10] sm:$0xf] }
 0xa2b   : > { %936 = vrot.lane.b32.xlu1 %v928_v34, %s2428_s27 }
 0xa2e   : > { %1144 = vrot.lane.b32.xlu0 %v1140_v33, %s2425_s24 }
 0xa2f   : > { %1146 = vrot.lane.b32.xlu1 %v1141_v35, %s2425_s24 }
 0xa99   : > { %v933_v36 = vpop.permute.xlu1 %932 }
 0xa9a   : > { %941 = vst.msk [vmem:[#allocation2] sm:$0xff] %vm3415_vm11, %v933_v36 }
 0xa9c   : > { %v935_v37 = vpop.permute.xlu0 %934 }
 0xa9d   : > { %942 = vst.msk [vmem:[#allocation2 + $0x8] sm:$0xff] %vm3415_vm11, %v935_v37  ;;  %v937_v38 = vpop.permute.xlu1 %936 }
 0xa9e   : > { %943 = vst.msk [vmem:[#allocation2 + $0x10] sm:$0xf] %vm3423_vm13, %v937_v38  ;;  %vm3425_vm13 = vcmask 1046528  }
 0xaa0   : > { %v1145_v39 = vpop.permute.xlu0 %1144 }
 0xaa1   : > { %v2746_v40 = vld [vmem:[#allocation2] sm:$0xff]  ;;  %v1147_v42 = vpop.permute.xlu1 %1146 }
 0xaa2   : > { %1152 = vst.msk [vmem:[#allocation2 - $0x2] sm:$0x4] %vm160_vm1, %v1145_v39 }
 0xaa3   : > { %1153 = vst.msk [vmem:[#allocation2] sm:$0x2] %vm162_vm2, %v1145_v39 }
 0xaa4   : > { %v2748_v41 = vld [vmem:[#allocation2 + $0x8] sm:$0xff] }
 0xaa5   : > { %1150 = vst.msk [vmem:[#allocation2 + $0x2] sm:$0xff] %vm157_vm0, %v1145_v39  ;;  %v2753_v43 = vld [vmem:[#allocation2 + $0x10] sm:$0xf] }
 0xaa6   : > { %1151 = vst.msk [vmem:[#allocation2 + $0xa] sm:$0xff] %vm157_vm0, %v1147_v42 }
 0xaa7   : > { %1154 = vst.msk [vmem:[#allocation2 + $0xc] sm:$0x40] %vm164_vm3, %v1147_v42 }
 0xaa8   : > { %1155 = vst.msk [vmem:[#allocation2 + $0xe] sm:$0x20] %vm166_vm4, %v1147_v42 }
 0xaac   : > { %v1156_v44 = vld [vmem:[#allocation2] sm:$0xff] }
 0xaad   : > { %1162 = vrot.lane.b32.xlu0 %v1156_v44, %s2426_s16  ;;  %v1157_v46 = vld [vmem:[#allocation2 + $0x8] sm:$0xff] }
 0xaae   : > { %1164 = vrot.lane.b32.xlu1 %v1157_v46, %s2426_s16 }
 0xaaf   : > { %v1158_v45 = vld [vmem:[#allocation2 + $0x10] sm:$0xf] }
 0xab1   : > { %1166 = vrot.lane.b32.xlu0 %v1158_v45, %s2426_s16 }
 0xb1f   : > { %v1163_v47 = vpop.permute.xlu0 %1162 }
 0xb20   : > { %1171 = vst.msk [vmem:[#allocation2] sm:$0xff] %vm183_vm5, %v1163_v47  ;;  %v1165_v48 = vpop.permute.xlu1 %1164 }
 0xb21   : > { %1172 = vst.msk [vmem:[#allocation2 + $0x8] sm:$0xff] %vm183_vm5, %v1165_v48 }
 0xb23   : > { %v1167_v49 = vpop.permute.xlu0 %1166 }
 0xb24   : > { %1173 = vst.msk [vmem:[#allocation2 + $0x10] sm:$0xf] %vm186_vm6, %v1167_v49 }
 0xb27   : > { %v1174_v50 = vld [vmem:[#allocation2] sm:$0xff] }
 0xb28   : > { %1180 = vrot.lane.b32.xlu1 %v1174_v50, %s2427_s25  ;;  %v1175_v51 = vld [vmem:[#allocation2 + $0x8] sm:$0xff] }
 0xb29   : > { %1182 = vrot.lane.b32.xlu0 %v1175_v51, %s2427_s25 }
 0xb2b   : > { %v1176_v52 = vld [vmem:[#allocation2 + $0x10] sm:$0xf] }
 0xb2c   : > { %1184 = vrot.lane.b32.xlu1 %v1176_v52, %s2427_s25 }
 0xb9a   : > { %v1181_v53 = vpop.permute.xlu1 %1180 }
 0xb9b   : > { %1189 = vst.msk [vmem:[#allocation2] sm:$0xff] %vm203_vm7, %v1181_v53  ;;  %v1183_v54 = vpop.permute.xlu0 %1182 }
 0xb9c   : > { %1190 = vst.msk [vmem:[#allocation2 + $0x8] sm:$0xff] %vm203_vm7, %v1183_v54 }
 0xb9e   : > { %v1185_v55 = vpop.permute.xlu1 %1184 }
 0xb9f   : > { %1191 = vst.msk [vmem:[#allocation2 + $0x10] sm:$0xf] %vm206_vm8, %v1185_v55 }
 0xba2   : > { %v1192_v56 = vld [vmem:[#allocation2] sm:$0xff] }
 0xba3   : > { %1198 = vrot.lane.b32.xlu0 %v1192_v56, %s2425_s24  ;;  %v1193_v57 = vld [vmem:[#allocation2 + $0x8] sm:$0xff] }
 0xba4   : > { %1200 = vrot.lane.b32.xlu1 %v1193_v57, %s2425_s24 }
 0xba6   : > { %v1194_v58 = vld [vmem:[#allocation2 + $0x10] sm:$0xf] }
 0xba7   : > { %1202 = vrot.lane.b32.xlu0 %v1194_v58, %s2425_s24 }
 0xc15   : > { %v1199_v59 = vpop.permute.xlu0 %1198 }
 0xc16   : > { %1207 = vst.msk [vmem:[#allocation2] sm:$0xff] %vm223_vm9, %v1199_v59  ;;  %v1201_v60 = vpop.permute.xlu1 %1200 }
 0xc17   : > { %1208 = vst.msk [vmem:[#allocation2 + $0x8] sm:$0xff] %vm223_vm9, %v1201_v60 }
 0xc19   : > { %v1203_v61 = vpop.permute.xlu0 %1202 }
 0xc1a   : > { %1209 = vst.msk [vmem:[#allocation2 + $0x10] sm:$0xf] %vm226_vm10, %v1203_v61 }
 0xc1d   : > { %v1210_v62 = vld [vmem:[#allocation2] sm:$0xff] }
 0xc1e   : > { %1216 = vrot.lane.b32.xlu1 %v1210_v62, %s2428_s27  ;;  %v1211_v63 = vld [vmem:[#allocation2 + $0x8] sm:$0xff] }
 0xc1f   : > { %1218 = vrot.lane.b32.xlu0 %v1211_v63, %s2428_s27 }
 0xc21   : > { %v1212_v0 = vld [vmem:[#allocation2 + $0x10] sm:$0xf] }
 0xc22   : > { %1220 = vrot.lane.b32.xlu1 %v1212_v0, %s2428_s27 }
 0xc90   : > { %v1217_v1 = vpop.permute.xlu1 %1216 }
 0xc91   : > { %1225 = vst.msk [vmem:[#allocation2] sm:$0xff] %vm3415_vm11, %v1217_v1  ;;  %v1219_v2 = vpop.permute.xlu0 %1218 }
 0xc92   : > { %1226 = vst.msk [vmem:[#allocation2 + $0x8] sm:$0xff] %vm3415_vm11, %v1219_v2  ;;  %vm3427_vm11 = vcmask 1043456  }
 0xc94   : > { %v1221_v3 = vpop.permute.xlu1 %1220 }
 0xc95   : > { %1227 = vst.msk [vmem:[#allocation2 + $0x10] sm:$0xf] %vm3424_vm12, %v1221_v3  ;;  %vm3426_vm12 = vmmov %vm3425_vm13 }
 0xc98   : > { %v1228_v4 = vld [vmem:[#allocation2] sm:$0xff] }
 0xc99   : > { %v1234_v5 = vmul.f32 0.25, %v1228_v4  ;;  %v1229_v6 = vld [vmem:[#allocation2 + $0x8] sm:$0xff]  ;;  %v1252_v10 = vmul.f32 0.375, %v1228_v4  ;;  %v1231_v13 = vmul.f32 0.0625, %v1228_v4 }
 0xc9a   : > { %v1235_v7 = vmul.f32 0.25, %v1229_v6  ;;  %v1253_v11 = vmul.f32 0.375, %v1229_v6  ;;  %v1232_v14 = vmul.f32 0.0625, %v1229_v6 }
 0xc9b   : > { %1240 = vrot.lane.b32.xlu0 %v1234_v5, %s2429_s28 }
 0xc9c   : > { %v1230_v8 = vld [vmem:[#allocation2 + $0x10] sm:$0xf]  ;;  %1242 = vrot.lane.b32.xlu1 %v1235_v7, %s2429_s28 }
 0xc9d   : > { %v1236_v9 = vmul.f32 0.25, %v1230_v8  ;;  %v1254_v12 = vmul.f32 0.375, %v1230_v8  ;;  %v1233_v15 = vmul.f32 0.0625, %v1230_v8 }
 0xc9f   : > { %1244 = vrot.lane.b32.xlu0 %v1236_v9, %s2429_s28 }
 0xca0   : > { %1258 = vrot.lane.b32.xlu1 %v1252_v10, %s2427_s25 }
 0xca3   : > { %1260 = vrot.lane.b32.xlu0 %v1253_v11, %s2427_s25 }
 0xca4   : > { %1262 = vrot.lane.b32.xlu1 %v1254_v12, %s2427_s25 }
 0xca7   : > { %1270 = vrot.lane.b32.xlu0 %v1234_v5, %s2430_s30 }
 0xca8   : > { %1272 = vrot.lane.b32.xlu1 %v1235_v7, %s2430_s30 }
 0xcab   : > { %1274 = vrot.lane.b32.xlu0 %v1236_v9, %s2430_s30 }
 0xcac   : > { %1285 = vrot.lane.b32.xlu1 %v1231_v13, %s2426_s16 }
 0xcaf   : > { %1287 = vrot.lane.b32.xlu0 %v1232_v14, %s2426_s16 }
 0xcb0   : > { %1289 = vrot.lane.b32.xlu1 %v1233_v15, %s2426_s16 }
 0xd0d   : > { %v1241_v16 = vpop.permute.xlu0 %1240 }
 0xd0e   : > { %v1243_v17 = vpop.permute.xlu1 %1242  ;;  %v1249_v26 = vadd.f32 %v1241_v16, %v1231_v13 }
 0xd0f   : > { %v1250_v27 = vadd.f32 %v1243_v17, %v1232_v14 }
 0xd11   : > { %v1245_v18 = vpop.permute.xlu0 %1244 }
 0xd12   : > { %v1259_v19 = vpop.permute.xlu1 %1258  ;;  %v1251_v35 = vadd.f32 %v1245_v18, %v1233_v15 }
 0xd13   : > { %v1267_v29 = vadd.f32 %v1259_v19, %v1249_v26 }
 0xd15   : > { %v1261_v20 = vpop.permute.xlu0 %1260 }
 0xd16   : > { %v1263_v21 = vpop.permute.xlu1 %1262  ;;  %v1268_v31 = vadd.f32 %v1261_v20, %v1250_v27 }
 0xd17   : > { %v1269_v39 = vadd.f32 %v1263_v21, %v1251_v35 }
 0xd19   : > { %v1271_v23 = vpop.permute.xlu0 %1270 }
 0xd1a   : > { %v1273_v28 = vpop.permute.xlu1 %1272  ;;  %v1279_v32 = vadd.f32 %v1271_v23, %v1267_v29 }
 0xd1b   : > { %v1280_v33 = vadd.f32 %v1273_v28, %v1268_v31 }
 0xd1d   : > { %v1275_v30 = vpop.permute.xlu0 %1274 }
 0xd1e   : > { %v1286_v34 = vpop.permute.xlu1 %1285  ;;  %v1281_v48 = vadd.f32 %v1275_v30, %v1269_v39 }
 0xd1f   : > { %v1294_v37 = vadd.f32 %v1286_v34, %v1279_v32 }
 0xd21   : > { %v1288_v36 = vpop.permute.xlu0 %1287  ;;  %v1299_v42 = vmul.f32 0.25, %v1294_v37  ;;  %v1314_v44 = vmul.f32 0.375, %v1294_v37  ;;  %v1297_v49 = vmul.f32 0.0625, %v1294_v37 }
 0xd22   : > { %v1295_v38 = vadd.f32 %v1288_v36, %v1280_v33  ;;  %v1290_v47 = vpop.permute.xlu1 %1289 }
 0xd23   : > { %v1305_v50 = vrot.slane %v1299_v42, 1  ;;  %v1320_v54 = vrot.slane %v1314_v44, 2  ;;  %v1296_v55 = vadd.f32 %v1290_v47, %v1281_v48  ;;  %v1329_v58 = vrot.slane %v1299_v42, 3  ;;  %v2245_v42 = vld [vmem:[%s2546_s29 + $0x98] sm:$0xff]  ;;  %v2247_v44 = vld [vmem:[%s2546_s29 + $0xa8] sm:$0xff] }
 0xd24   : > { %v1300_v45 = vmul.f32 0.25, %v1295_v38  ;;  %v1315_v46 = vmul.f32 0.375, %v1295_v38  ;;  %v1298_v51 = vmul.f32 0.0625, %v1295_v38  ;;  %v1342_v0 = vrot.slane %v1297_v49, 4 }
 0xd25   : > { %v1301_v60 = vmul.f32 0.25, %v1296_v55  ;;  %v1316_v61 = vmul.f32 0.375, %v1296_v55  ;;  %v1338_v4 = vmul.f32 0.0625, %v1296_v55 }
 0xd26   : > { %v1306_v52 = vrot.slane %v1300_v45, 1  ;;  %v1321_v53 = vrot.slane %v1315_v46, 2  ;;  %v1330_v56 = vrot.slane %v1300_v45, 3  ;;  %v1343_v62 = vrot.slane %v1298_v51, 4  ;;  %v2244_v45 = vld [vmem:[%s2546_s29 + $0x90] sm:$0xff]  ;;  %v2246_v46 = vld [vmem:[%s2546_s29 + $0xa0] sm:$0xff] }
 0xd27   : > { %v1308_v2 = vrot.slane %v1301_v60, 1  ;;  %v1323_v3 = vrot.slane %v1316_v61, 2  ;;  %v1332_v7 = vrot.slane %v1301_v60, 3  ;;  %v1345_v12 = vrot.slane %v1338_v4, 4 }
 0xd28   : > { %v1307_v57 = vsel %vm3425_vm13, %v1305_v50, %v1306_v52  ;;  %v1322_v63 = vsel %vm341_vm14, %v1320_v54, %v1321_v53  ;;  %v1331_v5 = vsel %vm351_vm15, %v1329_v58, %v1330_v56  ;;  %v1344_v9 = vsel %vm3427_vm11, %v1342_v0, %v1343_v62  ;;  %vm3428_vm13 = vmmov %vm3427_vm11 }
 0xd29   : > { %v1312_v59 = vadd.f32 %v1307_v57, %v1297_v49  ;;  %v1309_v6 = vsel %vm3426_vm12, %v1306_v52, %v1308_v2  ;;  %v1324_v11 = vsel %vm341_vm14, %v1321_v53, %v1323_v3  ;;  %v1333_v15 = vsel %vm351_vm15, %v1330_v56, %v1332_v7  ;;  %v2248_v52 = vld [vmem:[%s2546_s29 + $0xb0] sm:$0xff] }
 0xd2a   : > { %v1313_v10 = vadd.f32 %v1309_v6, %v1298_v51  ;;  %v1346_v17 = vsel %vm3428_vm13, %v1343_v62, %v1345_v12  ;;  %v1627_v49 = vadd.f32 %v2247_v44, %v2245_v42  ;;  %v1626_v50 = vadd.f32 %v2246_v46, %v2244_v45  ;;  %v2249_v51 = vld [vmem:[%s2546_s29 + $0xb8] sm:$0xff] }
 0xd2b   : > { %v1327_v1 = vadd.f32 %v1322_v63, %v1312_v59  ;;  %vm3429_vm11 = vcmask 162968   ;;  %vm3431_vm13 = vcmask 158872  }
 0xd2c   : > { %v1328_v14 = vadd.f32 %v1324_v11, %v1313_v10  ;;  %v1632_v54 = vadd.f32 %v2249_v51, %v1627_v49  ;;  %v1631_v55 = vadd.f32 %v2248_v52, %v1626_v50  ;;  %vm3430_vm12 = vmmov %vm3429_vm11 }
 0xd2d   : > { %v1336_v8 = vadd.f32 %v1331_v5, %v1327_v1 }
 0xd2e   : > { %v1337_v16 = vadd.f32 %v1333_v15, %v1328_v14  ;;  %v1634_v58 = vmul.f32 0.33333334, %v1632_v54  ;;  %v1633_v59 = vmul.f32 0.33333334, %v1631_v55 }
 0xd2f   : > { %v1349_v13 = vadd.f32 %v1344_v9, %v1336_v8 }
 0xd30   : > { %v1350_v18 = vadd.f32 %v1346_v17, %v1337_v16 }
 0xd31   : > { %1353 = vrot.lane.b32.xlu0 %v1349_v13, %s2425_s24 }
 0xd32   : > { %1355 = vrot.lane.b32.xlu1 %v1350_v18, %s2425_s24 }
 0xda3   : > { %v1354_v19 = vpop.permute.xlu0 %1353 }
 0xda4   : > { %1359 = vst.msk [vmem:[#allocation2 + $0x2] sm:$0xff] %vm157_vm0, %v1354_v19  ;;  %v1356_v20 = vpop.permute.xlu1 %1355 }
 0xda5   : > { %1361 = vst.msk [vmem:[#allocation2 - $0x2] sm:$0x4] %vm160_vm1, %v1354_v19 }
 0xda6   : > { %1362 = vst.msk [vmem:[#allocation2] sm:$0x2] %vm162_vm2, %v1354_v19 }
 0xda7   : > { %1360 = vst.msk [vmem:[#allocation2 + $0xa] sm:$0xff] %vm157_vm0, %v1356_v20 }
 0xda8   : > { %1363 = vst.msk [vmem:[#allocation2 + $0xc] sm:$0x40] %vm164_vm3, %v1356_v20 }
 0xda9   : > { %1364 = vst.msk [vmem:[#allocation2 + $0xe] sm:$0x20] %vm166_vm4, %v1356_v20 }
 0xdad   : > { %v1365_v21 = vld [vmem:[#allocation2] sm:$0xff] }
 0xdae   : > { %1371 = vrot.lane.b32.xlu0 %v1365_v21, %s2426_s16  ;;  %v1366_v26 = vld [vmem:[#allocation2 + $0x8] sm:$0xff] }
 0xdaf   : > { %1373 = vrot.lane.b32.xlu1 %v1366_v26, %s2426_s16 }
 0xdb0   : > { %v1367_v23 = vld [vmem:[#allocation2 + $0x10] sm:$0xf] }
 0xdb2   : > { %1375 = vrot.lane.b32.xlu0 %v1367_v23, %s2426_s16 }
 0xe20   : > { %v1372_v27 = vpop.permute.xlu0 %1371 }
 0xe21   : > { %1380 = vst.msk [vmem:[#allocation2] sm:$0xff] %vm183_vm5, %v1372_v27  ;;  %v1374_v29 = vpop.permute.xlu1 %1373 }
 0xe22   : > { %1381 = vst.msk [vmem:[#allocation2 + $0x8] sm:$0xff] %vm183_vm5, %v1374_v29 }
 0xe24   : > { %v1376_v28 = vpop.permute.xlu0 %1375 }
 0xe25   : > { %1382 = vst.msk [vmem:[#allocation2 + $0x10] sm:$0xf] %vm186_vm6, %v1376_v28 }
 0xe28   : > { %v1383_v30 = vld [vmem:[#allocation2] sm:$0xff] }
 0xe29   : > { %1389 = vrot.lane.b32.xlu1 %v1383_v30, %s2427_s25  ;;  %v1384_v32 = vld [vmem:[#allocation2 + $0x8] sm:$0xff] }
 0xe2a   : > { %1391 = vrot.lane.b32.xlu0 %v1384_v32, %s2427_s25 }
 0xe2c   : > { %v1385_v31 = vld [vmem:[#allocation2 + $0x10] sm:$0xf] }
 0xe2d   : > { %1393 = vrot.lane.b32.xlu1 %v1385_v31, %s2427_s25 }
 0xe9b   : > { %v1390_v33 = vpop.permute.xlu1 %1389 }
 0xe9c   : > { %1398 = vst.msk [vmem:[#allocation2] sm:$0xff] %vm203_vm7, %v1390_v33  ;;  %v1392_v34 = vpop.permute.xlu0 %1391 }
 0xe9d   : > { %1399 = vst.msk [vmem:[#allocation2 + $0x8] sm:$0xff] %vm203_vm7, %v1392_v34 }
 0xe9f   : > { %v1394_v35 = vpop.permute.xlu1 %1393 }
 0xea0   : > { %1400 = vst.msk [vmem:[#allocation2 + $0x10] sm:$0xf] %vm206_vm8, %v1394_v35 }
 0xea3   : > { %v1401_v36 = vld [vmem:[#allocation2] sm:$0xff] }
 0xea4   : > { %1407 = vrot.lane.b32.xlu0 %v1401_v36, %s2425_s24  ;;  %v1402_v37 = vld [vmem:[#allocation2 + $0x8] sm:$0xff] }
 0xea5   : > { %1409 = vrot.lane.b32.xlu1 %v1402_v37, %s2425_s24 }
 0xea7   : > { %v1403_v38 = vld [vmem:[#allocation2 + $0x10] sm:$0xf] }
 0xea8   : > { %1411 = vrot.lane.b32.xlu0 %v1403_v38, %s2425_s24 }
 0xf16   : > { %v1408_v39 = vpop.permute.xlu0 %1407 }
 0xf17   : > { %1416 = vst.msk [vmem:[#allocation2] sm:$0xff] %vm223_vm9, %v1408_v39  ;;  %v1410_v48 = vpop.permute.xlu1 %1409 }
 0xf18   : > { %1417 = vst.msk [vmem:[#allocation2 + $0x8] sm:$0xff] %vm223_vm9, %v1410_v48 }
 0xf1a   : > { %v1412_v47 = vpop.permute.xlu0 %1411 }
 0xf1b   : > { %1418 = vst.msk [vmem:[#allocation2 + $0x10] sm:$0xf] %vm226_vm10, %v1412_v47 }
 0xf1e   : > { %v1419_v53 = vld [vmem:[#allocation2] sm:$0xff] }
 0xf1f   : > { %1425 = vrot.lane.b32.xlu1 %v1419_v53, %s2428_s27  ;;  %v1420_v57 = vld [vmem:[#allocation2 + $0x8] sm:$0xff] }
 0xf20   : > { %1427 = vrot.lane.b32.xlu0 %v1420_v57, %s2428_s27 }
 0xf22   : > { %v1421_v56 = vld [vmem:[#allocation2 + $0x10] sm:$0xf] }
 0xf23   : > { %1429 = vrot.lane.b32.xlu1 %v1421_v56, %s2428_s27 }
 0xf24   : > { %1637 = vrot.lane.b32.xlu0 %v1633_v59, %s2425_s24 }
 0xf27   : > { %1639 = vrot.lane.b32.xlu1 %v1634_v58, %s2425_s24 }
 0xf91   : > { %v1426_v60 = vpop.permute.xlu1 %1425 }
 0xf92   : > { %1434 = vst.msk [vmem:[#allocation2] sm:$0xff] %vm3429_vm11, %v1426_v60  ;;  %v1428_v61 = vpop.permute.xlu0 %1427 }
 0xf93   : > { %1435 = vst.msk [vmem:[#allocation2 + $0x8] sm:$0xff] %vm3430_vm12, %v1428_v61  ;;  %vm3432_vm12 = vmmov %vm3429_vm11 }
 0xf95   : > { %v1430_v62 = vpop.permute.xlu1 %1429 }
 0xf96   : > { %1436 = vst.msk [vmem:[#allocation2 + $0x10] sm:$0xf] %vm3431_vm13, %v1430_v62  ;;  %v1638_v63 = vpop.permute.xlu0 %1637 }
 0xf99   : > { %v2842_v0 = vld [vmem:[#allocation2] sm:$0xff]  ;;  %v1640_v1 = vpop.permute.xlu1 %1639 }
 0xf9a   : > { %1645 = vst.msk [vmem:[#allocation2 - $0x2] sm:$0x4] %vm160_vm1, %v1638_v63  ;;  %v2848_v3 = vld [vmem:[#allocation2 + $0x8] sm:$0xff] }
 0xf9b   : > { %1646 = vst.msk [vmem:[#allocation2] sm:$0x2] %vm162_vm2, %v1638_v63 }
 0xf9c   : > { %1643 = vst.msk [vmem:[#allocation2 + $0x2] sm:$0xff] %vm157_vm0, %v1638_v63 }
 0xf9d   : > { %v2846_v2 = vld [vmem:[#allocation2 + $0x10] sm:$0xf] }
 0xf9e   : > { %1644 = vst.msk [vmem:[#allocation2 + $0xa] sm:$0xff] %vm157_vm0, %v1640_v1 }
 0xf9f   : > { %1647 = vst.msk [vmem:[#allocation2 + $0xc] sm:$0x40] %vm164_vm3, %v1640_v1 }
 0xfa0   : > { %1648 = vst.msk [vmem:[#allocation2 + $0xe] sm:$0x20] %vm166_vm4, %v1640_v1 }
 0xfa3   : > { %v1649_v4 = vld [vmem:[#allocation2] sm:$0xff] }
 0xfa4   : > { %1655 = vrot.lane.b32.xlu0 %v1649_v4, %s2426_s16 }
 0xfa5   : > { %v1650_v5 = vld [vmem:[#allocation2 + $0x8] sm:$0xff] }
 0xfa6   : > { %1657 = vrot.lane.b32.xlu1 %v1650_v5, %s2426_s16 }
 0xfa7   : > { %v1651_v6 = vld [vmem:[#allocation2 + $0x10] sm:$0xf] }
 0xfa8   : > { %1659 = vrot.lane.b32.xlu0 %v1651_v6, %s2426_s16 }
0x1016   : > { %v1656_v7 = vpop.permute.xlu0 %1655 }
0x1017   : > { %1664 = vst.msk [vmem:[#allocation2] sm:$0xff] %vm183_vm5, %v1656_v7 }
0x1018   : > { %v1658_v8 = vpop.permute.xlu1 %1657 }
0x1019   : > { %1665 = vst.msk [vmem:[#allocation2 + $0x8] sm:$0xff] %vm183_vm5, %v1658_v8 }
0x101a   : > { %v1660_v9 = vpop.permute.xlu0 %1659 }
0x101b   : > { %1666 = vst.msk [vmem:[#allocation2 + $0x10] sm:$0xf] %vm186_vm6, %v1660_v9 }
0x101e   : > { %v1667_v10 = vld [vmem:[#allocation2] sm:$0xff] }
0x101f   : > { %1673 = vrot.lane.b32.xlu1 %v1667_v10, %s2427_s25 }
0x1020   : > { %v1668_v11 = vld [vmem:[#allocation2 + $0x8] sm:$0xff] }
0x1021   : > { %1675 = vrot.lane.b32.xlu0 %v1668_v11, %s2427_s25 }
0x1022   : > { %v1669_v12 = vld [vmem:[#allocation2 + $0x10] sm:$0xf] }
0x1023   : > { %1677 = vrot.lane.b32.xlu1 %v1669_v12, %s2427_s25 }
0x1091   : > { %v1674_v14 = vpop.permute.xlu1 %1673 }
0x1092   : > { %1682 = vst.msk [vmem:[#allocation2] sm:$0xff] %vm203_vm7, %v1674_v14 }
0x1093   : > { %v1676_v13 = vpop.permute.xlu0 %1675 }
0x1094   : > { %1683 = vst.msk [vmem:[#allocation2 + $0x8] sm:$0xff] %vm203_vm7, %v1676_v13 }
0x1095   : > { %v1678_v15 = vpop.permute.xlu1 %1677 }
0x1096   : > { %1684 = vst.msk [vmem:[#allocation2 + $0x10] sm:$0xf] %vm206_vm8, %v1678_v15 }
0x1099   : > { %v1685_v17 = vld [vmem:[#allocation2] sm:$0xff] }
0x109a   : > { %1691 = vrot.lane.b32.xlu0 %v1685_v17, %s2425_s24 }
0x109b   : > { %v1686_v16 = vld [vmem:[#allocation2 + $0x8] sm:$0xff] }
0x109c   : > { %1693 = vrot.lane.b32.xlu1 %v1686_v16, %s2425_s24 }
0x109d   : > { %v1687_v18 = vld [vmem:[#allocation2 + $0x10] sm:$0xf] }
0x109e   : > { %1695 = vrot.lane.b32.xlu0 %v1687_v18, %s2425_s24 }
0x110c   : > { %v1692_v19 = vpop.permute.xlu0 %1691 }
0x110d   : > { %1700 = vst.msk [vmem:[#allocation2] sm:$0xff] %vm223_vm9, %v1692_v19 }
0x110e   : > { %v1694_v20 = vpop.permute.xlu1 %1693 }
0x110f   : > { %1701 = vst.msk [vmem:[#allocation2 + $0x8] sm:$0xff] %vm223_vm9, %v1694_v20 }
0x1110   : > { %v1696_v21 = vpop.permute.xlu0 %1695 }
0x1111   : > { %1702 = vst.msk [vmem:[#allocation2 + $0x10] sm:$0xf] %vm226_vm10, %v1696_v21 }
0x1114   : > { %v1703_v23 = vld [vmem:[#allocation2] sm:$0xff] }
0x1115   : > { %1709 = vrot.lane.b32.xlu1 %v1703_v23, %s2428_s27 }
0x1116   : > { %v1704_v26 = vld [vmem:[#allocation2 + $0x8] sm:$0xff] }
0x1117   : > { %1711 = vrot.lane.b32.xlu0 %v1704_v26, %s2428_s27 }
0x1118   : > { %v1705_v27 = vld [vmem:[#allocation2 + $0x10] sm:$0xf] }
0x1119   : > { %1713 = vrot.lane.b32.xlu1 %v1705_v27, %s2428_s27 }
0x1187   : > { %v1710_v29 = vpop.permute.xlu1 %1709 }
0x1188   : > { %1718 = vst.msk [vmem:[#allocation2] sm:$0xff] %vm3432_vm12, %v1710_v29 }
0x1189   : > { %v1712_v28 = vpop.permute.xlu0 %1711 }
0x118a   : > { %1719 = vst.msk [vmem:[#allocation2 + $0x8] sm:$0xff] %vm3429_vm11, %v1712_v28  ;;  %vm3433_vm11 = vcmask 1046528  }
0x118b   : > { %v1714_v30 = vpop.permute.xlu1 %1713  ;;  %vm3434_vm12 = vmmov %vm3433_vm11 }
0x118c   : > { %1720 = vst.msk [vmem:[#allocation2 + $0x10] sm:$0xf] %vm3431_vm13, %v1714_v30  ;;  %vm3435_vm13 = vcmask 1043456  }
0x118f   : > { %v1721_v32 = vld [vmem:[#allocation2] sm:$0xff] }
0x1190   : > { %v1727_v34 = vmul.f32 0.25, %v1721_v32  ;;  %v1745_v36 = vmul.f32 0.375, %v1721_v32  ;;  %v1724_v42 = vmul.f32 0.0625, %v1721_v32 }
0x1191   : > { %v1722_v31 = vld [vmem:[#allocation2 + $0x8] sm:$0xff] }
0x1192   : > { %v1728_v33 = vmul.f32 0.25, %v1722_v31  ;;  %1733 = vrot.lane.b32.xlu0 %v1727_v34, %s2429_s28  ;;  %v1746_v39 = vmul.f32 0.375, %v1722_v31  ;;  %v1725_v44 = vmul.f32 0.0625, %v1722_v31 }
0x1193   : > { %v1723_v35 = vld [vmem:[#allocation2 + $0x10] sm:$0xf] }
0x1194   : > { %1735 = vrot.lane.b32.xlu1 %v1728_v33, %s2429_s28  ;;  %v1729_v37 = vmul.f32 0.25, %v1723_v35  ;;  %v1747_v38 = vmul.f32 0.375, %v1723_v35  ;;  %v1726_v45 = vmul.f32 0.0625, %v1723_v35 }
0x1196   : > { %1737 = vrot.lane.b32.xlu0 %v1729_v37, %s2429_s28 }
0x1198   : > { %1751 = vrot.lane.b32.xlu1 %v1745_v36, %s2427_s25 }
0x119a   : > { %1753 = vrot.lane.b32.xlu0 %v1746_v39, %s2427_s25 }
0x119c   : > { %1755 = vrot.lane.b32.xlu1 %v1747_v38, %s2427_s25 }
0x119e   : > { %1763 = vrot.lane.b32.xlu0 %v1727_v34, %s2430_s30 }
0x11a0   : > { %1765 = vrot.lane.b32.xlu1 %v1728_v33, %s2430_s30 }
0x11a2   : > { %1767 = vrot.lane.b32.xlu0 %v1729_v37, %s2430_s30 }
0x11a4   : > { %1778 = vrot.lane.b32.xlu1 %v1724_v42, %s2426_s16 }
0x11a6   : > { %1780 = vrot.lane.b32.xlu0 %v1725_v44, %s2426_s16 }
0x11a8   : > { %1782 = vrot.lane.b32.xlu1 %v1726_v45, %s2426_s16 }
0x1204   : > { %v1734_v46 = vpop.permute.xlu0 %1733 }
0x1205   : > { %v1742_v52 = vadd.f32 %v1734_v46, %v1724_v42 }
0x1206   : > { %v1736_v47 = vpop.permute.xlu1 %1735 }
0x1207   : > { %v1743_v56 = vadd.f32 %v1736_v47, %v1725_v44 }
0x1208   : > { %v1738_v48 = vpop.permute.xlu0 %1737 }
0x1209   : > { %v1744_v57 = vadd.f32 %v1738_v48, %v1726_v45 }
0x120a   : > { %v1752_v49 = vpop.permute.xlu1 %1751 }
0x120b   : > { %v1760_v55 = vadd.f32 %v1752_v49, %v1742_v52 }
0x120c   : > { %v1754_v50 = vpop.permute.xlu0 %1753 }
0x120d   : > { %v1761_v61 = vadd.f32 %v1754_v50, %v1743_v56 }
0x120e   : > { %v1756_v51 = vpop.permute.xlu1 %1755 }
0x120f   : > { %v1762_v62 = vadd.f32 %v1756_v51, %v1744_v57 }
0x1210   : > { %v1764_v53 = vpop.permute.xlu0 %1763 }
0x1211   : > { %v1772_v58 = vadd.f32 %v1764_v53, %v1760_v55 }
0x1212   : > { %v1766_v54 = vpop.permute.xlu1 %1765 }
0x1213   : > { %v1773_v1 = vadd.f32 %v1766_v54, %v1761_v61 }
0x1214   : > { %v1768_v59 = vpop.permute.xlu0 %1767 }
0x1215   : > { %v1774_v4 = vadd.f32 %v1768_v59, %v1762_v62 }
0x1216   : > { %v1779_v60 = vpop.permute.xlu1 %1778 }
0x1217   : > { %v1787_v63 = vadd.f32 %v1779_v60, %v1772_v58 }
0x1218   : > { %v1781_v5 = vpop.permute.xlu0 %1780 }
0x1219   : > { %v1792_v7 = vmul.f32 0.25, %v1787_v63  ;;  %v1788_v8 = vadd.f32 %v1781_v5, %v1773_v1  ;;  %v1807_v10 = vmul.f32 0.375, %v1787_v63  ;;  %v1790_v19 = vmul.f32 0.0625, %v1787_v63 }
0x121a   : > { %v1783_v6 = vpop.permute.xlu1 %1782 }
0x121b   : > { %v1789_v9 = vadd.f32 %v1783_v6, %v1774_v4  ;;  %v1793_v11 = vmul.f32 0.25, %v1788_v8  ;;  %v1808_v12 = vmul.f32 0.375, %v1788_v8  ;;  %v1798_v15 = vrot.slane %v1792_v7, 1 }
0x121c   : > { %v1791_v16 = vmul.f32 0.0625, %v1788_v8  ;;  %v1813_v26 = vrot.slane %v1807_v10, 2  ;;  %v1822_v32 = vrot.slane %v1792_v7, 3  ;;  %v1835_v39 = vrot.slane %v1790_v19, 4 }
0x121d   : > { %v1794_v13 = vmul.f32 0.25, %v1789_v9  ;;  %v1809_v14 = vmul.f32 0.375, %v1789_v9  ;;  %v1799_v17 = vrot.slane %v1793_v11, 1  ;;  %v1814_v18 = vrot.slane %v1808_v12, 2 }
0x121e   : > { %v1831_v23 = vmul.f32 0.0625, %v1789_v9  ;;  %v1823_v28 = vrot.slane %v1793_v11, 3  ;;  %v1836_v34 = vrot.slane %v1791_v16, 4  ;;  %v465_v7 = vmul.f32 -2.0, %v2656_v25 }
0x121f   : > { %v1801_v20 = vrot.slane %v1794_v13, 1  ;;  %v1816_v21 = vrot.slane %v1809_v14, 2  ;;  %v1800_v27 = vsel %vm3433_vm11, %v1798_v15, %v1799_v17  ;;  %v1825_v31 = vrot.slane %v1794_v13, 3  ;;  %vm3436_vm11 = vmmov %vm3435_vm13 }
0x1220   : > { %v1805_v29 = vadd.f32 %v1800_v27, %v1790_v19  ;;  %v1815_v33 = vsel %vm341_vm14, %v1813_v26, %v1814_v18  ;;  %v1838_v38 = vrot.slane %v1831_v23, 4  ;;  %v1824_v44 = vsel %vm351_vm15, %v1822_v32, %v1823_v28 }
0x1221   : > { %v1802_v30 = vsel %vm3434_vm12, %v1799_v17, %v1801_v20  ;;  %v1817_v37 = vsel %vm341_vm14, %v1814_v18, %v1816_v21  ;;  %v1826_v46 = vsel %vm351_vm15, %v1823_v28, %v1825_v31  ;;  %v1837_v47 = vsel %vm3435_vm13, %v1835_v39, %v1836_v34 }
0x1222   : > { %v1806_v35 = vadd.f32 %v1802_v30, %v1791_v16  ;;  %v1820_v36 = vadd.f32 %v1815_v33, %v1805_v29  ;;  %v1839_v50 = vsel %vm3436_vm11, %v1836_v34, %v1838_v38  ;;  %v464_v9 = vmul.f32 -2.0, %v2650_v22 }
0x1223   : > { %v466_v10 = vmul.f32 -2.0, %v2654_v24  ;;  %v549_v11 = vmul.f32 4.0, %v2656_v25  ;;  %v548_v12 = vmul.f32 4.0, %v2650_v22  ;;  %v566_v13 = vmul.f32 6.0, %v2650_v22 }
0x1224   : > { %v1821_v42 = vadd.f32 %v1817_v37, %v1806_v35  ;;  %v1829_v45 = vadd.f32 %v1824_v44, %v1820_v36  ;;  %v550_v14 = vmul.f32 4.0, %v2654_v24  ;;  %v568_v15 = vmul.f32 6.0, %v2654_v24 }
0x1225   : > { %v567_v16 = vmul.f32 6.0, %v2656_v25  ;;  %v947_v17 = vmul.f32 -2.0, %v2746_v40  ;;  %v949_v18 = vmul.f32 -2.0, %v2753_v43  ;;  %v948_v19 = vmul.f32 -2.0, %v2748_v41 }
0x1226   : > { %v1830_v48 = vadd.f32 %v1826_v46, %v1821_v42  ;;  %v1842_v49 = vadd.f32 %v1837_v47, %v1829_v45  ;;  %v2954_v20 = vmul.f32 4.0, %v2748_v41  ;;  %v2960_v21 = vmul.f32 4.0, %v2746_v40 }
0x1227   : > { %v2967_v23 = vmul.f32 4.0, %v2753_v43  ;;  %v1049_v38 = vmul.f32 6.0, %v2746_v40  ;;  %v1050_v44 = vmul.f32 6.0, %v2748_v41  ;;  %vm3449_vm13 = vcmask 158872  }
0x1228   : > { %v1843_v51 = vadd.f32 %v1839_v50, %v1830_v48  ;;  %1846 = vrot.lane.b32.xlu0 %v1842_v49, %s2425_s24  ;;  %v1051_v50 = vmul.f32 6.0, %v2753_v43 }
0x122a   : > { %1848 = vrot.lane.b32.xlu1 %v1843_v51, %s2425_s24 }
0x129a   : > { %v1847_v52 = vpop.permute.xlu0 %1846 }
0x129b   : > { %1852 = vst.msk [vmem:[#allocation2 + $0x2] sm:$0xff] %vm157_vm0, %v1847_v52 }
0x129c   : > { %1854 = vst.msk [vmem:[#allocation2 - $0x2] sm:$0x4] %vm160_vm1, %v1847_v52  ;;  %v1849_v53 = vpop.permute.xlu1 %1848 }
0x129d   : > { %1855 = vst.msk [vmem:[#allocation2] sm:$0x2] %vm162_vm2, %v1847_v52  ;;  %vm3439_vm2 = vmmov %vm3434_vm12 }
0x129e   : > { %1853 = vst.msk [vmem:[#allocation2 + $0xa] sm:$0xff] %vm157_vm0, %v1849_v53  ;;  %vm3437_vm0 = vmmov %vm3436_vm11 }
0x129f   : > { %1856 = vst.msk [vmem:[#allocation2 + $0xc] sm:$0x40] %vm164_vm3, %v1849_v53  ;;  %vm3438_vm1 = vmmov %vm3437_vm0 }
0x12a0   : > { %1857 = vst.msk [vmem:[#allocation2 + $0xe] sm:$0x20] %vm166_vm4, %v1849_v53  ;;  %vm3440_vm3 = vmmov %vm3439_vm2 }
0x12a1   : > { %vm3441_vm4 = vmmov %vm3437_vm0 }
0x12a2   : > { %vm3450_vm11 = vmmov %vm3437_vm0 }
0x12a4   : > { %v1858_v54 = vld [vmem:[#allocation2] sm:$0xff] }
0x12a5   : > { %1864 = vrot.lane.b32.xlu0 %v1858_v54, %s2426_s16  ;;  %v1859_v55 = vld [vmem:[#allocation2 + $0x8] sm:$0xff]  ;;  %v1440_v54 = vmul.f32 -2.0, %v2842_v0 }
0x12a6   : > { %1866 = vrot.lane.b32.xlu1 %v1859_v55, %s2426_s16  ;;  %v3000_v55 = vmul.f32 4.0, %v2842_v0 }
0x12a7   : > { %v1860_v56 = vld [vmem:[#allocation2 + $0x10] sm:$0xf] }
0x12a9   : > { %1868 = vrot.lane.b32.xlu0 %v1860_v56, %s2426_s16 }
0x1317   : > { %v1865_v57 = vpop.permute.xlu0 %1864 }
0x1318   : > { %1873 = vst.msk [vmem:[#allocation2] sm:$0xff] %vm183_vm5, %v1865_v57  ;;  %v1867_v58 = vpop.permute.xlu1 %1866 }
0x1319   : > { %1874 = vst.msk [vmem:[#allocation2 + $0x8] sm:$0xff] %vm183_vm5, %v1867_v58  ;;  %v1441_v58 = vmul.f32 -2.0, %v2848_v3  ;;  %vm3442_vm5 = vmmov %vm3437_vm0 }
0x131b   : > { %v1869_v59 = vpop.permute.xlu0 %1868 }
0x131c   : > { %1875 = vst.msk [vmem:[#allocation2 + $0x10] sm:$0xf] %vm186_vm6, %v1869_v59  ;;  %v1442_v59 = vmul.f32 -2.0, %v2846_v2  ;;  %vm3443_vm6 = vmmov %vm3437_vm0 }
0x131f   : > { %v1876_v60 = vld [vmem:[#allocation2] sm:$0xff] }
0x1320   : > { %1882 = vrot.lane.b32.xlu1 %v1876_v60, %s2427_s25  ;;  %v1877_v61 = vld [vmem:[#allocation2 + $0x8] sm:$0xff] }
0x1321   : > { %1884 = vrot.lane.b32.xlu0 %v1877_v61, %s2427_s25 }
0x1323   : > { %v1878_v62 = vld [vmem:[#allocation2 + $0x10] sm:$0xf] }
0x1324   : > { %1886 = vrot.lane.b32.xlu1 %v1878_v62, %s2427_s25 }
0x1392   : > { %v1883_v63 = vpop.permute.xlu1 %1882 }
0x1393   : > { %v1885_v1 = vpop.permute.xlu0 %1884  ;;  %1891 = vst.msk [vmem:[#allocation2] sm:$0xff] %vm203_vm7, %v1883_v63 }
0x1394   : > { %1892 = vst.msk [vmem:[#allocation2 + $0x8] sm:$0xff] %vm203_vm7, %v1885_v1  ;;  %vm3444_vm7 = vmmov %vm3437_vm0 }
0x1396   : > { %v1887_v4 = vpop.permute.xlu1 %1886 }
0x1397   : > { %1893 = vst.msk [vmem:[#allocation2 + $0x10] sm:$0xf] %vm206_vm8, %v1887_v4  ;;  %vm3445_vm8 = vmmov %vm3439_vm2 }
0x139a   : > { %v1894_v5 = vld [vmem:[#allocation2] sm:$0xff] }
0x139b   : > { %v1895_v6 = vld [vmem:[#allocation2 + $0x8] sm:$0xff]  ;;  %1900 = vrot.lane.b32.xlu0 %v1894_v5, %s2425_s24 }
0x139c   : > { %1902 = vrot.lane.b32.xlu1 %v1895_v6, %s2425_s24 }
0x139e   : > { %v1896_v8 = vld [vmem:[#allocation2 + $0x10] sm:$0xf] }
0x139f   : > { %1904 = vrot.lane.b32.xlu0 %v1896_v8, %s2425_s24 }
0x13a0   : > { %472 = vrot.lane.b32.xlu1 %v465_v7, %s2427_s25 }
0x13a3   : > { %470 = vrot.lane.b32.xlu0 %v464_v9, %s2427_s25 }
0x13a4   : > { %485 = vrot.lane.b32.xlu1 %v2650_v22, %s2426_s16 }
0x13a7   : > { %474 = vrot.lane.b32.xlu0 %v466_v10, %s2427_s25 }
0x13a8   : > { %489 = vrot.lane.b32.xlu1 %v2654_v24, %s2426_s16 }
0x13ab   : > { %487 = vrot.lane.b32.xlu0 %v2656_v25, %s2426_s16 }
0x13ac   : > { %556 = vrot.lane.b32.xlu1 %v549_v11, %s2429_s28 }
0x13af   : > { %554 = vrot.lane.b32.xlu0 %v548_v12, %s2429_s28 }
0x13b0   : > { %572 = vrot.lane.b32.xlu1 %v566_v13, %s2427_s25 }
0x13b3   : > { %558 = vrot.lane.b32.xlu0 %v550_v14, %s2429_s28 }
0x13b4   : > { %576 = vrot.lane.b32.xlu1 %v568_v15, %s2427_s25 }
0x13b7   : > { %574 = vrot.lane.b32.xlu0 %v567_v16, %s2427_s25 }
0x13b8   : > { %586 = vrot.lane.b32.xlu1 %v549_v11, %s2430_s30 }
0x13bb   : > { %584 = vrot.lane.b32.xlu0 %v548_v12, %s2430_s30 }
0x13bc   : > { %953 = vrot.lane.b32.xlu1 %v947_v17, %s2427_s25 }
0x13bf   : > { %588 = vrot.lane.b32.xlu0 %v550_v14, %s2430_s30 }
0x13c0   : > { %957 = vrot.lane.b32.xlu1 %v949_v18, %s2427_s25 }
0x13c3   : > { %955 = vrot.lane.b32.xlu0 %v948_v19, %s2427_s25 }
0x13c4   : > { %1039 = vrot.lane.b32.xlu1 %v2954_v20, %s2429_s28 }
0x13c7   : > { %1037 = vrot.lane.b32.xlu0 %v2960_v21, %s2429_s28 }
0x13c8   : > { %968 = vrot.lane.b32.xlu1 %v2746_v40, %s2426_s16 }
0x13cb   : > { %1041 = vrot.lane.b32.xlu0 %v2967_v23, %s2429_s28 }
0x13cc   : > { %972 = vrot.lane.b32.xlu1 %v2753_v43, %s2426_s16 }
0x13cf   : > { %970 = vrot.lane.b32.xlu0 %v2748_v41, %s2426_s16 }
0x140d   : > { %v1901_v26 = vpop.permute.xlu0 %1900 }
0x140e   : > { %1909 = vst.msk [vmem:[#allocation2] sm:$0xff] %vm223_vm9, %v1901_v26  ;;  %v1903_v27 = vpop.permute.xlu1 %1902 }
0x140f   : > { %1910 = vst.msk [vmem:[#allocation2 + $0x8] sm:$0xff] %vm223_vm9, %v1903_v27  ;;  %vm3446_vm9 = vmmov %vm3439_vm2 }
0x1411   : > { %v1905_v28 = vpop.permute.xlu0 %1904 }
0x1412   : > { %1911 = vst.msk [vmem:[#allocation2 + $0x10] sm:$0xf] %vm226_vm10, %v1905_v28  ;;  %v473_v29 = vpop.permute.xlu1 %472  ;;  %vm3447_vm10 = vcmask 162968  }
0x1413   : > { %v480_v45 = vadd.f32 %v473_v29, %v2656_v25  ;;  %vm3448_vm12 = vmmov %vm3447_vm10 }
0x1415   : > { %v471_v30 = vpop.permute.xlu0 %470  ;;  %v1912_v31 = vld [vmem:[#allocation2] sm:$0xff] }
0x1416   : > { %v479_v32 = vadd.f32 %v471_v30, %v2650_v22  ;;  %v2979_v33 = vpop.permute.xlu1 %485  ;;  %1918 = vrot.lane.b32.xlu1 %v1912_v31, %s2428_s27  ;;  %v1913_v34 = vld [vmem:[#allocation2 + $0x8] sm:$0xff] }
0x1417   : > { %1920 = vrot.lane.b32.xlu0 %v1913_v34, %s2428_s27 }
0x1418   : > { %v494_v35 = vadd.f32 %v2979_v33, %v479_v32 }
0x1419   : > { %v475_v36 = vpop.permute.xlu0 %474  ;;  %v1914_v37 = vld [vmem:[#allocation2 + $0x10] sm:$0xf] }
0x141a   : > { %v481_v39 = vadd.f32 %v475_v36, %v2654_v24  ;;  %v2986_v42 = vpop.permute.xlu1 %489  ;;  %1922 = vrot.lane.b32.xlu1 %v1914_v37, %s2428_s27  ;;  %v497_v46 = vmul.f32 4.0, %v494_v35  ;;  %v512_v47 = vmul.f32 6.0, %v494_v35  ;;  %v539_v56 = vrot.slane %v494_v35, 4 }
0x141b   : > { %1055 = vrot.lane.b32.xlu0 %v1049_v38, %s2427_s25 }
0x141c   : > { %v496_v48 = vadd.f32 %v2986_v42, %v481_v39  ;;  %v503_v60 = vrot.slane %v497_v46, 1  ;;  %v518_v61 = vrot.slane %v512_v47, 2  ;;  %v527_v62 = vrot.slane %v497_v46, 3 }
0x141d   : > { %v2993_v49 = vpop.permute.xlu0 %487  ;;  %v3022_v39 = vmul.f32 4.0, %v2848_v3 }
0x141e   : > { %v499_v51 = vmul.f32 4.0, %v496_v48  ;;  %v495_v52 = vadd.f32 %v2993_v49, %v480_v45  ;;  %v557_v53 = vpop.permute.xlu1 %556  ;;  %1057 = vrot.lane.b32.xlu1 %v1050_v44, %s2427_s25  ;;  %v514_v57 = vmul.f32 6.0, %v496_v48  ;;  %v542_v4 = vrot.slane %v496_v48, 4 }
0x141f   : > { %1059 = vrot.lane.b32.xlu0 %v1051_v50, %s2427_s25 }
0x1420   : > { %v498_v63 = vmul.f32 4.0, %v495_v52  ;;  %v506_v1 = vrot.slane %v499_v51, 1  ;;  %v513_v5 = vmul.f32 6.0, %v495_v52  ;;  %v540_v6 = vrot.slane %v495_v52, 4 }
0x1421   : > { %v555_v7 = vpop.permute.xlu0 %554  ;;  %v530_v8 = vrot.slane %v499_v51, 3  ;;  %v521_v13 = vrot.slane %v514_v57, 2 }
0x1422   : > { %v504_v9 = vrot.slane %v498_v63, 1  ;;  %v528_v10 = vrot.slane %v498_v63, 3  ;;  %v563_v11 = vadd.f32 %v555_v7, %v2650_v22  ;;  %v573_v12 = vpop.permute.xlu1 %572  ;;  %1446 = vrot.lane.b32.xlu1 %v1440_v54, %s2427_s25  ;;  %v519_v14 = vrot.slane %v513_v5, 2 }
0x1423   : > { %v543_v15 = vsel %vm3437_vm0, %v540_v6, %v542_v4  ;;  %1448 = vrot.lane.b32.xlu0 %v1441_v58, %s2427_s25  ;;  %v541_v16 = vsel %vm3438_vm1, %v539_v56, %v540_v6 }
0x1424   : > { %v505_v17 = vsel %vm3439_vm2, %v503_v60, %v504_v9  ;;  %v507_v18 = vsel %vm3440_vm3, %v504_v9, %v506_v1  ;;  %v531_v19 = vsel %vm351_vm15, %v528_v10, %v530_v8  ;;  %v581_v26 = vadd.f32 %v573_v12, %v563_v11  ;;  %vm3451_vm3 = vmmov %vm3439_vm2 }
0x1425   : > { %v510_v27 = vadd.f32 %v505_v17, %v494_v35  ;;  %v511_v22 = vadd.f32 %v507_v18, %v495_v52  ;;  %v520_v28 = vsel %vm341_vm14, %v518_v61, %v519_v14  ;;  %v522_v29 = vsel %vm341_vm14, %v519_v14, %v521_v13  ;;  %v559_v30 = vpop.permute.xlu0 %558 }
0x1426   : > { %v565_v31 = vadd.f32 %v559_v30, %v2654_v24  ;;  %v577_v32 = vpop.permute.xlu1 %576  ;;  %1450 = vrot.lane.b32.xlu1 %v1442_v59, %s2427_s25  ;;  %v529_v34 = vsel %vm351_vm15, %v527_v62, %v528_v10  ;;  %v564_v35 = vadd.f32 %v557_v53, %v2656_v25  ;;  %v3025_v24 = vmul.f32 4.0, %v2846_v2 }
0x1427   : > { %v525_v36 = vadd.f32 %v520_v28, %v510_v27  ;;  %v526_v37 = vadd.f32 %v522_v29, %v511_v22  ;;  %1530 = vrot.lane.b32.xlu0 %v3000_v55, %s2429_s28  ;;  %v1542_v11 = vmul.f32 6.0, %v2842_v0  ;;  %v1543_v13 = vmul.f32 6.0, %v2848_v3 }
0x1428   : > { %v583_v38 = vadd.f32 %v577_v32, %v565_v31 }
0x1429   : > { %v535_v44 = vadd.f32 %v531_v19, %v526_v37  ;;  %v575_v45 = vpop.permute.xlu0 %574  ;;  %v534_v46 = vadd.f32 %v529_v34, %v525_v36 }
0x142a   : > { %v582_v47 = vadd.f32 %v575_v45, %v564_v35  ;;  %v587_v48 = vpop.permute.xlu1 %586  ;;  %1532 = vrot.lane.b32.xlu1 %v3022_v39, %s2429_s28 }
0x142b   : > { %1534 = vrot.lane.b32.xlu0 %v3025_v24, %s2429_s28  ;;  %v546_v50 = vadd.f32 %v541_v16, %v534_v46  ;;  %v547_v25 = vadd.f32 %v543_v15, %v535_v44 }
0x142c   : > { %v594_v51 = vadd.f32 %v587_v48, %v582_v47 }
0x142d   : > { %v585_v52 = vpop.permute.xlu0 %584 }
0x142e   : > { %v597_v53 = vadd.f32 %v594_v51, %v2993_v49  ;;  %v593_v54 = vadd.f32 %v585_v52, %v581_v26  ;;  %v954_v56 = vpop.permute.xlu1 %953  ;;  %1067 = vrot.lane.b32.xlu1 %v2960_v21, %s2430_s30  ;;  %v1544_v26 = vmul.f32 6.0, %v2846_v2 }
0x142f   : > { %1069 = vrot.lane.b32.xlu0 %v2954_v20, %s2430_s30  ;;  %v962_v14 = vadd.f32 %v954_v56, %v2746_v40 }
0x1430   : > { %v600_v57 = vmul.f32 -2.0, %v597_v53  ;;  %v596_v58 = vadd.f32 %v593_v54, %v2979_v33  ;;  %v618_v60 = vrot.slane %v597_v53, 4 }
0x1431   : > { %v589_v59 = vpop.permute.xlu0 %588 }
0x1432   : > { %v599_v61 = vmul.f32 -2.0, %v596_v58  ;;  %v617_v62 = vrot.slane %v596_v58, 4  ;;  %v595_v63 = vadd.f32 %v589_v59, %v583_v38  ;;  %v958_v1 = vpop.permute.xlu1 %957  ;;  %1071 = vrot.lane.b32.xlu1 %v2967_v23, %s2430_s30  ;;  %v606_v49 = vrot.slane %v600_v57, 2 }
0x1433   : > { %1461 = vrot.lane.b32.xlu0 %v2842_v0, %s2426_s16  ;;  %v964_v28 = vadd.f32 %v958_v1, %v2753_v43 }
0x1434   : > { %v605_v21 = vrot.slane %v599_v61, 2  ;;  %v619_v4 = vsel %vm3441_vm4, %v617_v62, %v618_v60  ;;  %v598_v20 = vadd.f32 %v595_v63, %v2986_v42 }
0x1435   : > { %v956_v5 = vpop.permute.xlu0 %955 }
0x1436   : > { %v607_v33 = vsel %vm341_vm14, %v605_v21, %v606_v49  ;;  %v601_v6 = vmul.f32 -2.0, %v598_v20  ;;  %v620_v7 = vrot.slane %v598_v20, 4  ;;  %v3044_v8 = vpop.permute.xlu1 %1039  ;;  %1463 = vrot.lane.b32.xlu1 %v2848_v3, %s2426_s16  ;;  %v963_v31 = vadd.f32 %v956_v5, %v2748_v41 }
0x1437   : > { %v612_v23 = vadd.f32 %v607_v33, %v596_v58  ;;  %1465 = vrot.lane.b32.xlu0 %v2846_v2, %s2426_s16 }
0x1438   : > { %v608_v9 = vrot.slane %v601_v6, 2  ;;  %v621_v10 = vsel %vm3442_vm5, %v618_v60, %v620_v7  ;;  %vm3452_vm5 = vmmov %vm3437_vm0 }
0x1439   : > { %v624_v42 = vadd.f32 %v619_v4, %v612_v23  ;;  %v3052_v12 = vpop.permute.xlu0 %1037 }
0x143a   : > { %v609_v15 = vsel %vm341_vm14, %v606_v49, %v608_v9  ;;  %v3057_v16 = vpop.permute.xlu1 %968  ;;  %1548 = vrot.lane.b32.xlu1 %v1542_v11, %s2427_s25 }
0x143b   : > { %v3060_v17 = vadd.f32 %v624_v42, %v546_v50  ;;  %v613_v18 = vadd.f32 %v609_v15, %v597_v53  ;;  %1550 = vrot.lane.b32.xlu0 %v1543_v13, %s2427_s25  ;;  %v977_v19 = vadd.f32 %v3057_v16, %v962_v14 }
0x143d   : > { %v625_v27 = vadd.f32 %v621_v10, %v613_v18  ;;  %v3065_v22 = vpop.permute.xlu0 %1041  ;;  %v980_v32 = vmul.f32 4.0, %v977_v19  ;;  %v995_v34 = vmul.f32 6.0, %v977_v19  ;;  %v1022_v46 = vrot.slane %v977_v19, 4 }
0x143e   : > { %v3068_v29 = vpop.permute.xlu1 %972  ;;  %1552 = vrot.lane.b32.xlu1 %v1544_v26, %s2427_s25 }
0x143f   : > { %v3071_v30 = vadd.f32 %v625_v27, %v547_v25  ;;  %1560 = vrot.lane.b32.xlu0 %v3000_v55, %s2430_s30  ;;  %v979_v36 = vadd.f32 %v3068_v29, %v964_v28  ;;  %v986_v45 = vrot.slane %v980_v32, 1  ;;  %v1001_v55 = vrot.slane %v995_v34, 2 }
0x1440   : > { %v1010_v48 = vrot.slane %v980_v32, 3 }
0x1441   : > { %v3077_v37 = vpop.permute.xlu0 %970  ;;  %v982_v35 = vmul.f32 4.0, %v979_v36  ;;  %v997_v44 = vmul.f32 6.0, %v979_v36  ;;  %v1025_v50 = vrot.slane %v979_v36, 4 }
0x1442   : > { %v978_v38 = vadd.f32 %v3077_v37, %v963_v31  ;;  %1562 = vrot.lane.b32.xlu1 %v3022_v39, %s2430_s30 }
0x1443   : > { %1564 = vrot.lane.b32.xlu0 %v3025_v24, %s2430_s30  ;;  %v989_v52 = vrot.slane %v982_v35, 1  ;;  %v1013_v53 = vrot.slane %v982_v35, 3  ;;  %v1004_v57 = vrot.slane %v997_v44, 2  ;;  %v1046_v44 = vadd.f32 %v3052_v12, %v2746_v40 }
0x1444   : > { %v981_v47 = vmul.f32 4.0, %v978_v38  ;;  %v996_v25 = vmul.f32 6.0, %v978_v38  ;;  %v1023_v51 = vrot.slane %v978_v38, 4 }
0x1446   : > { %v987_v54 = vrot.slane %v981_v47, 1  ;;  %v1011_v56 = vrot.slane %v981_v47, 3  ;;  %v1002_v58 = vrot.slane %v996_v25, 2  ;;  %v1026_v39 = vsel %vm3443_vm6, %v1023_v51, %v1025_v50  ;;  %vm3453_vm6 = vmmov %vm3437_vm0 }
0x1447   : > { %v1024_v59 = vsel %vm3444_vm7, %v1022_v46, %v1023_v51  ;;  %v1048_v51 = vadd.f32 %v3065_v22, %v2753_v43  ;;  %vm3454_vm7 = vmmov %vm3437_vm0 }
0x1448   : > { %v988_v24 = vsel %vm3445_vm8, %v986_v45, %v987_v54  ;;  %v990_v60 = vsel %vm3446_vm9, %v987_v54, %v989_v52  ;;  %v1014_v61 = vsel %vm351_vm15, %v1011_v56, %v1013_v53  ;;  %v1012_v62 = vsel %vm351_vm15, %v1010_v48, %v1011_v56  ;;  %vm3455_vm8 = vmmov %vm3437_vm0 }
0x1449   : > { %v993_v63 = vadd.f32 %v988_v24, %v977_v19  ;;  %v994_v1 = vadd.f32 %v990_v60, %v978_v38  ;;  %v1003_v49 = vsel %vm341_vm14, %v1001_v55, %v1002_v58  ;;  %v1005_v21 = vsel %vm341_vm14, %v1002_v58, %v1004_v57 }
0x144a   : > { %v1047_v55 = vadd.f32 %v3044_v8, %v2748_v41 }
0x144b   : > { %v1008_v4 = vadd.f32 %v1003_v49, %v993_v63  ;;  %v1009_v20 = vadd.f32 %v1005_v21, %v994_v1 }
0x144d   : > { %v1018_v5 = vadd.f32 %v1014_v61, %v1009_v20  ;;  %v1017_v33 = vadd.f32 %v1012_v62, %v1008_v4 }
0x144f   : > { %v3092_v6 = vadd.f32 %v1024_v59, %v1017_v33  ;;  %v3094_v7 = vadd.f32 %v1026_v39, %v1018_v5 }
0x1488   : > { %v1919_v23 = vpop.permute.xlu1 %1918 }
0x1489   : > { %v1921_v9 = vpop.permute.xlu0 %1920  ;;  %1927 = vst.msk [vmem:[#allocation2] sm:$0xff] %vm3447_vm10, %v1919_v23 }
0x148a   : > { %1928 = vst.msk [vmem:[#allocation2 + $0x8] sm:$0xff] %vm3448_vm12, %v1921_v9  ;;  %vm3456_vm12 = vmmov %vm3439_vm2 }
0x148c   : > { %v1923_v10 = vpop.permute.xlu1 %1922 }
0x148d   : > { %v1056_v11 = vpop.permute.xlu0 %1055  ;;  %1929 = vst.msk [vmem:[#allocation2 + $0x10] sm:$0xf] %vm3449_vm13, %v1923_v10  ;;  %vm3457_vm13 = vmmov %vm3439_vm2 }
0x148e   : > { %v1064_v46 = vadd.f32 %v1056_v11, %v1046_v44 }
0x1490   : > { %v1058_v42 = vpop.permute.xlu1 %1057  ;;  %v3099_v13 = vld [vmem:[#allocation2] sm:$0xff] }
0x1491   : > { %v1060_v14 = vpop.permute.xlu0 %1059  ;;  %v3101_v15 = vld [vmem:[#allocation2 + $0x8] sm:$0xff]  ;;  %1954 = vrot.lane.b32.xlu1 %v3099_v13, %s2426_s16  ;;  %v1933_v19 = vmul.f32 -2.0, %v3099_v13  ;;  %v2017_v36 = vmul.f32 4.0, %v3099_v13  ;;  %v1065_v48 = vadd.f32 %v1058_v42, %v1047_v55  ;;  %v2035_v25 = vmul.f32 6.0, %v3099_v13 }
0x1492   : > { %1956 = vrot.lane.b32.xlu0 %v3101_v15, %s2426_s16  ;;  %v1934_v28 = vmul.f32 -2.0, %v3101_v15  ;;  %v2018_v38 = vmul.f32 4.0, %v3101_v15  ;;  %v1066_v41 = vadd.f32 %v1060_v14, %v1048_v51  ;;  %v2036_v53 = vmul.f32 6.0, %v3101_v15 }
0x1494   : > { %v1447_v18 = vpop.permute.xlu1 %1446  ;;  %v3108_v26 = vld [vmem:[#allocation2 + $0x10] sm:$0xf] }
0x1495   : > { %v1449_v27 = vpop.permute.xlu0 %1448  ;;  %1958 = vrot.lane.b32.xlu1 %v3108_v26, %s2426_s16  ;;  %v1935_v32 = vmul.f32 -2.0, %v3108_v26  ;;  %v2019_v47 = vmul.f32 4.0, %v3108_v26  ;;  %v2037_v57 = vmul.f32 6.0, %v3108_v26 }
0x1496   : > { %1939 = vrot.lane.b32.xlu0 %v1933_v19, %s2427_s25 }
0x1498   : > { %v1451_v31 = vpop.permute.xlu1 %1450 }
0x1499   : > { %v3115_v34 = vpop.permute.xlu0 %1530  ;;  %1941 = vrot.lane.b32.xlu1 %v1934_v28, %s2427_s25  ;;  %v1457_v49 = vadd.f32 %v1451_v31, %v2846_v2 }
0x149a   : > { %1943 = vrot.lane.b32.xlu0 %v1935_v32, %s2427_s25 }
0x149c   : > { %v3120_v35 = vpop.permute.xlu1 %1532 }
0x149d   : > { %v3125_v45 = vpop.permute.xlu0 %1534  ;;  %2023 = vrot.lane.b32.xlu1 %v2017_v36, %s2429_s28 }
0x149e   : > { %2025 = vrot.lane.b32.xlu0 %v2018_v38, %s2429_s28 }
0x14a0   : > { %v1068_v50 = vpop.permute.xlu1 %1067 }
0x14a1   : > { %v1070_v40 = vpop.permute.xlu0 %1069  ;;  %v1076_v12 = vadd.f32 %v1068_v50, %v1064_v46  ;;  %2027 = vrot.lane.b32.xlu1 %v2019_v47, %s2429_s28 }
0x14a2   : > { %v1077_v52 = vadd.f32 %v1070_v40, %v1065_v48  ;;  %2041 = vrot.lane.b32.xlu0 %v2035_v25, %s2427_s25  ;;  %v1539_v48 = vadd.f32 %v3115_v34, %v2842_v0  ;;  %v1541_v40 = vadd.f32 %v3125_v45, %v2846_v2 }
0x14a3   : > { %v1079_v8 = vadd.f32 %v1076_v12, %v3057_v16  ;;  %v1456_v16 = vadd.f32 %v1449_v27, %v2848_v3 }
0x14a4   : > { %v1080_v54 = vadd.f32 %v1077_v52, %v3077_v37  ;;  %v1072_v56 = vpop.permute.xlu1 %1071  ;;  %v1455_v37 = vadd.f32 %v1447_v18, %v2842_v0  ;;  %v1540_v0 = vadd.f32 %v3120_v35, %v2848_v3 }
0x14a5   : > { %v1082_v58 = vmul.f32 -2.0, %v1079_v8  ;;  %v1100_v39 = vrot.slane %v1079_v8, 4  ;;  %v3141_v43 = vpop.permute.xlu0 %1461  ;;  %v1078_v22 = vadd.f32 %v1072_v56, %v1066_v41  ;;  %2043 = vrot.lane.b32.xlu1 %v2036_v53, %s2427_s25 }
0x14a6   : > { %v1083_v59 = vmul.f32 -2.0, %v1080_v54  ;;  %v1101_v24 = vrot.slane %v1080_v54, 4  ;;  %2045 = vrot.lane.b32.xlu0 %v2037_v57, %s2427_s25 }
0x14a7   : > { %v1088_v60 = vrot.slane %v1082_v58, 2  ;;  %v1081_v61 = vadd.f32 %v1078_v22, %v3068_v29  ;;  %v3158_v29 = vadd.f32 %v3141_v43, %v1455_v37 }
0x14a8   : > { %v1089_v62 = vrot.slane %v1083_v59, 2  ;;  %v1102_v63 = vsel %vm3450_vm11, %v1100_v39, %v1101_v24  ;;  %v3149_v1 = vpop.permute.xlu1 %1463  ;;  %vm3458_vm11 = vmmov %vm3437_vm0 }
0x14a9   : > { %v1084_v21 = vmul.f32 -2.0, %v1081_v61  ;;  %v1103_v4 = vrot.slane %v1081_v61, 4  ;;  %v1466_v20 = vpop.permute.xlu0 %1465  ;;  %v3153_v5 = vadd.f32 %v3149_v1, %v1456_v16  ;;  %2053 = vrot.lane.b32.xlu1 %v2017_v36, %s2430_s30  ;;  %v1473_v31 = vmul.f32 4.0, %v3158_v29 }
0x14aa   : > { %v1090_v33 = vsel %vm341_vm14, %v1088_v60, %v1089_v62  ;;  %2055 = vrot.lane.b32.xlu0 %v2018_v38, %s2430_s30  ;;  %v3162_v11 = vadd.f32 %v1466_v20, %v1457_v49  ;;  %v1488_v12 = vmul.f32 6.0, %v3158_v29 }
0x14ab   : > { %v1095_v23 = vadd.f32 %v1090_v33, %v1079_v8  ;;  %v1091_v9 = vrot.slane %v1084_v21, 2  ;;  %v1104_v10 = vsel %vm3437_vm0, %v1101_v24, %v1103_v4  ;;  %v1474_v42 = vmul.f32 4.0, %v3153_v5 }
0x14ac   : > { %v1549_v14 = vpop.permute.xlu1 %1548  ;;  %v1475_v27 = vmul.f32 4.0, %v3162_v11  ;;  %v1490_v25 = vmul.f32 6.0, %v3162_v11  ;;  %v1489_v51 = vmul.f32 6.0, %v3153_v5  ;;  %v1494_v22 = vrot.slane %v1488_v12, 2  ;;  %v2230_v12 = vld [vmem:[%s2546_s29 + $0x50] sm:$0xff] }
0x14ad   : > { %v1107_v18 = vadd.f32 %v1102_v63, %v1095_v23  ;;  %v1092_v19 = vsel %vm341_vm14, %v1089_v62, %v1091_v9  ;;  %v1551_v28 = vpop.permute.xlu0 %1550  ;;  %2057 = vrot.lane.b32.xlu1 %v2019_v47, %s2430_s30  ;;  %v1480_v55 = vrot.slane %v1474_v42, 1  ;;  %v1557_v8 = vadd.f32 %v1549_v14, %v1539_v48  ;;  %v2216_v48 = vld [vmem:[%s2546_s29 + $0x10] sm:$0xff] }
0x14ae   : > { %v1096_v32 = vadd.f32 %v1092_v19, %v1080_v54  ;;  %v1482_v44 = vrot.slane %v1475_v27, 1  ;;  %v1497_v2 = vrot.slane %v1490_v25, 2  ;;  %v1495_v45 = vrot.slane %v1489_v51, 2 }
0x14af   : > { %v3170_v36 = vadd.f32 %v1107_v18, %v3092_v6  ;;  %v1479_v6 = vrot.slane %v1473_v31, 1  ;;  %v1558_v57 = vadd.f32 %v1551_v28, %v1540_v0  ;;  %v1506_v16 = vrot.slane %v1475_v27, 3  ;;  %v2218_v0 = vld [vmem:[%s2546_s29 + $0x20] sm:$0xff] }
0x14b0   : > { %v1108_v38 = vadd.f32 %v1104_v10, %v1096_v32  ;;  %v1553_v46 = vpop.permute.xlu1 %1552  ;;  %v1483_v41 = vsel %vm3451_vm3, %v1480_v55, %v1482_v44  ;;  %v1504_v60 = vrot.slane %v1474_v42, 3  ;;  %v1496_v37 = vsel %vm341_vm14, %v1494_v22, %v1495_v45  ;;  %v628_v44 = vld [vmem:[%s2546_s29] sm:$0xff] }
0x14b1   : > { %vm1111_vm1 = vcmp.gt.f32.partialorder %v3170_v36, %v3060_v17  ;;  %v1561_v50 = vpop.permute.xlu0 %1560  ;;  %v1481_v52 = vsel %vm3439_vm2, %v1479_v6, %v1480_v55  ;;  %v1559_v53 = vadd.f32 %v1553_v46, %v1541_v40  ;;  %v1487_v35 = vadd.f32 %v1483_v41, %v3153_v5  ;;  %v2228_v6 = vld [vmem:[%s2546_s29 + $0x40] sm:$0xff]  ;;  %v2217_v41 = vld [vmem:[%s2546_s29 + $0x18] sm:$0xff] }
0x14b2   : > { %v3181_v47 = vsel %vm1111_vm1, %v3170_v36, %v3060_v17  ;;  %v3190_v34 = vadd.f32 %v1108_v38, %v3094_v7  ;;  %v1569_v3 = vadd.f32 %v1561_v50, %v1557_v8  ;;  %v1486_v7 = vadd.f32 %v1481_v52, %v3158_v29  ;;  %v2226_v50 = vld [vmem:[%s2546_s29 + $0x30] sm:$0xff]  ;;  %v629_v52 = vld [vmem:[%s2546_s29 + $0x8] sm:$0xff]  ;;  %v2227_v8 = vld [vmem:[%s2546_s29 + $0x38] sm:$0xff] }
0x14b3   : > { %v1498_v62 = vsel %vm341_vm14, %v1495_v45, %v1497_v2  ;;  %v1503_v21 = vrot.slane %v1473_v31, 3  ;;  %v1516_v9 = vrot.slane %v3153_v5, 4  ;;  %v1515_v5 = vrot.slane %v3158_v29, 4  ;;  %v2219_v45 = vld [vmem:[%s2546_s29 + $0x28] sm:$0xff] }
0x14b4   : > { %vm1112_vm4 = vcmp.gt.f32.partialorder %v3190_v34, %v3071_v30  ;;  %v1563_v56 = vpop.permute.xlu1 %1562  ;;  %v1572_v59 = vadd.f32 %v1569_v3, %v3141_v43  ;;  %v1501_v4 = vadd.f32 %v1496_v37, %v1486_v7  ;;  %v1502_v33 = vadd.f32 %v1498_v62, %v1487_v35  ;;  %v2231_v3 = vld [vmem:[%s2546_s29 + $0x58] sm:$0xff]  ;;  %v2239_v7 = vld [vmem:[%s2546_s29 + $0x68] sm:$0xff]  ;;  %v2240_v37 = vld [vmem:[%s2546_s29 + $0x70] sm:$0xff] }
0x14b5   : > { %v1565_v54 = vpop.permute.xlu0 %1564  ;;  %v3204_v39 = vsel %vm1112_vm4, %v3190_v34, %v3071_v30  ;;  %v1570_v24 = vadd.f32 %v1563_v56, %v1558_v57  ;;  %v1518_v43 = vrot.slane %v3162_v11, 4  ;;  %v1505_v42 = vsel %vm351_vm15, %v1503_v21, %v1504_v60  ;;  %v2229_v57 = vld [vmem:[%s2546_s29 + $0x48] sm:$0xff]  ;;  %v2241_v35 = vld [vmem:[%s2546_s29 + $0x78] sm:$0xff]  ;;  %v2242_v62 = vld [vmem:[%s2546_s29 + $0x80] sm:$0xff] }
0x14b6   : > { %v1571_v58 = vadd.f32 %v1565_v54, %v1559_v53  ;;  %v1575_v63 = vmul.f32 -2.0, %v1572_v59  ;;  %v1510_v28 = vadd.f32 %v1505_v42, %v1501_v4  ;;  %v1593_v11 = vrot.slane %v1572_v59, 4 }
0x14b7   : > { %v1573_v49 = vadd.f32 %v1570_v24, %v3149_v1  ;;  %v1517_v25 = vsel %vm3452_vm5, %v1515_v5, %v1516_v9  ;;  %v1519_v29 = vsel %vm3453_vm6, %v1516_v9, %v1518_v43  ;;  %v1117_v24 = vsel %vm1111_vm1, %v2226_v50, %v628_v44 }
0x14b8   : > { %v1574_v61 = vadd.f32 %v1571_v58, %v1466_v20  ;;  %v1507_v20 = vsel %vm351_vm15, %v1504_v60, %v1506_v16  ;;  %v1581_v18 = vrot.slane %v1575_v63, 2  ;;  %v1522_v53 = vadd.f32 %v1517_v25, %v1510_v28  ;;  %v2243_v58 = vld [vmem:[%s2546_s29 + $0x88] sm:$0xff] }
0x14b9   : > { %v1576_v10 = vmul.f32 -2.0, %v1573_v49  ;;  %v1594_v27 = vrot.slane %v1573_v49, 4  ;;  %v1511_v31 = vadd.f32 %v1507_v20, %v1502_v33  ;;  %v1121_v16 = vsel %vm1111_vm1, %v2228_v6, %v2216_v48 }
0x14ba   : > { %v1577_v23 = vmul.f32 -2.0, %v1574_v61  ;;  %v1596_v1 = vrot.slane %v1574_v61, 4  ;;  %v1118_v60 = vsel %vm1112_vm4, %v2227_v8, %v629_v52  ;;  %v2238_v61 = vld [vmem:[%s2546_s29 + $0x60] sm:$0xff]  ;;  %v1122_v63 = vsel %vm1112_vm4, %v2229_v57, %v2217_v41 }
0x14bb   : > { %v1582_v19 = vrot.slane %v1576_v10, 2  ;;  %v1595_v51 = vsel %vm3454_vm7, %v1593_v11, %v1594_v27  ;;  %v1523_v54 = vadd.f32 %v1519_v29, %v1511_v31  ;;  %v1125_v21 = vsel %vm1111_vm1, %v2230_v12, %v2218_v0  ;;  %vm3460_vm1 = vmmov %vm3437_vm0 }
0x14bc   : > { %v1584_v14 = vrot.slane %v1577_v23, 2  ;;  %v1597_v40 = vsel %vm3455_vm8, %v1594_v27, %v1596_v1 }
0x14bd   : > { %v1583_v32 = vsel %vm341_vm14, %v1581_v18, %v1582_v19 }
0x14be   : > { %v1585_v38 = vsel %vm341_vm14, %v1582_v19, %v1584_v14  ;;  %v1588_v55 = vadd.f32 %v1583_v32, %v1572_v59 }
0x14bf   : > { %v1589_v46 = vadd.f32 %v1585_v38, %v1573_v49  ;;  %v1126_v49 = vsel %vm1112_vm4, %v2231_v3, %v2219_v45 }
0x14c0   : > { %v1600_v56 = vadd.f32 %v1595_v51, %v1588_v55 }
0x14c1   : > { %v1601_v2 = vadd.f32 %v1597_v40, %v1589_v46 }
0x14c2   : > { %v3236_v22 = vadd.f32 %v1600_v56, %v1522_v53 }
0x14c3   : > { %v3238_v59 = vadd.f32 %v1601_v2, %v1523_v54 }
0x14c4   : > { %vm1604_vm9 = vcmp.gt.f32.partialorder %v3236_v22, %v3181_v47 }
0x14c5   : > { %vm1605_vm10 = vcmp.gt.f32.partialorder %v3238_v59, %v3204_v39  ;;  %v3283_v17 = vsel %vm1604_vm9, %v2238_v61, %v1117_v24  ;;  %v3288_v36 = vsel %vm1604_vm9, %v2240_v37, %v1121_v16  ;;  %v3293_v33 = vsel %vm1604_vm9, %v2242_v62, %v1125_v21 }
0x14c6   : > { %v3268_v4 = vsel %vm1605_vm10, %v2239_v7, %v1118_v60  ;;  %v3273_v30 = vsel %vm1605_vm10, %v2241_v35, %v1122_v63  ;;  %v3278_v34 = vsel %vm1605_vm10, %v2243_v58, %v1126_v49 }
0x1503   : > { %v1955_v23 = vpop.permute.xlu1 %1954 }
0x1504   : > { %v1957_v9 = vpop.permute.xlu0 %1956 }
0x1507   : > { %v1959_v10 = vpop.permute.xlu1 %1958 }
0x1508   : > { %v1940_v43 = vpop.permute.xlu0 %1939 }
0x1509   : > { %v1948_v42 = vadd.f32 %v1940_v43, %v3099_v13 }
0x150b   : > { %v1942_v20 = vpop.permute.xlu1 %1941  ;;  %v3300_v27 = vadd.f32 %v1955_v23, %v1948_v42 }
0x150c   : > { %v1944_v14 = vpop.permute.xlu0 %1943  ;;  %v1949_v18 = vadd.f32 %v1942_v20, %v3101_v15 }
0x150d   : > { %v1950_v1 = vadd.f32 %v1944_v14, %v3108_v26  ;;  %v1966_v32 = vmul.f32 4.0, %v3300_v27  ;;  %v1981_v40 = vmul.f32 6.0, %v3300_v27 }
0x150e   : > { %v3298_v19 = vadd.f32 %v1957_v9, %v1949_v18 }
0x150f   : > { %v2024_v28 = vpop.permute.xlu1 %2023  ;;  %v3302_v31 = vadd.f32 %v1959_v10, %v1950_v1  ;;  %v1972_v48 = vrot.slane %v1966_v32, 1  ;;  %v1987_v3 = vrot.slane %v1981_v40, 2  ;;  %v1996_v62 = vrot.slane %v1966_v32, 3  ;;  %v2250_v40 = vld [vmem:[%s2546_s29 + $0x90] sm:$0xff] }
0x1510   : > { %v2026_v5 = vpop.permute.xlu0 %2025  ;;  %v1967_v11 = vmul.f32 4.0, %v3298_v19  ;;  %v1982_v50 = vmul.f32 6.0, %v3298_v19  ;;  %v2032_v29 = vadd.f32 %v2024_v28, %v3099_v13 }
0x1511   : > { %v1968_v44 = vmul.f32 4.0, %v3302_v31  ;;  %v2033_v12 = vadd.f32 %v2026_v5, %v3101_v15  ;;  %v1983_v52 = vmul.f32 6.0, %v3302_v31 }
0x1512   : > { %v1973_v46 = vrot.slane %v1967_v11, 1  ;;  %v1988_v8 = vrot.slane %v1982_v50, 2  ;;  %v1997_v58 = vrot.slane %v1967_v11, 3 }
0x1513   : > { %v2028_v38 = vpop.permute.xlu1 %2027  ;;  %v1975_v25 = vrot.slane %v1968_v44, 1  ;;  %v1990_v35 = vrot.slane %v1983_v52, 2  ;;  %v1999_v43 = vrot.slane %v1968_v44, 3 }
0x1514   : > { %v2042_v55 = vpop.permute.xlu0 %2041  ;;  %v1974_v0 = vsel %vm3456_vm12, %v1972_v48, %v1973_v46  ;;  %v2034_v45 = vadd.f32 %v2028_v38, %v3108_v26  ;;  %v1989_v60 = vsel %vm341_vm14, %v1987_v3, %v1988_v8  ;;  %v2009_v26 = vrot.slane %v3298_v19, 4  ;;  %v2253_v3 = vld [vmem:[%s2546_s29 + $0xa8] sm:$0xff] }
0x1515   : > { %v2050_v41 = vadd.f32 %v2042_v55, %v2032_v29  ;;  %v1976_v56 = vsel %vm3457_vm13, %v1973_v46, %v1975_v25  ;;  %v1979_v2 = vadd.f32 %v1974_v0, %v3300_v27  ;;  %v1991_v20 = vsel %vm341_vm14, %v1988_v8, %v1990_v35  ;;  %v2252_v0 = vld [vmem:[%s2546_s29 + $0xa0] sm:$0xff] }
0x1516   : > { %v1980_v16 = vadd.f32 %v1976_v56, %v3298_v19  ;;  %v1998_v14 = vsel %vm351_vm15, %v1996_v62, %v1997_v58  ;;  %v2008_v38 = vrot.slane %v3300_v27, 4  ;;  %v2011_v19 = vrot.slane %v3302_v31, 4 }
0x1517   : > { %v2044_v6 = vpop.permute.xlu1 %2043  ;;  %v1994_v63 = vadd.f32 %v1989_v60, %v1979_v2  ;;  %v2000_v55 = vsel %vm351_vm15, %v1997_v58, %v1999_v43  ;;  %vm3459_vm15 = vmmov %vm3437_vm0 }
0x1518   : > { %v2046_v51 = vpop.permute.xlu0 %2045  ;;  %v2051_v53 = vadd.f32 %v2044_v6, %v2033_v12  ;;  %v1995_v1 = vadd.f32 %v1991_v20, %v1980_v16  ;;  %v2010_v6 = vsel %vm3458_vm11, %v2008_v38, %v2009_v26  ;;  %v2254_v12 = vld [vmem:[%s2546_s29 + $0xb0] sm:$0xff] }
0x1519   : > { %v2052_v24 = vadd.f32 %v2046_v51, %v2034_v45  ;;  %v2003_v11 = vadd.f32 %v1998_v14, %v1994_v63 }
0x151a   : > { %v2004_v50 = vadd.f32 %v2000_v55, %v1995_v1 }
0x151b   : > { %v2054_v54 = vpop.permute.xlu1 %2053  ;;  %v2015_v29 = vadd.f32 %v2010_v6, %v2003_v11 }
0x151c   : > { %v2056_v13 = vpop.permute.xlu0 %2055  ;;  %v2062_v57 = vadd.f32 %v2054_v54, %v2050_v41  ;;  %v2012_v41 = vsel %vm3459_vm15, %v2009_v26, %v2011_v19 }
0x151d   : > { %v2063_v7 = vadd.f32 %v2056_v13, %v2051_v53  ;;  %v1606_v53 = vsel %vm1604_vm9, %v3236_v22, %v3181_v47  ;;  %v2016_v54 = vadd.f32 %v2012_v41, %v2004_v50  ;;  %v1607_v47 = vsel %vm1605_vm10, %v3238_v59, %v3204_v39 }
0x151e   : > { %v2065_v15 = vadd.f32 %v2062_v57, %v1955_v23  ;;  %v2251_v57 = vld [vmem:[%s2546_s29 + $0x98] sm:$0xff] }
0x151f   : > { %v2066_v61 = vadd.f32 %v2063_v7, %v1957_v9  ;;  %v2058_v37 = vpop.permute.xlu1 %2057  ;;  %v2255_v7 = vld [vmem:[%s2546_s29 + $0xb8] sm:$0xff] }
0x1520   : > { %v2068_v49 = vmul.f32 -2.0, %v2065_v15  ;;  %v2064_v21 = vadd.f32 %v2058_v37, %v2052_v24  ;;  %v2086_v9 = vrot.slane %v2065_v15, 4 }
0x1521   : > { %v2069_v42 = vmul.f32 -2.0, %v2066_v61  ;;  %v2087_v5 = vrot.slane %v2066_v61, 4 }
0x1522   : > { %v2074_v18 = vrot.slane %v2068_v49, 2  ;;  %v2067_v23 = vadd.f32 %v2064_v21, %v1959_v10 }
0x1523   : > { %v2075_v28 = vrot.slane %v2069_v42, 2  ;;  %v2088_v25 = vsel %vm3437_vm0, %v2086_v9, %v2087_v5 }
0x1524   : > { %v2070_v32 = vmul.f32 -2.0, %v2067_v23  ;;  %v2089_v10 = vrot.slane %v2067_v23, 4 }
0x1525   : > { %v2076_v44 = vsel %vm341_vm14, %v2074_v18, %v2075_v28 }
0x1526   : > { %v2081_v46 = vadd.f32 %v2076_v44, %v2065_v15  ;;  %v2077_v48 = vrot.slane %v2070_v32, 2  ;;  %v2090_v8 = vsel %vm3460_vm1, %v2087_v5, %v2089_v10 }
0x1528   : > { %v2093_v27 = vadd.f32 %v2088_v25, %v2081_v46  ;;  %v2078_v51 = vsel %vm341_vm14, %v2075_v28, %v2077_v48  ;;  %vm2111_vm14 = vcmask 130048  }
0x1529   : > { %v2082_v31 = vadd.f32 %v2078_v51, %v2066_v61 }
0x152a   : > { %v2095_v52 = vadd.f32 %v2093_v27, %v2015_v29 }
0x152b   : > { %v2094_v56 = vadd.f32 %v2090_v8, %v2082_v31 }
0x152c   : > { %vm2097_vm2 = vcmp.gt.f32.partialorder %v2095_v52, %v1606_v53 }
0x152d   : > { %v2101_v2 = vsel %vm2097_vm2, %v2250_v40, %v3283_v17  ;;  %v2105_v45 = vsel %vm2097_vm2, %v2252_v0, %v3288_v36  ;;  %v2109_v13 = vsel %vm2097_vm2, %v2254_v12, %v3293_v33  ;;  %v2096_v35 = vadd.f32 %v2094_v56, %v2016_v54 }
0x152e   : > { %2112 = vst.msk [vmem:[%s134_s4] sm:$0xff] %vm2111_vm14, %v2101_v2  ;;  %2256 = vst.msk [vmem:[%s134_s4 + $0x10] sm:$0xff] %vm2111_vm14, %v2105_v45 }
0x152f   : > { %2258 = vst.msk [vmem:[%s134_s4 + $0x20] sm:$0xff] %vm2111_vm14, %v2109_v13  ;;  %vm2098_vm3 = vcmp.gt.f32.partialorder %v2096_v35, %v1607_v47 }
0x1530   : > { %v2102_v22 = vsel %vm2098_vm3, %v2251_v57, %v3268_v4  ;;  %v2106_v17 = vsel %vm2098_vm3, %v2253_v3, %v3273_v30  ;;  %v2110_v36 = vsel %vm2098_vm3, %v2255_v7, %v3278_v34 }
0x1531   : > { %2113 = vst.msk [vmem:[%s134_s4 + $0x8] sm:$0xff] %vm2111_vm14, %v2102_v22  ;;  %2257 = vst.msk [vmem:[%s134_s4 + $0x18] sm:$0xff] %vm2111_vm14, %v2106_v17 }
0x1532   : > { %2259 = vst.msk [vmem:[%s134_s4 + $0x28] sm:$0xff] %vm2111_vm14, %v2110_v36 }
0x1533   : > { %2367 = shalt.err (!%p2364_p2)
}
0x1534   : > { %s2368_s26 = scalar_lea.hbm %s3357_s13, 768  ;;  %s2372_s16 = scalar_lea.hbm %s3410_s1, 1536 }
0x1535   : > { %p2369_p4 = scmp.ne.s32.totalorder %s3357_s13, %s2368_s26  ;;  %p2373_p9 = scmp.lt.u32.totalorder %s3357_s13, %s3410_s1 }
0x1536   : > { %p2374_p1 = scmp.lt.u32.totalorder %s2372_s16, %s2368_s26  ;;  %p2376_p6 = scmp.lt.u32.totalorder %s2368_s26, %s3357_s13 }
0x1537   : > { %p2370_p5 = pnand %p2369_p4, %p3461_p11 }
0x1538   : > { %p2375_p3 = por %p2374_p1, %p2373_p9 }
0x1539   : > { %p2371_p7 = pneg %p2370_p5 }
0x153a   : > { %p2377_p12 = por %p2376_p6, %p2375_p3 }
0x153c   : > { %p2378_p13 = pnand %p2377_p12, %p2371_p7 }
0x153e   : > { %2381 = shalt.err (!%p2378_p13)
}
0x153f   : > { %s2432_s28 = smov 128   ;;  %s2433_s30 = smov 8  }
0x1540   : > { %2270 = dma.vmem_to_hbm [thread:$0]  (%p3461_p11), %s3359_s5, 768, %s3357_s13, %s2121_s14, %s2432_s28, %s2432_s28, %s2433_s30  }
0x1541 PF: > { %s2149_s2 = sand.u32 1, %s2408_s6   ;;  %p3462_p8 = scmp.ne.s32.totalorder %s3418_s18, 0 }
0x1542   : > { %p3463_p10 = scmp.ge.s32.totalorder %s2420_s9, 2  ;;  %s2150_s3 = scalar_lea.sflag [#allocation5], %s2149_s2 }
0x1544   : > { %p2277_p0 = pnand %p3463_p10, %p3462_p8 }
0x1546   : > { %2403 = dma.done.wait (!%p2277_p0), %s2150_s3, 768  }
0x1547   : > { %2405 = vsyncadd (!%p2277_p0), %s2150_s3, 4294966528  ;;  %p14_p2 = scmp.ge.s32.totalorder %s2469_s12, 4   ;;  %s3464_s6 = smov %s2412_s7 }
0x1548   : > { %s3465_s7 = smov %s2416_s8  ;;  %s3466_s8 = smov %s2481_s15 }
0x1549   : > { %s3467_s9 = smov %s2469_s12  ;;  %16 = sbr.rel (!%p14_p2) target bundleno = 5 (0x5), region = 82 }
0x1550   :  { %2155 = vsyncpa [#allocation4], 1 }
0x1551   :  { %2157 = vsyncpa [#allocation4 + $0x1], 1 }
0x1552   :  { %2158 = vsyncpa [#allocation5], 1 }
0x1553   :  { %2160 = vsyncpa [#allocation5 + $0x1], 1 }

</bundles_post_ra>
